<compile_context>
chip_gen: v5e
topology: v5e:2x2
jax: 0.10.0
libtpu: 0.0.40
codegen_flags: <defaults>
</compile_context>

<pallas_src>
import functools

import numpy as np
import jax
import jax.numpy as jnp
from jax.experimental import pallas as pl
from jax.experimental.pallas import tpu as pltpu


# ---------------------------------------------------------------------------
# Fused Pallas kernel
# ---------------------------------------------------------------------------
def _conv_frame(load, w_ref, K, p, *, D, Wp, L):
    """Same-padding conv on a zero-padded frame, evaluated over the core range.

    out[:, j] = sum_{kh,kw} w[kh,kw] @ frame[:, j + D + (kh-p)*Wp + (kw-p)]
    Each tap is a contiguous lane slice (no reshape) + one small MXU matmul.
    """
    Cout = w_ref.shape[2]
    acc = jnp.zeros((Cout, L), jnp.float32)
    for kh in range(K):
        for kw in range(K):
            off = D + (kh - p) * Wp + (kw - p)          # static Python int
            acc = acc + jnp.dot(w_ref[kh, kw], load(off),
                                preferred_element_type=jnp.float32)
    return acc


def finalnet_kernel(x_ref, w0_ref, b0_ref, w3_ref, b3_ref, w5_ref, b5_ref,
                    w2_ref, b2_ref, mask_ref, alpha_ref, o_ref,
                    f0_ref, f1_ref, *, N, Wp, D, L):
    mask = mask_ref[...]                                # (1, L) interior mask (1.0/0.0)
    a0, a1, a2 = alpha_ref[0], alpha_ref[1], alpha_ref[2]

    # Zero the pad rings once; only the core is rewritten per image, so the
    # frames always equal the exact zero-padded activations.
    f0_ref[...] = jnp.zeros_like(f0_ref)
    f1_ref[...] = jnp.zeros_like(f1_ref)
    o_ref[...] = jnp.zeros_like(o_ref)

    for n in range(N):                                  # tiny static batch, unrolled
        # ---- layer0: SingleLayer conv3x3 (Cin->Cmid) + bias + ReLU --------
        load_x = lambda off, n=n: x_ref[n, :, off:off + L]
        y0 = _conv_frame(load_x, w0_ref, 3, 1, D=D, Wp=Wp, L=L) + b0_ref[...]
        f0_ref[:, D:D + L] = jnp.maximum(y0, 0.0) * mask

        # ---- layer1: MixLayer = a0*conv3x3 + a1*conv5x5 + a2*identity -----
        # TODO(synk): identity branch assumes MixLayer Cin == Cout (true here: 8->8).
        load_f0 = lambda off: f0_ref[:, off:off + L]
        y3 = _conv_frame(load_f0, w3_ref, 3, 1, D=D, Wp=Wp, L=L) + b3_ref[...]
        y5 = _conv_frame(load_f0, w5_ref, 5, 2, D=D, Wp=Wp, L=L) + b5_ref[...]
        ident = f0_ref[:, D:D + L]
        f1_ref[:, D:D + L] = (a0 * y3 + a1 * y5 + a2 * ident) * mask

        # ---- layer2: SingleLayer conv1x1 (Cmid->Cout) + bias + ReLU -------
        y2 = jnp.dot(w2_ref[0, 0], f1_ref[:, D:D + L],
                     preferred_element_type=jnp.float32) + b2_ref[...]
        o_ref[n, :, D:D + L] = jnp.maximum(y2, 0.0) * mask


# ---------------------------------------------------------------------------
# Wrapper: layout plumbing only (one pad, one crop, weight transposes)
# ---------------------------------------------------------------------------
@jax.jit
def finalnet_forward_pallas(x_nchw, p):
    N, Cin, H, W = x_nchw.shape
    Cmid = p["w0"].shape[-1]
    Cout = p["w2"].shape[-1]

    PAD = 2                                   # common frame pad = max branch pad (5x5)
    Hp, Wp = H + 2 * PAD, W + 2 * PAD
    F = Hp * Wp                               # frame length (flattened, lane dim)
    D = PAD * Wp + PAD                        # frame index of image pixel (0,0)
    L = F - 2 * D                             # core length (covers every interior pixel)

    x = x_nchw.astype(jnp.float32)
    xf = jnp.pad(x, ((0, 0), (0, 0), (PAD, PAD), (PAD, PAD))).reshape(N, Cin, F)

    # Interior mask over the core range, built at trace time (compile-time constant).
    ii = np.arange(L) + D
    rr, cc = ii // Wp, ii % Wp
    mask = jnp.asarray(((rr >= PAD) & (rr < PAD + H) &
                        (cc >= PAD) & (cc < PAD + W)).astype(np.float32)).reshape(1, L)

    alpha = jax.nn.softmax(p["theta"])        # MixLayer architecture path weights

    # HWIO -> HWOI so the kernel computes (Cout,Cin) @ (Cin,L) per tap.
    w0 = jnp.transpose(p["w0"], (0, 1, 3, 2))
    w3 = jnp.transpose(p["w3"], (0, 1, 3, 2))
    w5 = jnp.transpose(p["w5"], (0, 1, 3, 2))
    w2 = jnp.transpose(p["w2"], (0, 1, 3, 2))
    b0 = p["b0"].reshape(Cmid, 1)
    b3 = p["b3"].reshape(Cmid, 1)
    b5 = p["b5"].reshape(Cmid, 1)
    b2 = p["b2"].reshape(Cout, 1)

    kern = functools.partial(finalnet_kernel, N=N, Wp=Wp, D=D, L=L)
    vmem = pl.BlockSpec(memory_space=pltpu.MemorySpace.VMEM)
    smem = pl.BlockSpec(memory_space=pltpu.MemorySpace.SMEM)

    out_frames = pl.pallas_call(
        kern,
        out_shape=jax.ShapeDtypeStruct((N, Cout, F), jnp.float32),
        in_specs=[vmem] * 10 + [smem],        # xf, w0,b0, w3,b3, w5,b5, w2,b2, mask | alpha
        out_specs=vmem,
        scratch_shapes=[pltpu.VMEM((Cmid, F), jnp.float32),   # act after layer0
                        pltpu.VMEM((Cmid, F), jnp.float32)],  # act after MixLayer
    )(xf, w0, b0, w3, b3, w5, b5, w2, b2, mask, alpha)

    # Crop the zero-pad ring: frame (Hp,Wp) -> image (H,W). Output is NCHW already.
    return out_frames.reshape(N, Cout, Hp, Wp)[:, :, PAD:PAD + H, PAD:PAD + W]


# ---------------------------------------------------------------------------
# Deterministic parameter construction (concrete FinalNet instance)
# ---------------------------------------------------------------------------
def init_finalnet_params(key, cin=4, cmid=8, cout=4):
    ks = jax.random.split(key, 7)
    return {
        # SingleLayer 0: conv3x3 cin->cmid
        "w0": 0.1 * jax.random.normal(ks[0], (3, 3, cin, cmid), jnp.float32),
        "b0": 0.1 * jax.random.normal(ks[1], (cmid,), jnp.float32),
        # MixLayer candidates: conv3x3, conv5x5, identity   (cmid->cmid)
        "w3": 0.1 * jax.random.normal(ks[2], (3, 3, cmid, cmid), jnp.float32),
        "b3": 0.1 * jax.random.normal(ks[3], (cmid,), jnp.float32),
        "w5": 0.1 * jax.random.normal(ks[4], (5, 5, cmid, cmid), jnp.float32),
        "b5": 0.1 * jax.random.normal(ks[5], (cmid,), jnp.float32),
        "theta": jnp.array([0.6, 0.1, 0.3], jnp.float32),   # path_theta
        # SingleLayer 2: conv1x1 cmid->cout
        "w2": 0.1 * jax.random.normal(ks[6], (1, 1, cmid, cout), jnp.float32),
        "b2": jnp.zeros((cout,), jnp.float32),
    }


# ---------------------------------------------------------------------------
# Pure-JAX reference (correctness check only)
# ---------------------------------------------------------------------------
def _ref_conv(x, w, b, pad):
    y = jax.lax.conv_general_dilated(
        x, w, window_strides=(1, 1),
        padding=[(pad, pad), (pad, pad)],
        dimension_numbers=("NHWC", "HWIO", "NHWC"))
    return y + b.reshape(1, 1, 1, -1)


def finalnet_forward_ref(x_nchw, p):
    x = jnp.transpose(x_nchw, (0, 2, 3, 1)).astype(jnp.float32)
    y = jax.nn.relu(_ref_conv(x, p["w0"], p["b0"], 1))
    a = jax.nn.softmax(p["theta"])
    y = (a[0] * _ref_conv(y, p["w3"], p["b3"], 1)
         + a[1] * _ref_conv(y, p["w5"], p["b5"], 2)
         + a[2] * y)
    y = jax.nn.relu(_ref_conv(y, p["w2"], p["b2"], 0))
    return jnp.transpose(y, (0, 3, 1, 2))


if __name__ == "__main__":
    key = jax.random.PRNGKey(0)
    k_param, k_x = jax.random.split(key)
    params = init_finalnet_params(k_param, cin=4, cmid=8, cout=4)

    # PyTorch-convention NCHW input: batch=2, channels=4, spatial=16x16.
    x = jax.random.normal(k_x, (2, 4, 16, 16), jnp.float32)

    out = jax.block_until_ready(finalnet_forward_pallas(x, params))
    ref = finalnet_forward_ref(x, params)

    assert out.shape == (2, 4, 16, 16)
    assert jnp.allclose(out, ref, atol=1e-3, rtol=1e-3), "mismatch vs reference"

    print("KERNEL_OK")
</pallas_src>

<mosaic_0001>
module attributes {stable_mosaic.version = 11 : i64} {
  func.func @finalnet_kernel(%arg0: memref<2x4x400xf32, #tpu.memory_space<vmem>>, %arg1: memref<3x3x8x4xf32, #tpu.memory_space<vmem>>, %arg2: memref<8x1xf32, #tpu.memory_space<vmem>>, %arg3: memref<3x3x8x8xf32, #tpu.memory_space<vmem>>, %arg4: memref<8x1xf32, #tpu.memory_space<vmem>>, %arg5: memref<5x5x8x8xf32, #tpu.memory_space<vmem>>, %arg6: memref<8x1xf32, #tpu.memory_space<vmem>>, %arg7: memref<1x1x4x8xf32, #tpu.memory_space<vmem>>, %arg8: memref<4x1xf32, #tpu.memory_space<vmem>>, %arg9: memref<1x316xf32, #tpu.memory_space<vmem>>, %arg10: memref<3xf32, #tpu.memory_space<smem>>, %arg11: memref<2x4x400xf32, #tpu.memory_space<vmem>>, %arg12: memref<8x400xf32, #tpu.memory_space<vmem>>, %arg13: memref<8x400xf32, #tpu.memory_space<vmem>>) attributes {dimension_semantics = [], scalar_prefetch = 0 : i64, scratch_operands = 2 : i64, tpu.core_type = #tpu.core_type<tc>} {
    %c0 = arith.constant 0 : index
    %c0_0 = arith.constant 0 : index
    %0 = vector.load %arg9[%c0, %c0_0] : memref<1x316xf32, #tpu.memory_space<vmem>>, vector<1x316xf32>
    %c0_1 = arith.constant 0 : index
    %1 = memref.load %arg10[%c0_1] : memref<3xf32, #tpu.memory_space<smem>>
    %c1 = arith.constant 1 : index
    %2 = memref.load %arg10[%c1] : memref<3xf32, #tpu.memory_space<smem>>
    %c2 = arith.constant 2 : index
    %3 = memref.load %arg10[%c2] : memref<3xf32, #tpu.memory_space<smem>>
    %cst = arith.constant 0.000000e+00 : f32
    %4 = vector.broadcast %cst : f32 to vector<8x400xf32>
    %c0_2 = arith.constant 0 : index
    %c0_3 = arith.constant 0 : index
    %5 = vector.load %arg12[%c0_2, %c0_3] : memref<8x400xf32, #tpu.memory_space<vmem>>, vector<8x400xf32>
    tpu.vector_store %arg12[%c0_2, %c0_3], %4 {strides = array<i32>} : memref<8x400xf32, #tpu.memory_space<vmem>>, vector<8x400xf32>,
    %cst_4 = arith.constant 0.000000e+00 : f32
    %6 = vector.broadcast %cst_4 : f32 to vector<8x400xf32>
    %c0_5 = arith.constant 0 : index
    %c0_6 = arith.constant 0 : index
    %7 = vector.load %arg13[%c0_5, %c0_6] : memref<8x400xf32, #tpu.memory_space<vmem>>, vector<8x400xf32>
    tpu.vector_store %arg13[%c0_5, %c0_6], %6 {strides = array<i32>} : memref<8x400xf32, #tpu.memory_space<vmem>>, vector<8x400xf32>,
    %cst_7 = arith.constant 0.000000e+00 : f32
    %8 = vector.broadcast %cst_7 : f32 to vector<2x4x400xf32>
    %c0_8 = arith.constant 0 : index
    %c0_9 = arith.constant 0 : index
    %c0_10 = arith.constant 0 : index
    %9 = vector.load %arg11[%c0_8, %c0_9, %c0_10] : memref<2x4x400xf32, #tpu.memory_space<vmem>>, vector<2x4x400xf32>
    tpu.vector_store %arg11[%c0_8, %c0_9, %c0_10], %8 {strides = array<i32>} : memref<2x4x400xf32, #tpu.memory_space<vmem>>, vector<2x4x400xf32>,
    %cst_11 = arith.constant 0.000000e+00 : f32
    %10 = vector.broadcast %cst_11 : f32 to vector<8x316xf32>
    %c0_12 = arith.constant 0 : index
    %c0_13 = arith.constant 0 : index
    %c0_14 = arith.constant 0 : index
    %c0_15 = arith.constant 0 : index
    %11 = vector.load %arg1[%c0_12, %c0_13, %c0_14, %c0_15] : memref<3x3x8x4xf32, #tpu.memory_space<vmem>>, vector<1x1x8x4xf32>
    %12 = vector.shape_cast %11 : vector<1x1x8x4xf32> to vector<8x4xf32>
    %c0_16 = arith.constant 0 : index
    %c0_17 = arith.constant 0 : index
    %c21 = arith.constant 21 : index
    %13 = vector.load %arg0[%c0_16, %c0_17, %c21] : memref<2x4x400xf32, #tpu.memory_space<vmem>>, vector<1x4x316xf32>
    %14 = vector.shape_cast %13 : vector<1x4x316xf32> to vector<4x316xf32>
    %cst_18 = arith.constant dense<0.000000e+00> : vector<8x316xf32>
    %15 = tpu.matmul %12, %14, %cst_18 {dimension_numbers = #tpu.dot_dimension_numbers<[1], [0], [0], [1], [0, 0, 1, 1], [], []>} : vector<8x4xf32>, vector<4x316xf32>, vector<8x316xf32> -> vector<8x316xf32>
    %16 = arith.addf %10, %15 : vector<8x316xf32>
    %c0_19 = arith.constant 0 : index
    %c1_20 = arith.constant 1 : index
    %c0_21 = arith.constant 0 : index
    %c0_22 = arith.constant 0 : index
    %17 = vector.load %arg1[%c0_19, %c1_20, %c0_21, %c0_22] : memref<3x3x8x4xf32, #tpu.memory_space<vmem>>, vector<1x1x8x4xf32>
    %18 = vector.shape_cast %17 : vector<1x1x8x4xf32> to vector<8x4xf32>
    %c0_23 = arith.constant 0 : index
    %c0_24 = arith.constant 0 : index
    %c22 = arith.constant 22 : index
    %19 = vector.load %arg0[%c0_23, %c0_24, %c22] : memref<2x4x400xf32, #tpu.memory_space<vmem>>, vector<1x4x316xf32>
    %20 = vector.shape_cast %19 : vector<1x4x316xf32> to vector<4x316xf32>
    %cst_25 = arith.constant dense<0.000000e+00> : vector<8x316xf32>
    %21 = tpu.matmul %18, %20, %cst_25 {dimension_numbers = #tpu.dot_dimension_numbers<[1], [0], [0], [1], [0, 0, 1, 1], [], []>} : vector<8x4xf32>, vector<4x316xf32>, vector<8x316xf32> -> vector<8x316xf32>
    %22 = arith.addf %16, %21 : vector<8x316xf32>
    %c0_26 = arith.constant 0 : index
    %c2_27 = arith.constant 2 : index
    %c0_28 = arith.constant 0 : index
    %c0_29 = arith.constant 0 : index
    %23 = vector.load %arg1[%c0_26, %c2_27, %c0_28, %c0_29] : memref<3x3x8x4xf32, #tpu.memory_space<vmem>>, vector<1x1x8x4xf32>
    %24 = vector.shape_cast %23 : vector<1x1x8x4xf32> to vector<8x4xf32>
    %c0_30 = arith.constant 0 : index
    %c0_31 = arith.constant 0 : index
    %c23 = arith.constant 23 : index
    %25 = vector.load %arg0[%c0_30, %c0_31, %c23] : memref<2x4x400xf32, #tpu.memory_space<vmem>>, vector<1x4x316xf32>
    %26 = vector.shape_cast %25 : vector<1x4x316xf32> to vector<4x316xf32>
    %cst_32 = arith.constant dense<0.000000e+00> : vector<8x316xf32>
    %27 = tpu.matmul %24, %26, %cst_32 {dimension_numbers = #tpu.dot_dimension_numbers<[1], [0], [0], [1], [0, 0, 1, 1], [], []>} : vector<8x4xf32>, vector<4x316xf32>, vector<8x316xf32> -> vector<8x316xf32>
    %28 = arith.addf %22, %27 : vector<8x316xf32>
    %c1_33 = arith.constant 1 : index
    %c0_34 = arith.constant 0 : index
    %c0_35 = arith.constant 0 : index
    %c0_36 = arith.constant 0 : index
    %29 = vector.load %arg1[%c1_33, %c0_34, %c0_35, %c0_36] : memref<3x3x8x4xf32, #tpu.memory_space<vmem>>, vector<1x1x8x4xf32>
    %30 = vector.shape_cast %29 : vector<1x1x8x4xf32> to vector<8x4xf32>
    %c0_37 = arith.constant 0 : index
    %c0_38 = arith.constant 0 : index
    %c41 = arith.constant 41 : index
    %31 = vector.load %arg0[%c0_37, %c0_38, %c41] : memref<2x4x400xf32, #tpu.memory_space<vmem>>, vector<1x4x316xf32>
    %32 = vector.shape_cast %31 : vector<1x4x316xf32> to vector<4x316xf32>
    %cst_39 = arith.constant dense<0.000000e+00> : vector<8x316xf32>
    %33 = tpu.matmul %30, %32, %cst_39 {dimension_numbers = #tpu.dot_dimension_numbers<[1], [0], [0], [1], [0, 0, 1, 1], [], []>} : vector<8x4xf32>, vector<4x316xf32>, vector<8x316xf32> -> vector<8x316xf32>
    %34 = arith.addf %28, %33 : vector<8x316xf32>
    %c1_40 = arith.constant 1 : index
    %c1_41 = arith.constant 1 : index
    %c0_42 = arith.constant 0 : index
    %c0_43 = arith.constant 0 : index
    %35 = vector.load %arg1[%c1_40, %c1_41, %c0_42, %c0_43] : memref<3x3x8x4xf32, #tpu.memory_space<vmem>>, vector<1x1x8x4xf32>
    %36 = vector.shape_cast %35 : vector<1x1x8x4xf32> to vector<8x4xf32>
    %c0_44 = arith.constant 0 : index
    %c0_45 = arith.constant 0 : index
    %c42 = arith.constant 42 : index
    %37 = vector.load %arg0[%c0_44, %c0_45, %c42] : memref<2x4x400xf32, #tpu.memory_space<vmem>>, vector<1x4x316xf32>
    %38 = vector.shape_cast %37 : vector<1x4x316xf32> to vector<4x316xf32>
    %cst_46 = arith.constant dense<0.000000e+00> : vector<8x316xf32>
    %39 = tpu.matmul %36, %38, %cst_46 {dimension_numbers = #tpu.dot_dimension_numbers<[1], [0], [0], [1], [0, 0, 1, 1], [], []>} : vector<8x4xf32>, vector<4x316xf32>, vector<8x316xf32> -> vector<8x316xf32>
    %40 = arith.addf %34, %39 : vector<8x316xf32>
    %c1_47 = arith.constant 1 : index
    %c2_48 = arith.constant 2 : index
    %c0_49 = arith.constant 0 : index
    %c0_50 = arith.constant 0 : index
    %41 = vector.load %arg1[%c1_47, %c2_48, %c0_49, %c0_50] : memref<3x3x8x4xf32, #tpu.memory_space<vmem>>, vector<1x1x8x4xf32>
    %42 = vector.shape_cast %41 : vector<1x1x8x4xf32> to vector<8x4xf32>
    %c0_51 = arith.constant 0 : index
    %c0_52 = arith.constant 0 : index
    %c43 = arith.constant 43 : index
    %43 = vector.load %arg0[%c0_51, %c0_52, %c43] : memref<2x4x400xf32, #tpu.memory_space<vmem>>, vector<1x4x316xf32>
    %44 = vector.shape_cast %43 : vector<1x4x316xf32> to vector<4x316xf32>
    %cst_53 = arith.constant dense<0.000000e+00> : vector<8x316xf32>
    %45 = tpu.matmul %42, %44, %cst_53 {dimension_numbers = #tpu.dot_dimension_numbers<[1], [0], [0], [1], [0, 0, 1, 1], [], []>} : vector<8x4xf32>, vector<4x316xf32>, vector<8x316xf32> -> vector<8x316xf32>
    %46 = arith.addf %40, %45 : vector<8x316xf32>
    %c2_54 = arith.constant 2 : index
    %c0_55 = arith.constant 0 : index
    %c0_56 = arith.constant 0 : index
    %c0_57 = arith.constant 0 : index
    %47 = vector.load %arg1[%c2_54, %c0_55, %c0_56, %c0_57] : memref<3x3x8x4xf32, #tpu.memory_space<vmem>>, vector<1x1x8x4xf32>
    %48 = vector.shape_cast %47 : vector<1x1x8x4xf32> to vector<8x4xf32>
    %c0_58 = arith.constant 0 : index
    %c0_59 = arith.constant 0 : index
    %c61 = arith.constant 61 : index
    %49 = vector.load %arg0[%c0_58, %c0_59, %c61] : memref<2x4x400xf32, #tpu.memory_space<vmem>>, vector<1x4x316xf32>
    %50 = vector.shape_cast %49 : vector<1x4x316xf32> to vector<4x316xf32>
    %cst_60 = arith.constant dense<0.000000e+00> : vector<8x316xf32>
    %51 = tpu.matmul %48, %50, %cst_60 {dimension_numbers = #tpu.dot_dimension_numbers<[1], [0], [0], [1], [0, 0, 1, 1], [], []>} : vector<8x4xf32>, vector<4x316xf32>, vector<8x316xf32> -> vector<8x316xf32>
    %52 = arith.addf %46, %51 : vector<8x316xf32>
    %c2_61 = arith.constant 2 : index
    %c1_62 = arith.constant 1 : index
    %c0_63 = arith.constant 0 : index
    %c0_64 = arith.constant 0 : index
    %53 = vector.load %arg1[%c2_61, %c1_62, %c0_63, %c0_64] : memref<3x3x8x4xf32, #tpu.memory_space<vmem>>, vector<1x1x8x4xf32>
    %54 = vector.shape_cast %53 : vector<1x1x8x4xf32> to vector<8x4xf32>
    %c0_65 = arith.constant 0 : index
    %c0_66 = arith.constant 0 : index
    %c62 = arith.constant 62 : index
    %55 = vector.load %arg0[%c0_65, %c0_66, %c62] : memref<2x4x400xf32, #tpu.memory_space<vmem>>, vector<1x4x316xf32>
    %56 = vector.shape_cast %55 : vector<1x4x316xf32> to vector<4x316xf32>
    %cst_67 = arith.constant dense<0.000000e+00> : vector<8x316xf32>
    %57 = tpu.matmul %54, %56, %cst_67 {dimension_numbers = #tpu.dot_dimension_numbers<[1], [0], [0], [1], [0, 0, 1, 1], [], []>} : vector<8x4xf32>, vector<4x316xf32>, vector<8x316xf32> -> vector<8x316xf32>
    %58 = arith.addf %52, %57 : vector<8x316xf32>
    %c2_68 = arith.constant 2 : index
    %c2_69 = arith.constant 2 : index
    %c0_70 = arith.constant 0 : index
    %c0_71 = arith.constant 0 : index
    %59 = vector.load %arg1[%c2_68, %c2_69, %c0_70, %c0_71] : memref<3x3x8x4xf32, #tpu.memory_space<vmem>>, vector<1x1x8x4xf32>
    %60 = vector.shape_cast %59 : vector<1x1x8x4xf32> to vector<8x4xf32>
    %c0_72 = arith.constant 0 : index
    %c0_73 = arith.constant 0 : index
    %c63 = arith.constant 63 : index
    %61 = vector.load %arg0[%c0_72, %c0_73, %c63] : memref<2x4x400xf32, #tpu.memory_space<vmem>>, vector<1x4x316xf32>
    %62 = vector.shape_cast %61 : vector<1x4x316xf32> to vector<4x316xf32>
    %cst_74 = arith.constant dense<0.000000e+00> : vector<8x316xf32>
    %63 = tpu.matmul %60, %62, %cst_74 {dimension_numbers = #tpu.dot_dimension_numbers<[1], [0], [0], [1], [0, 0, 1, 1], [], []>} : vector<8x4xf32>, vector<4x316xf32>, vector<8x316xf32> -> vector<8x316xf32>
    %64 = arith.addf %58, %63 : vector<8x316xf32>
    %c0_75 = arith.constant 0 : index
    %c0_76 = arith.constant 0 : index
    %65 = vector.load %arg2[%c0_75, %c0_76] : memref<8x1xf32, #tpu.memory_space<vmem>>, vector<8x1xf32>
    %66 = vector.broadcast %65 : vector<8x1xf32> to vector<8x316xf32>
    %67 = arith.addf %64, %66 : vector<8x316xf32>
    %cst_77 = arith.constant 0.000000e+00 : f32
    %68 = vector.broadcast %cst_77 : f32 to vector<8x316xf32>
    %69 = arith.maximumf %67, %68 : vector<8x316xf32>
    %70 = vector.broadcast %0 : vector<1x316xf32> to vector<8x316xf32>
    %71 = arith.mulf %69, %70 : vector<8x316xf32>
    %c0_78 = arith.constant 0 : index
    %c42_79 = arith.constant 42 : index
    %72 = vector.load %arg12[%c0_78, %c42_79] : memref<8x400xf32, #tpu.memory_space<vmem>>, vector<8x316xf32>
    tpu.vector_store %arg12[%c0_78, %c42_79], %71 {strides = array<i32>} : memref<8x400xf32, #tpu.memory_space<vmem>>, vector<8x316xf32>,
    %cst_80 = arith.constant 0.000000e+00 : f32
    %73 = vector.broadcast %cst_80 : f32 to vector<8x316xf32>
    %c0_81 = arith.constant 0 : index
    %c0_82 = arith.constant 0 : index
    %c0_83 = arith.constant 0 : index
    %c0_84 = arith.constant 0 : index
    %74 = vector.load %arg3[%c0_81, %c0_82, %c0_83, %c0_84] : memref<3x3x8x8xf32, #tpu.memory_space<vmem>>, vector<1x1x8x8xf32>
    %75 = vector.shape_cast %74 : vector<1x1x8x8xf32> to vector<8x8xf32>
    %c0_85 = arith.constant 0 : index
    %c21_86 = arith.constant 21 : index
    %76 = vector.load %arg12[%c0_85, %c21_86] : memref<8x400xf32, #tpu.memory_space<vmem>>, vector<8x316xf32>
    %cst_87 = arith.constant dense<0.000000e+00> : vector<8x316xf32>
    %77 = tpu.matmul %75, %76, %cst_87 {dimension_numbers = #tpu.dot_dimension_numbers<[1], [0], [0], [1], [0, 0, 1, 1], [], []>} : vector<8x8xf32>, vector<8x316xf32>, vector<8x316xf32> -> vector<8x316xf32>
    %78 = arith.addf %73, %77 : vector<8x316xf32>
    %c0_88 = arith.constant 0 : index
    %c1_89 = arith.constant 1 : index
    %c0_90 = arith.constant 0 : index
    %c0_91 = arith.constant 0 : index
    %79 = vector.load %arg3[%c0_88, %c1_89, %c0_90, %c0_91] : memref<3x3x8x8xf32, #tpu.memory_space<vmem>>, vector<1x1x8x8xf32>
    %80 = vector.shape_cast %79 : vector<1x1x8x8xf32> to vector<8x8xf32>
    %c0_92 = arith.constant 0 : index
    %c22_93 = arith.constant 22 : index
    %81 = vector.load %arg12[%c0_92, %c22_93] : memref<8x400xf32, #tpu.memory_space<vmem>>, vector<8x316xf32>
    %cst_94 = arith.constant dense<0.000000e+00> : vector<8x316xf32>
    %82 = tpu.matmul %80, %81, %cst_94 {dimension_numbers = #tpu.dot_dimension_numbers<[1], [0], [0], [1], [0, 0, 1, 1], [], []>} : vector<8x8xf32>, vector<8x316xf32>, vector<8x316xf32> -> vector<8x316xf32>
    %83 = arith.addf %78, %82 : vector<8x316xf32>
    %c0_95 = arith.constant 0 : index
    %c2_96 = arith.constant 2 : index
    %c0_97 = arith.constant 0 : index
    %c0_98 = arith.constant 0 : index
    %84 = vector.load %arg3[%c0_95, %c2_96, %c0_97, %c0_98] : memref<3x3x8x8xf32, #tpu.memory_space<vmem>>, vector<1x1x8x8xf32>
    %85 = vector.shape_cast %84 : vector<1x1x8x8xf32> to vector<8x8xf32>
    %c0_99 = arith.constant 0 : index
    %c23_100 = arith.constant 23 : index
    %86 = vector.load %arg12[%c0_99, %c23_100] : memref<8x400xf32, #tpu.memory_space<vmem>>, vector<8x316xf32>
    %cst_101 = arith.constant dense<0.000000e+00> : vector<8x316xf32>
    %87 = tpu.matmul %85, %86, %cst_101 {dimension_numbers = #tpu.dot_dimension_numbers<[1], [0], [0], [1], [0, 0, 1, 1], [], []>} : vector<8x8xf32>, vector<8x316xf32>, vector<8x316xf32> -> vector<8x316xf32>
    %88 = arith.addf %83, %87 : vector<8x316xf32>
    %c1_102 = arith.constant 1 : index
    %c0_103 = arith.constant 0 : index
    %c0_104 = arith.constant 0 : index
    %c0_105 = arith.constant 0 : index
    %89 = vector.load %arg3[%c1_102, %c0_103, %c0_104, %c0_105] : memref<3x3x8x8xf32, #tpu.memory_space<vmem>>, vector<1x1x8x8xf32>
    %90 = vector.shape_cast %89 : vector<1x1x8x8xf32> to vector<8x8xf32>
    %c0_106 = arith.constant 0 : index
    %c41_107 = arith.constant 41 : index
    %91 = vector.load %arg12[%c0_106, %c41_107] : memref<8x400xf32, #tpu.memory_space<vmem>>, vector<8x316xf32>
    %cst_108 = arith.constant dense<0.000000e+00> : vector<8x316xf32>
    %92 = tpu.matmul %90, %91, %cst_108 {dimension_numbers = #tpu.dot_dimension_numbers<[1], [0], [0], [1], [0, 0, 1, 1], [], []>} : vector<8x8xf32>, vector<8x316xf32>, vector<8x316xf32> -> vector<8x316xf32>
    %93 = arith.addf %88, %92 : vector<8x316xf32>
    %c1_109 = arith.constant 1 : index
    %c1_110 = arith.constant 1 : index
    %c0_111 = arith.constant 0 : index
    %c0_112 = arith.constant 0 : index
    %94 = vector.load %arg3[%c1_109, %c1_110, %c0_111, %c0_112] : memref<3x3x8x8xf32, #tpu.memory_space<vmem>>, vector<1x1x8x8xf32>
    %95 = vector.shape_cast %94 : vector<1x1x8x8xf32> to vector<8x8xf32>
    %c0_113 = arith.constant 0 : index
    %c42_114 = arith.constant 42 : index
    %96 = vector.load %arg12[%c0_113, %c42_114] : memref<8x400xf32, #tpu.memory_space<vmem>>, vector<8x316xf32>
    %cst_115 = arith.constant dense<0.000000e+00> : vector<8x316xf32>
    %97 = tpu.matmul %95, %96, %cst_115 {dimension_numbers = #tpu.dot_dimension_numbers<[1], [0], [0], [1], [0, 0, 1, 1], [], []>} : vector<8x8xf32>, vector<8x316xf32>, vector<8x316xf32> -> vector<8x316xf32>
    %98 = arith.addf %93, %97 : vector<8x316xf32>
    %c1_116 = arith.constant 1 : index
    %c2_117 = arith.constant 2 : index
    %c0_118 = arith.constant 0 : index
    %c0_119 = arith.constant 0 : index
    %99 = vector.load %arg3[%c1_116, %c2_117, %c0_118, %c0_119] : memref<3x3x8x8xf32, #tpu.memory_space<vmem>>, vector<1x1x8x8xf32>
    %100 = vector.shape_cast %99 : vector<1x1x8x8xf32> to vector<8x8xf32>
    %c0_120 = arith.constant 0 : index
    %c43_121 = arith.constant 43 : index
    %101 = vector.load %arg12[%c0_120, %c43_121] : memref<8x400xf32, #tpu.memory_space<vmem>>, vector<8x316xf32>
    %cst_122 = arith.constant dense<0.000000e+00> : vector<8x316xf32>
    %102 = tpu.matmul %100, %101, %cst_122 {dimension_numbers = #tpu.dot_dimension_numbers<[1], [0], [0], [1], [0, 0, 1, 1], [], []>} : vector<8x8xf32>, vector<8x316xf32>, vector<8x316xf32> -> vector<8x316xf32>
    %103 = arith.addf %98, %102 : vector<8x316xf32>
    %c2_123 = arith.constant 2 : index
    %c0_124 = arith.constant 0 : index
    %c0_125 = arith.constant 0 : index
    %c0_126 = arith.constant 0 : index
    %104 = vector.load %arg3[%c2_123, %c0_124, %c0_125, %c0_126] : memref<3x3x8x8xf32, #tpu.memory_space<vmem>>, vector<1x1x8x8xf32>
    %105 = vector.shape_cast %104 : vector<1x1x8x8xf32> to vector<8x8xf32>
    %c0_127 = arith.constant 0 : index
    %c61_128 = arith.constant 61 : index
    %106 = vector.load %arg12[%c0_127, %c61_128] : memref<8x400xf32, #tpu.memory_space<vmem>>, vector<8x316xf32>
    %cst_129 = arith.constant dense<0.000000e+00> : vector<8x316xf32>
    %107 = tpu.matmul %105, %106, %cst_129 {dimension_numbers = #tpu.dot_dimension_numbers<[1], [0], [0], [1], [0, 0, 1, 1], [], []>} : vector<8x8xf32>, vector<8x316xf32>, vector<8x316xf32> -> vector<8x316xf32>
    %108 = arith.addf %103, %107 : vector<8x316xf32>
    %c2_130 = arith.constant 2 : index
    %c1_131 = arith.constant 1 : index
    %c0_132 = arith.constant 0 : index
    %c0_133 = arith.constant 0 : index
    %109 = vector.load %arg3[%c2_130, %c1_131, %c0_132, %c0_133] : memref<3x3x8x8xf32, #tpu.memory_space<vmem>>, vector<1x1x8x8xf32>
    %110 = vector.shape_cast %109 : vector<1x1x8x8xf32> to vector<8x8xf32>
    %c0_134 = arith.constant 0 : index
    %c62_135 = arith.constant 62 : index
    %111 = vector.load %arg12[%c0_134, %c62_135] : memref<8x400xf32, #tpu.memory_space<vmem>>, vector<8x316xf32>
    %cst_136 = arith.constant dense<0.000000e+00> : vector<8x316xf32>
    %112 = tpu.matmul %110, %111, %cst_136 {dimension_numbers = #tpu.dot_dimension_numbers<[1], [0], [0], [1], [0, 0, 1, 1], [], []>} : vector<8x8xf32>, vector<8x316xf32>, vector<8x316xf32> -> vector<8x316xf32>
    %113 = arith.addf %108, %112 : vector<8x316xf32>
    %c2_137 = arith.constant 2 : index
    %c2_138 = arith.constant 2 : index
    %c0_139 = arith.constant 0 : index
    %c0_140 = arith.constant 0 : index
    %114 = vector.load %arg3[%c2_137, %c2_138, %c0_139, %c0_140] : memref<3x3x8x8xf32, #tpu.memory_space<vmem>>, vector<1x1x8x8xf32>
    %115 = vector.shape_cast %114 : vector<1x1x8x8xf32> to vector<8x8xf32>
    %c0_141 = arith.constant 0 : index
    %c63_142 = arith.constant 63 : index
    %116 = vector.load %arg12[%c0_141, %c63_142] : memref<8x400xf32, #tpu.memory_space<vmem>>, vector<8x316xf32>
    %cst_143 = arith.constant dense<0.000000e+00> : vector<8x316xf32>
    %117 = tpu.matmul %115, %116, %cst_143 {dimension_numbers = #tpu.dot_dimension_numbers<[1], [0], [0], [1], [0, 0, 1, 1], [], []>} : vector<8x8xf32>, vector<8x316xf32>, vector<8x316xf32> -> vector<8x316xf32>
    %118 = arith.addf %113, %117 : vector<8x316xf32>
    %c0_144 = arith.constant 0 : index
    %c0_145 = arith.constant 0 : index
    %119 = vector.load %arg4[%c0_144, %c0_145] : memref<8x1xf32, #tpu.memory_space<vmem>>, vector<8x1xf32>
    %120 = vector.broadcast %119 : vector<8x1xf32> to vector<8x316xf32>
    %121 = arith.addf %118, %120 : vector<8x316xf32>
    %cst_146 = arith.constant 0.000000e+00 : f32
    %122 = vector.broadcast %cst_146 : f32 to vector<8x316xf32>
    %c0_147 = arith.constant 0 : index
    %c0_148 = arith.constant 0 : index
    %c0_149 = arith.constant 0 : index
    %c0_150 = arith.constant 0 : index
    %123 = vector.load %arg5[%c0_147, %c0_148, %c0_149, %c0_150] : memref<5x5x8x8xf32, #tpu.memory_space<vmem>>, vector<1x1x8x8xf32>
    %124 = vector.shape_cast %123 : vector<1x1x8x8xf32> to vector<8x8xf32>
    %c0_151 = arith.constant 0 : index
    %c0_152 = arith.constant 0 : index
    %125 = vector.load %arg12[%c0_151, %c0_152] : memref<8x400xf32, #tpu.memory_space<vmem>>, vector<8x316xf32>
    %cst_153 = arith.constant dense<0.000000e+00> : vector<8x316xf32>
    %126 = tpu.matmul %124, %125, %cst_153 {dimension_numbers = #tpu.dot_dimension_numbers<[1], [0], [0], [1], [0, 0, 1, 1], [], []>} : vector<8x8xf32>, vector<8x316xf32>, vector<8x316xf32> -> vector<8x316xf32>
    %127 = arith.addf %122, %126 : vector<8x316xf32>
    %c0_154 = arith.constant 0 : index
    %c1_155 = arith.constant 1 : index
    %c0_156 = arith.constant 0 : index
    %c0_157 = arith.constant 0 : index
    %128 = vector.load %arg5[%c0_154, %c1_155, %c0_156, %c0_157] : memref<5x5x8x8xf32, #tpu.memory_space<vmem>>, vector<1x1x8x8xf32>
    %129 = vector.shape_cast %128 : vector<1x1x8x8xf32> to vector<8x8xf32>
    %c0_158 = arith.constant 0 : index
    %c1_159 = arith.constant 1 : index
    %130 = vector.load %arg12[%c0_158, %c1_159] : memref<8x400xf32, #tpu.memory_space<vmem>>, vector<8x316xf32>
    %cst_160 = arith.constant dense<0.000000e+00> : vector<8x316xf32>
    %131 = tpu.matmul %129, %130, %cst_160 {dimension_numbers = #tpu.dot_dimension_numbers<[1], [0], [0], [1], [0, 0, 1, 1], [], []>} : vector<8x8xf32>, vector<8x316xf32>, vector<8x316xf32> -> vector<8x316xf32>
    %132 = arith.addf %127, %131 : vector<8x316xf32>
    %c0_161 = arith.constant 0 : index
    %c2_162 = arith.constant 2 : index
    %c0_163 = arith.constant 0 : index
    %c0_164 = arith.constant 0 : index
    %133 = vector.load %arg5[%c0_161, %c2_162, %c0_163, %c0_164] : memref<5x5x8x8xf32, #tpu.memory_space<vmem>>, vector<1x1x8x8xf32>
    %134 = vector.shape_cast %133 : vector<1x1x8x8xf32> to vector<8x8xf32>
    %c0_165 = arith.constant 0 : index
    %c2_166 = arith.constant 2 : index
    %135 = vector.load %arg12[%c0_165, %c2_166] : memref<8x400xf32, #tpu.memory_space<vmem>>, vector<8x316xf32>
    %cst_167 = arith.constant dense<0.000000e+00> : vector<8x316xf32>
    %136 = tpu.matmul %134, %135, %cst_167 {dimension_numbers = #tpu.dot_dimension_numbers<[1], [0], [0], [1], [0, 0, 1, 1], [], []>} : vector<8x8xf32>, vector<8x316xf32>, vector<8x316xf32> -> vector<8x316xf32>
    %137 = arith.addf %132, %136 : vector<8x316xf32>
    %c0_168 = arith.constant 0 : index
    %c3 = arith.constant 3 : index
    %c0_169 = arith.constant 0 : index
    %c0_170 = arith.constant 0 : index
    %138 = vector.load %arg5[%c0_168, %c3, %c0_169, %c0_170] : memref<5x5x8x8xf32, #tpu.memory_space<vmem>>, vector<1x1x8x8xf32>
    %139 = vector.shape_cast %138 : vector<1x1x8x8xf32> to vector<8x8xf32>
    %c0_171 = arith.constant 0 : index
    %c3_172 = arith.constant 3 : index
    %140 = vector.load %arg12[%c0_171, %c3_172] : memref<8x400xf32, #tpu.memory_space<vmem>>, vector<8x316xf32>
    %cst_173 = arith.constant dense<0.000000e+00> : vector<8x316xf32>
    %141 = tpu.matmul %139, %140, %cst_173 {dimension_numbers = #tpu.dot_dimension_numbers<[1], [0], [0], [1], [0, 0, 1, 1], [], []>} : vector<8x8xf32>, vector<8x316xf32>, vector<8x316xf32> -> vector<8x316xf32>
    %142 = arith.addf %137, %141 : vector<8x316xf32>
    %c0_174 = arith.constant 0 : index
    %c4 = arith.constant 4 : index
    %c0_175 = arith.constant 0 : index
    %c0_176 = arith.constant 0 : index
    %143 = vector.load %arg5[%c0_174, %c4, %c0_175, %c0_176] : memref<5x5x8x8xf32, #tpu.memory_space<vmem>>, vector<1x1x8x8xf32>
    %144 = vector.shape_cast %143 : vector<1x1x8x8xf32> to vector<8x8xf32>
    %c0_177 = arith.constant 0 : index
    %c4_178 = arith.constant 4 : index
    %145 = vector.load %arg12[%c0_177, %c4_178] : memref<8x400xf32, #tpu.memory_space<vmem>>, vector<8x316xf32>
    %cst_179 = arith.constant dense<0.000000e+00> : vector<8x316xf32>
    %146 = tpu.matmul %144, %145, %cst_179 {dimension_numbers = #tpu.dot_dimension_numbers<[1], [0], [0], [1], [0, 0, 1, 1], [], []>} : vector<8x8xf32>, vector<8x316xf32>, vector<8x316xf32> -> vector<8x316xf32>
    %147 = arith.addf %142, %146 : vector<8x316xf32>
    %c1_180 = arith.constant 1 : index
    %c0_181 = arith.constant 0 : index
    %c0_182 = arith.constant 0 : index
    %c0_183 = arith.constant 0 : index
    %148 = vector.load %arg5[%c1_180, %c0_181, %c0_182, %c0_183] : memref<5x5x8x8xf32, #tpu.memory_space<vmem>>, vector<1x1x8x8xf32>
    %149 = vector.shape_cast %148 : vector<1x1x8x8xf32> to vector<8x8xf32>
    %c0_184 = arith.constant 0 : index
    %c20 = arith.constant 20 : index
    %150 = vector.load %arg12[%c0_184, %c20] : memref<8x400xf32, #tpu.memory_space<vmem>>, vector<8x316xf32>
    %cst_185 = arith.constant dense<0.000000e+00> : vector<8x316xf32>
    %151 = tpu.matmul %149, %150, %cst_185 {dimension_numbers = #tpu.dot_dimension_numbers<[1], [0], [0], [1], [0, 0, 1, 1], [], []>} : vector<8x8xf32>, vector<8x316xf32>, vector<8x316xf32> -> vector<8x316xf32>
    %152 = arith.addf %147, %151 : vector<8x316xf32>
    %c1_186 = arith.constant 1 : index
    %c1_187 = arith.constant 1 : index
    %c0_188 = arith.constant 0 : index
    %c0_189 = arith.constant 0 : index
    %153 = vector.load %arg5[%c1_186, %c1_187, %c0_188, %c0_189] : memref<5x5x8x8xf32, #tpu.memory_space<vmem>>, vector<1x1x8x8xf32>
    %154 = vector.shape_cast %153 : vector<1x1x8x8xf32> to vector<8x8xf32>
    %c0_190 = arith.constant 0 : index
    %c21_191 = arith.constant 21 : index
    %155 = vector.load %arg12[%c0_190, %c21_191] : memref<8x400xf32, #tpu.memory_space<vmem>>, vector<8x316xf32>
    %cst_192 = arith.constant dense<0.000000e+00> : vector<8x316xf32>
    %156 = tpu.matmul %154, %155, %cst_192 {dimension_numbers = #tpu.dot_dimension_numbers<[1], [0], [0], [1], [0, 0, 1, 1], [], []>} : vector<8x8xf32>, vector<8x316xf32>, vector<8x316xf32> -> vector<8x316xf32>
    %157 = arith.addf %152, %156 : vector<8x316xf32>
    %c1_193 = arith.constant 1 : index
    %c2_194 = arith.constant 2 : index
    %c0_195 = arith.constant 0 : index
    %c0_196 = arith.constant 0 : index
    %158 = vector.load %arg5[%c1_193, %c2_194, %c0_195, %c0_196] : memref<5x5x8x8xf32, #tpu.memory_space<vmem>>, vector<1x1x8x8xf32>
    %159 = vector.shape_cast %158 : vector<1x1x8x8xf32> to vector<8x8xf32>
    %c0_197 = arith.constant 0 : index
    %c22_198 = arith.constant 22 : index
    %160 = vector.load %arg12[%c0_197, %c22_198] : memref<8x400xf32, #tpu.memory_space<vmem>>, vector<8x316xf32>
    %cst_199 = arith.constant dense<0.000000e+00> : vector<8x316xf32>
    %161 = tpu.matmul %159, %160, %cst_199 {dimension_numbers = #tpu.dot_dimension_numbers<[1], [0], [0], [1], [0, 0, 1, 1], [], []>} : vector<8x8xf32>, vector<8x316xf32>, vector<8x316xf32> -> vector<8x316xf32>
    %162 = arith.addf %157, %161 : vector<8x316xf32>
    %c1_200 = arith.constant 1 : index
    %c3_201 = arith.constant 3 : index
    %c0_202 = arith.constant 0 : index
    %c0_203 = arith.constant 0 : index
    %163 = vector.load %arg5[%c1_200, %c3_201, %c0_202, %c0_203] : memref<5x5x8x8xf32, #tpu.memory_space<vmem>>, vector<1x1x8x8xf32>
    %164 = vector.shape_cast %163 : vector<1x1x8x8xf32> to vector<8x8xf32>
    %c0_204 = arith.constant 0 : index
    %c23_205 = arith.constant 23 : index
    %165 = vector.load %arg12[%c0_204, %c23_205] : memref<8x400xf32, #tpu.memory_space<vmem>>, vector<8x316xf32>
    %cst_206 = arith.constant dense<0.000000e+00> : vector<8x316xf32>
    %166 = tpu.matmul %164, %165, %cst_206 {dimension_numbers = #tpu.dot_dimension_numbers<[1], [0], [0], [1], [0, 0, 1, 1], [], []>} : vector<8x8xf32>, vector<8x316xf32>, vector<8x316xf32> -> vector<8x316xf32>
    %167 = arith.addf %162, %166 : vector<8x316xf32>
    %c1_207 = arith.constant 1 : index
    %c4_208 = arith.constant 4 : index
    %c0_209 = arith.constant 0 : index
    %c0_210 = arith.constant 0 : index
    %168 = vector.load %arg5[%c1_207, %c4_208, %c0_209, %c0_210] : memref<5x5x8x8xf32, #tpu.memory_space<vmem>>, vector<1x1x8x8xf32>
    %169 = vector.shape_cast %168 : vector<1x1x8x8xf32> to vector<8x8xf32>
    %c0_211 = arith.constant 0 : index
    %c24 = arith.constant 24 : index
    %170 = vector.load %arg12[%c0_211, %c24] : memref<8x400xf32, #tpu.memory_space<vmem>>, vector<8x316xf32>
    %cst_212 = arith.constant dense<0.000000e+00> : vector<8x316xf32>
    %171 = tpu.matmul %169, %170, %cst_212 {dimension_numbers = #tpu.dot_dimension_numbers<[1], [0], [0], [1], [0, 0, 1, 1], [], []>} : vector<8x8xf32>, vector<8x316xf32>, vector<8x316xf32> -> vector<8x316xf32>
    %172 = arith.addf %167, %171 : vector<8x316xf32>
    %c2_213 = arith.constant 2 : index
    %c0_214 = arith.constant 0 : index
    %c0_215 = arith.constant 0 : index
    %c0_216 = arith.constant 0 : index
    %173 = vector.load %arg5[%c2_213, %c0_214, %c0_215, %c0_216] : memref<5x5x8x8xf32, #tpu.memory_space<vmem>>, vector<1x1x8x8xf32>
    %174 = vector.shape_cast %173 : vector<1x1x8x8xf32> to vector<8x8xf32>
    %c0_217 = arith.constant 0 : index
    %c40 = arith.constant 40 : index
    %175 = vector.load %arg12[%c0_217, %c40] : memref<8x400xf32, #tpu.memory_space<vmem>>, vector<8x316xf32>
    %cst_218 = arith.constant dense<0.000000e+00> : vector<8x316xf32>
    %176 = tpu.matmul %174, %175, %cst_218 {dimension_numbers = #tpu.dot_dimension_numbers<[1], [0], [0], [1], [0, 0, 1, 1], [], []>} : vector<8x8xf32>, vector<8x316xf32>, vector<8x316xf32> -> vector<8x316xf32>
    %177 = arith.addf %172, %176 : vector<8x316xf32>
    %c2_219 = arith.constant 2 : index
    %c1_220 = arith.constant 1 : index
    %c0_221 = arith.constant 0 : index
    %c0_222 = arith.constant 0 : index
    %178 = vector.load %arg5[%c2_219, %c1_220, %c0_221, %c0_222] : memref<5x5x8x8xf32, #tpu.memory_space<vmem>>, vector<1x1x8x8xf32>
    %179 = vector.shape_cast %178 : vector<1x1x8x8xf32> to vector<8x8xf32>
    %c0_223 = arith.constant 0 : index
    %c41_224 = arith.constant 41 : index
    %180 = vector.load %arg12[%c0_223, %c41_224] : memref<8x400xf32, #tpu.memory_space<vmem>>, vector<8x316xf32>
    %cst_225 = arith.constant dense<0.000000e+00> : vector<8x316xf32>
    %181 = tpu.matmul %179, %180, %cst_225 {dimension_numbers = #tpu.dot_dimension_numbers<[1], [0], [0], [1], [0, 0, 1, 1], [], []>} : vector<8x8xf32>, vector<8x316xf32>, vector<8x316xf32> -> vector<8x316xf32>
    %182 = arith.addf %177, %181 : vector<8x316xf32>
    %c2_226 = arith.constant 2 : index
    %c2_227 = arith.constant 2 : index
    %c0_228 = arith.constant 0 : index
    %c0_229 = arith.constant 0 : index
    %183 = vector.load %arg5[%c2_226, %c2_227, %c0_228, %c0_229] : memref<5x5x8x8xf32, #tpu.memory_space<vmem>>, vector<1x1x8x8xf32>
    %184 = vector.shape_cast %183 : vector<1x1x8x8xf32> to vector<8x8xf32>
    %c0_230 = arith.constant 0 : index
    %c42_231 = arith.constant 42 : index
    %185 = vector.load %arg12[%c0_230, %c42_231] : memref<8x400xf32, #tpu.memory_space<vmem>>, vector<8x316xf32>
    %cst_232 = arith.constant dense<0.000000e+00> : vector<8x316xf32>
    %186 = tpu.matmul %184, %185, %cst_232 {dimension_numbers = #tpu.dot_dimension_numbers<[1], [0], [0], [1], [0, 0, 1, 1], [], []>} : vector<8x8xf32>, vector<8x316xf32>, vector<8x316xf32> -> vector<8x316xf32>
    %187 = arith.addf %182, %186 : vector<8x316xf32>
    %c2_233 = arith.constant 2 : index
    %c3_234 = arith.constant 3 : index
    %c0_235 = arith.constant 0 : index
    %c0_236 = arith.constant 0 : index
    %188 = vector.load %arg5[%c2_233, %c3_234, %c0_235, %c0_236] : memref<5x5x8x8xf32, #tpu.memory_space<vmem>>, vector<1x1x8x8xf32>
    %189 = vector.shape_cast %188 : vector<1x1x8x8xf32> to vector<8x8xf32>
    %c0_237 = arith.constant 0 : index
    %c43_238 = arith.constant 43 : index
    %190 = vector.load %arg12[%c0_237, %c43_238] : memref<8x400xf32, #tpu.memory_space<vmem>>, vector<8x316xf32>
    %cst_239 = arith.constant dense<0.000000e+00> : vector<8x316xf32>
    %191 = tpu.matmul %189, %190, %cst_239 {dimension_numbers = #tpu.dot_dimension_numbers<[1], [0], [0], [1], [0, 0, 1, 1], [], []>} : vector<8x8xf32>, vector<8x316xf32>, vector<8x316xf32> -> vector<8x316xf32>
    %192 = arith.addf %187, %191 : vector<8x316xf32>
    %c2_240 = arith.constant 2 : index
    %c4_241 = arith.constant 4 : index
    %c0_242 = arith.constant 0 : index
    %c0_243 = arith.constant 0 : index
    %193 = vector.load %arg5[%c2_240, %c4_241, %c0_242, %c0_243] : memref<5x5x8x8xf32, #tpu.memory_space<vmem>>, vector<1x1x8x8xf32>
    %194 = vector.shape_cast %193 : vector<1x1x8x8xf32> to vector<8x8xf32>
    %c0_244 = arith.constant 0 : index
    %c44 = arith.constant 44 : index
    %195 = vector.load %arg12[%c0_244, %c44] : memref<8x400xf32, #tpu.memory_space<vmem>>, vector<8x316xf32>
    %cst_245 = arith.constant dense<0.000000e+00> : vector<8x316xf32>
    %196 = tpu.matmul %194, %195, %cst_245 {dimension_numbers = #tpu.dot_dimension_numbers<[1], [0], [0], [1], [0, 0, 1, 1], [], []>} : vector<8x8xf32>, vector<8x316xf32>, vector<8x316xf32> -> vector<8x316xf32>
    %197 = arith.addf %192, %196 : vector<8x316xf32>
    %c3_246 = arith.constant 3 : index
    %c0_247 = arith.constant 0 : index
    %c0_248 = arith.constant 0 : index
    %c0_249 = arith.constant 0 : index
    %198 = vector.load %arg5[%c3_246, %c0_247, %c0_248, %c0_249] : memref<5x5x8x8xf32, #tpu.memory_space<vmem>>, vector<1x1x8x8xf32>
    %199 = vector.shape_cast %198 : vector<1x1x8x8xf32> to vector<8x8xf32>
    %c0_250 = arith.constant 0 : index
    %c60 = arith.constant 60 : index
    %200 = vector.load %arg12[%c0_250, %c60] : memref<8x400xf32, #tpu.memory_space<vmem>>, vector<8x316xf32>
    %cst_251 = arith.constant dense<0.000000e+00> : vector<8x316xf32>
    %201 = tpu.matmul %199, %200, %cst_251 {dimension_numbers = #tpu.dot_dimension_numbers<[1], [0], [0], [1], [0, 0, 1, 1], [], []>} : vector<8x8xf32>, vector<8x316xf32>, vector<8x316xf32> -> vector<8x316xf32>
    %202 = arith.addf %197, %201 : vector<8x316xf32>
    %c3_252 = arith.constant 3 : index
    %c1_253 = arith.constant 1 : index
    %c0_254 = arith.constant 0 : index
    %c0_255 = arith.constant 0 : index
    %203 = vector.load %arg5[%c3_252, %c1_253, %c0_254, %c0_255] : memref<5x5x8x8xf32, #tpu.memory_space<vmem>>, vector<1x1x8x8xf32>
    %204 = vector.shape_cast %203 : vector<1x1x8x8xf32> to vector<8x8xf32>
    %c0_256 = arith.constant 0 : index
    %c61_257 = arith.constant 61 : index
    %205 = vector.load %arg12[%c0_256, %c61_257] : memref<8x400xf32, #tpu.memory_space<vmem>>, vector<8x316xf32>
    %cst_258 = arith.constant dense<0.000000e+00> : vector<8x316xf32>
    %206 = tpu.matmul %204, %205, %cst_258 {dimension_numbers = #tpu.dot_dimension_numbers<[1], [0], [0], [1], [0, 0, 1, 1], [], []>} : vector<8x8xf32>, vector<8x316xf32>, vector<8x316xf32> -> vector<8x316xf32>
    %207 = arith.addf %202, %206 : vector<8x316xf32>
    %c3_259 = arith.constant 3 : index
    %c2_260 = arith.constant 2 : index
    %c0_261 = arith.constant 0 : index
    %c0_262 = arith.constant 0 : index
    %208 = vector.load %arg5[%c3_259, %c2_260, %c0_261, %c0_262] : memref<5x5x8x8xf32, #tpu.memory_space<vmem>>, vector<1x1x8x8xf32>
    %209 = vector.shape_cast %208 : vector<1x1x8x8xf32> to vector<8x8xf32>
    %c0_263 = arith.constant 0 : index
    %c62_264 = arith.constant 62 : index
    %210 = vector.load %arg12[%c0_263, %c62_264] : memref<8x400xf32, #tpu.memory_space<vmem>>, vector<8x316xf32>
    %cst_265 = arith.constant dense<0.000000e+00> : vector<8x316xf32>
    %211 = tpu.matmul %209, %210, %cst_265 {dimension_numbers = #tpu.dot_dimension_numbers<[1], [0], [0], [1], [0, 0, 1, 1], [], []>} : vector<8x8xf32>, vector<8x316xf32>, vector<8x316xf32> -> vector<8x316xf32>
    %212 = arith.addf %207, %211 : vector<8x316xf32>
    %c3_266 = arith.constant 3 : index
    %c3_267 = arith.constant 3 : index
    %c0_268 = arith.constant 0 : index
    %c0_269 = arith.constant 0 : index
    %213 = vector.load %arg5[%c3_266, %c3_267, %c0_268, %c0_269] : memref<5x5x8x8xf32, #tpu.memory_space<vmem>>, vector<1x1x8x8xf32>
    %214 = vector.shape_cast %213 : vector<1x1x8x8xf32> to vector<8x8xf32>
    %c0_270 = arith.constant 0 : index
    %c63_271 = arith.constant 63 : index
    %215 = vector.load %arg12[%c0_270, %c63_271] : memref<8x400xf32, #tpu.memory_space<vmem>>, vector<8x316xf32>
    %cst_272 = arith.constant dense<0.000000e+00> : vector<8x316xf32>
    %216 = tpu.matmul %214, %215, %cst_272 {dimension_numbers = #tpu.dot_dimension_numbers<[1], [0], [0], [1], [0, 0, 1, 1], [], []>} : vector<8x8xf32>, vector<8x316xf32>, vector<8x316xf32> -> vector<8x316xf32>
    %217 = arith.addf %212, %216 : vector<8x316xf32>
    %c3_273 = arith.constant 3 : index
    %c4_274 = arith.constant 4 : index
    %c0_275 = arith.constant 0 : index
    %c0_276 = arith.constant 0 : index
    %218 = vector.load %arg5[%c3_273, %c4_274, %c0_275, %c0_276] : memref<5x5x8x8xf32, #tpu.memory_space<vmem>>, vector<1x1x8x8xf32>
    %219 = vector.shape_cast %218 : vector<1x1x8x8xf32> to vector<8x8xf32>
    %c0_277 = arith.constant 0 : index
    %c64 = arith.constant 64 : index
    %220 = vector.load %arg12[%c0_277, %c64] : memref<8x400xf32, #tpu.memory_space<vmem>>, vector<8x316xf32>
    %cst_278 = arith.constant dense<0.000000e+00> : vector<8x316xf32>
    %221 = tpu.matmul %219, %220, %cst_278 {dimension_numbers = #tpu.dot_dimension_numbers<[1], [0], [0], [1], [0, 0, 1, 1], [], []>} : vector<8x8xf32>, vector<8x316xf32>, vector<8x316xf32> -> vector<8x316xf32>
    %222 = arith.addf %217, %221 : vector<8x316xf32>
    %c4_279 = arith.constant 4 : index
    %c0_280 = arith.constant 0 : index
    %c0_281 = arith.constant 0 : index
    %c0_282 = arith.constant 0 : index
    %223 = vector.load %arg5[%c4_279, %c0_280, %c0_281, %c0_282] : memref<5x5x8x8xf32, #tpu.memory_space<vmem>>, vector<1x1x8x8xf32>
    %224 = vector.shape_cast %223 : vector<1x1x8x8xf32> to vector<8x8xf32>
    %c0_283 = arith.constant 0 : index
    %c80 = arith.constant 80 : index
    %225 = vector.load %arg12[%c0_283, %c80] : memref<8x400xf32, #tpu.memory_space<vmem>>, vector<8x316xf32>
    %cst_284 = arith.constant dense<0.000000e+00> : vector<8x316xf32>
    %226 = tpu.matmul %224, %225, %cst_284 {dimension_numbers = #tpu.dot_dimension_numbers<[1], [0], [0], [1], [0, 0, 1, 1], [], []>} : vector<8x8xf32>, vector<8x316xf32>, vector<8x316xf32> -> vector<8x316xf32>
    %227 = arith.addf %222, %226 : vector<8x316xf32>
    %c4_285 = arith.constant 4 : index
    %c1_286 = arith.constant 1 : index
    %c0_287 = arith.constant 0 : index
    %c0_288 = arith.constant 0 : index
    %228 = vector.load %arg5[%c4_285, %c1_286, %c0_287, %c0_288] : memref<5x5x8x8xf32, #tpu.memory_space<vmem>>, vector<1x1x8x8xf32>
    %229 = vector.shape_cast %228 : vector<1x1x8x8xf32> to vector<8x8xf32>
    %c0_289 = arith.constant 0 : index
    %c81 = arith.constant 81 : index
    %230 = vector.load %arg12[%c0_289, %c81] : memref<8x400xf32, #tpu.memory_space<vmem>>, vector<8x316xf32>
    %cst_290 = arith.constant dense<0.000000e+00> : vector<8x316xf32>
    %231 = tpu.matmul %229, %230, %cst_290 {dimension_numbers = #tpu.dot_dimension_numbers<[1], [0], [0], [1], [0, 0, 1, 1], [], []>} : vector<8x8xf32>, vector<8x316xf32>, vector<8x316xf32> -> vector<8x316xf32>
    %232 = arith.addf %227, %231 : vector<8x316xf32>
    %c4_291 = arith.constant 4 : index
    %c2_292 = arith.constant 2 : index
    %c0_293 = arith.constant 0 : index
    %c0_294 = arith.constant 0 : index
    %233 = vector.load %arg5[%c4_291, %c2_292, %c0_293, %c0_294] : memref<5x5x8x8xf32, #tpu.memory_space<vmem>>, vector<1x1x8x8xf32>
    %234 = vector.shape_cast %233 : vector<1x1x8x8xf32> to vector<8x8xf32>
    %c0_295 = arith.constant 0 : index
    %c82 = arith.constant 82 : index
    %235 = vector.load %arg12[%c0_295, %c82] : memref<8x400xf32, #tpu.memory_space<vmem>>, vector<8x316xf32>
    %cst_296 = arith.constant dense<0.000000e+00> : vector<8x316xf32>
    %236 = tpu.matmul %234, %235, %cst_296 {dimension_numbers = #tpu.dot_dimension_numbers<[1], [0], [0], [1], [0, 0, 1, 1], [], []>} : vector<8x8xf32>, vector<8x316xf32>, vector<8x316xf32> -> vector<8x316xf32>
    %237 = arith.addf %232, %236 : vector<8x316xf32>
    %c4_297 = arith.constant 4 : index
    %c3_298 = arith.constant 3 : index
    %c0_299 = arith.constant 0 : index
    %c0_300 = arith.constant 0 : index
    %238 = vector.load %arg5[%c4_297, %c3_298, %c0_299, %c0_300] : memref<5x5x8x8xf32, #tpu.memory_space<vmem>>, vector<1x1x8x8xf32>
    %239 = vector.shape_cast %238 : vector<1x1x8x8xf32> to vector<8x8xf32>
    %c0_301 = arith.constant 0 : index
    %c83 = arith.constant 83 : index
    %240 = vector.load %arg12[%c0_301, %c83] : memref<8x400xf32, #tpu.memory_space<vmem>>, vector<8x316xf32>
    %cst_302 = arith.constant dense<0.000000e+00> : vector<8x316xf32>
    %241 = tpu.matmul %239, %240, %cst_302 {dimension_numbers = #tpu.dot_dimension_numbers<[1], [0], [0], [1], [0, 0, 1, 1], [], []>} : vector<8x8xf32>, vector<8x316xf32>, vector<8x316xf32> -> vector<8x316xf32>
    %242 = arith.addf %237, %241 : vector<8x316xf32>
    %c4_303 = arith.constant 4 : index
    %c4_304 = arith.constant 4 : index
    %c0_305 = arith.constant 0 : index
    %c0_306 = arith.constant 0 : index
    %243 = vector.load %arg5[%c4_303, %c4_304, %c0_305, %c0_306] : memref<5x5x8x8xf32, #tpu.memory_space<vmem>>, vector<1x1x8x8xf32>
    %244 = vector.shape_cast %243 : vector<1x1x8x8xf32> to vector<8x8xf32>
    %c0_307 = arith.constant 0 : index
    %c84 = arith.constant 84 : index
    %245 = vector.load %arg12[%c0_307, %c84] : memref<8x400xf32, #tpu.memory_space<vmem>>, vector<8x316xf32>
    %cst_308 = arith.constant dense<0.000000e+00> : vector<8x316xf32>
    %246 = tpu.matmul %244, %245, %cst_308 {dimension_numbers = #tpu.dot_dimension_numbers<[1], [0], [0], [1], [0, 0, 1, 1], [], []>} : vector<8x8xf32>, vector<8x316xf32>, vector<8x316xf32> -> vector<8x316xf32>
    %247 = arith.addf %242, %246 : vector<8x316xf32>
    %c0_309 = arith.constant 0 : index
    %c0_310 = arith.constant 0 : index
    %248 = vector.load %arg6[%c0_309, %c0_310] : memref<8x1xf32, #tpu.memory_space<vmem>>, vector<8x1xf32>
    %249 = vector.broadcast %248 : vector<8x1xf32> to vector<8x316xf32>
    %250 = arith.addf %247, %249 : vector<8x316xf32>
    %c0_311 = arith.constant 0 : index
    %c42_312 = arith.constant 42 : index
    %251 = vector.load %arg12[%c0_311, %c42_312] : memref<8x400xf32, #tpu.memory_space<vmem>>, vector<8x316xf32>
    %252 = vector.broadcast %1 : f32 to vector<8x316xf32>
    %253 = arith.mulf %252, %121 : vector<8x316xf32>
    %254 = vector.broadcast %2 : f32 to vector<8x316xf32>
    %255 = arith.mulf %254, %250 : vector<8x316xf32>
    %256 = arith.addf %253, %255 : vector<8x316xf32>
    %257 = vector.broadcast %3 : f32 to vector<8x316xf32>
    %258 = arith.mulf %257, %251 : vector<8x316xf32>
    %259 = arith.addf %256, %258 : vector<8x316xf32>
    %260 = vector.broadcast %0 : vector<1x316xf32> to vector<8x316xf32>
    %261 = arith.mulf %259, %260 : vector<8x316xf32>
    %c0_313 = arith.constant 0 : index
    %c42_314 = arith.constant 42 : index
    %262 = vector.load %arg13[%c0_313, %c42_314] : memref<8x400xf32, #tpu.memory_space<vmem>>, vector<8x316xf32>
    tpu.vector_store %arg13[%c0_313, %c42_314], %261 {strides = array<i32>} : memref<8x400xf32, #tpu.memory_space<vmem>>, vector<8x316xf32>,
    %c0_315 = arith.constant 0 : index
    %c0_316 = arith.constant 0 : index
    %c0_317 = arith.constant 0 : index
    %c0_318 = arith.constant 0 : index
    %263 = vector.load %arg7[%c0_315, %c0_316, %c0_317, %c0_318] : memref<1x1x4x8xf32, #tpu.memory_space<vmem>>, vector<1x1x4x8xf32>
    %264 = vector.shape_cast %263 : vector<1x1x4x8xf32> to vector<4x8xf32>
    %c0_319 = arith.constant 0 : index
    %c42_320 = arith.constant 42 : index
    %265 = vector.load %arg13[%c0_319, %c42_320] : memref<8x400xf32, #tpu.memory_space<vmem>>, vector<8x316xf32>
    %cst_321 = arith.constant dense<0.000000e+00> : vector<4x316xf32>
    %266 = tpu.matmul %264, %265, %cst_321 {dimension_numbers = #tpu.dot_dimension_numbers<[1], [0], [0], [1], [0, 0, 1, 1], [], []>} : vector<4x8xf32>, vector<8x316xf32>, vector<4x316xf32> -> vector<4x316xf32>
    %c0_322 = arith.constant 0 : index
    %c0_323 = arith.constant 0 : index
    %267 = vector.load %arg8[%c0_322, %c0_323] : memref<4x1xf32, #tpu.memory_space<vmem>>, vector<4x1xf32>
    %268 = vector.broadcast %267 : vector<4x1xf32> to vector<4x316xf32>
    %269 = arith.addf %266, %268 : vector<4x316xf32>
    %cst_324 = arith.constant 0.000000e+00 : f32
    %270 = vector.broadcast %cst_324 : f32 to vector<4x316xf32>
    %271 = arith.maximumf %269, %270 : vector<4x316xf32>
    %272 = vector.broadcast %0 : vector<1x316xf32> to vector<4x316xf32>
    %273 = arith.mulf %271, %272 : vector<4x316xf32>
    %c0_325 = arith.constant 0 : index
    %c0_326 = arith.constant 0 : index
    %c42_327 = arith.constant 42 : index
    %274 = vector.load %arg11[%c0_325, %c0_326, %c42_327] : memref<2x4x400xf32, #tpu.memory_space<vmem>>, vector<1x4x316xf32>
    %275 = vector.shape_cast %274 : vector<1x4x316xf32> to vector<4x316xf32>
    %276 = vector.shape_cast %273 : vector<4x316xf32> to vector<1x4x316xf32>
    tpu.vector_store %arg11[%c0_325, %c0_326, %c42_327], %276 {strides = array<i32>} : memref<2x4x400xf32, #tpu.memory_space<vmem>>, vector<1x4x316xf32>,
    %cst_328 = arith.constant 0.000000e+00 : f32
    %277 = vector.broadcast %cst_328 : f32 to vector<8x316xf32>
    %c0_329 = arith.constant 0 : index
    %c0_330 = arith.constant 0 : index
    %c0_331 = arith.constant 0 : index
    %c0_332 = arith.constant 0 : index
    %278 = vector.load %arg1[%c0_329, %c0_330, %c0_331, %c0_332] : memref<3x3x8x4xf32, #tpu.memory_space<vmem>>, vector<1x1x8x4xf32>
    %279 = vector.shape_cast %278 : vector<1x1x8x4xf32> to vector<8x4xf32>
    %c1_333 = arith.constant 1 : index
    %c0_334 = arith.constant 0 : index
    %c21_335 = arith.constant 21 : index
    %280 = vector.load %arg0[%c1_333, %c0_334, %c21_335] : memref<2x4x400xf32, #tpu.memory_space<vmem>>, vector<1x4x316xf32>
    %281 = vector.shape_cast %280 : vector<1x4x316xf32> to vector<4x316xf32>
    %cst_336 = arith.constant dense<0.000000e+00> : vector<8x316xf32>
    %282 = tpu.matmul %279, %281, %cst_336 {dimension_numbers = #tpu.dot_dimension_numbers<[1], [0], [0], [1], [0, 0, 1, 1], [], []>} : vector<8x4xf32>, vector<4x316xf32>, vector<8x316xf32> -> vector<8x316xf32>
    %283 = arith.addf %277, %282 : vector<8x316xf32>
    %c0_337 = arith.constant 0 : index
    %c1_338 = arith.constant 1 : index
    %c0_339 = arith.constant 0 : index
    %c0_340 = arith.constant 0 : index
    %284 = vector.load %arg1[%c0_337, %c1_338, %c0_339, %c0_340] : memref<3x3x8x4xf32, #tpu.memory_space<vmem>>, vector<1x1x8x4xf32>
    %285 = vector.shape_cast %284 : vector<1x1x8x4xf32> to vector<8x4xf32>
    %c1_341 = arith.constant 1 : index
    %c0_342 = arith.constant 0 : index
    %c22_343 = arith.constant 22 : index
    %286 = vector.load %arg0[%c1_341, %c0_342, %c22_343] : memref<2x4x400xf32, #tpu.memory_space<vmem>>, vector<1x4x316xf32>
    %287 = vector.shape_cast %286 : vector<1x4x316xf32> to vector<4x316xf32>
    %cst_344 = arith.constant dense<0.000000e+00> : vector<8x316xf32>
    %288 = tpu.matmul %285, %287, %cst_344 {dimension_numbers = #tpu.dot_dimension_numbers<[1], [0], [0], [1], [0, 0, 1, 1], [], []>} : vector<8x4xf32>, vector<4x316xf32>, vector<8x316xf32> -> vector<8x316xf32>
    %289 = arith.addf %283, %288 : vector<8x316xf32>
    %c0_345 = arith.constant 0 : index
    %c2_346 = arith.constant 2 : index
    %c0_347 = arith.constant 0 : index
    %c0_348 = arith.constant 0 : index
    %290 = vector.load %arg1[%c0_345, %c2_346, %c0_347, %c0_348] : memref<3x3x8x4xf32, #tpu.memory_space<vmem>>, vector<1x1x8x4xf32>
    %291 = vector.shape_cast %290 : vector<1x1x8x4xf32> to vector<8x4xf32>
    %c1_349 = arith.constant 1 : index
    %c0_350 = arith.constant 0 : index
    %c23_351 = arith.constant 23 : index
    %292 = vector.load %arg0[%c1_349, %c0_350, %c23_351] : memref<2x4x400xf32, #tpu.memory_space<vmem>>, vector<1x4x316xf32>
    %293 = vector.shape_cast %292 : vector<1x4x316xf32> to vector<4x316xf32>
    %cst_352 = arith.constant dense<0.000000e+00> : vector<8x316xf32>
    %294 = tpu.matmul %291, %293, %cst_352 {dimension_numbers = #tpu.dot_dimension_numbers<[1], [0], [0], [1], [0, 0, 1, 1], [], []>} : vector<8x4xf32>, vector<4x316xf32>, vector<8x316xf32> -> vector<8x316xf32>
    %295 = arith.addf %289, %294 : vector<8x316xf32>
    %c1_353 = arith.constant 1 : index
    %c0_354 = arith.constant 0 : index
    %c0_355 = arith.constant 0 : index
    %c0_356 = arith.constant 0 : index
    %296 = vector.load %arg1[%c1_353, %c0_354, %c0_355, %c0_356] : memref<3x3x8x4xf32, #tpu.memory_space<vmem>>, vector<1x1x8x4xf32>
    %297 = vector.shape_cast %296 : vector<1x1x8x4xf32> to vector<8x4xf32>
    %c1_357 = arith.constant 1 : index
    %c0_358 = arith.constant 0 : index
    %c41_359 = arith.constant 41 : index
    %298 = vector.load %arg0[%c1_357, %c0_358, %c41_359] : memref<2x4x400xf32, #tpu.memory_space<vmem>>, vector<1x4x316xf32>
    %299 = vector.shape_cast %298 : vector<1x4x316xf32> to vector<4x316xf32>
    %cst_360 = arith.constant dense<0.000000e+00> : vector<8x316xf32>
    %300 = tpu.matmul %297, %299, %cst_360 {dimension_numbers = #tpu.dot_dimension_numbers<[1], [0], [0], [1], [0, 0, 1, 1], [], []>} : vector<8x4xf32>, vector<4x316xf32>, vector<8x316xf32> -> vector<8x316xf32>
    %301 = arith.addf %295, %300 : vector<8x316xf32>
    %c1_361 = arith.constant 1 : index
    %c1_362 = arith.constant 1 : index
    %c0_363 = arith.constant 0 : index
    %c0_364 = arith.constant 0 : index
    %302 = vector.load %arg1[%c1_361, %c1_362, %c0_363, %c0_364] : memref<3x3x8x4xf32, #tpu.memory_space<vmem>>, vector<1x1x8x4xf32>
    %303 = vector.shape_cast %302 : vector<1x1x8x4xf32> to vector<8x4xf32>
    %c1_365 = arith.constant 1 : index
    %c0_366 = arith.constant 0 : index
    %c42_367 = arith.constant 42 : index
    %304 = vector.load %arg0[%c1_365, %c0_366, %c42_367] : memref<2x4x400xf32, #tpu.memory_space<vmem>>, vector<1x4x316xf32>
    %305 = vector.shape_cast %304 : vector<1x4x316xf32> to vector<4x316xf32>
    %cst_368 = arith.constant dense<0.000000e+00> : vector<8x316xf32>
    %306 = tpu.matmul %303, %305, %cst_368 {dimension_numbers = #tpu.dot_dimension_numbers<[1], [0], [0], [1], [0, 0, 1, 1], [], []>} : vector<8x4xf32>, vector<4x316xf32>, vector<8x316xf32> -> vector<8x316xf32>
    %307 = arith.addf %301, %306 : vector<8x316xf32>
    %c1_369 = arith.constant 1 : index
    %c2_370 = arith.constant 2 : index
    %c0_371 = arith.constant 0 : index
    %c0_372 = arith.constant 0 : index
    %308 = vector.load %arg1[%c1_369, %c2_370, %c0_371, %c0_372] : memref<3x3x8x4xf32, #tpu.memory_space<vmem>>, vector<1x1x8x4xf32>
    %309 = vector.shape_cast %308 : vector<1x1x8x4xf32> to vector<8x4xf32>
    %c1_373 = arith.constant 1 : index
    %c0_374 = arith.constant 0 : index
    %c43_375 = arith.constant 43 : index
    %310 = vector.load %arg0[%c1_373, %c0_374, %c43_375] : memref<2x4x400xf32, #tpu.memory_space<vmem>>, vector<1x4x316xf32>
    %311 = vector.shape_cast %310 : vector<1x4x316xf32> to vector<4x316xf32>
    %cst_376 = arith.constant dense<0.000000e+00> : vector<8x316xf32>
    %312 = tpu.matmul %309, %311, %cst_376 {dimension_numbers = #tpu.dot_dimension_numbers<[1], [0], [0], [1], [0, 0, 1, 1], [], []>} : vector<8x4xf32>, vector<4x316xf32>, vector<8x316xf32> -> vector<8x316xf32>
    %313 = arith.addf %307, %312 : vector<8x316xf32>
    %c2_377 = arith.constant 2 : index
    %c0_378 = arith.constant 0 : index
    %c0_379 = arith.constant 0 : index
    %c0_380 = arith.constant 0 : index
    %314 = vector.load %arg1[%c2_377, %c0_378, %c0_379, %c0_380] : memref<3x3x8x4xf32, #tpu.memory_space<vmem>>, vector<1x1x8x4xf32>
    %315 = vector.shape_cast %314 : vector<1x1x8x4xf32> to vector<8x4xf32>
    %c1_381 = arith.constant 1 : index
    %c0_382 = arith.constant 0 : index
    %c61_383 = arith.constant 61 : index
    %316 = vector.load %arg0[%c1_381, %c0_382, %c61_383] : memref<2x4x400xf32, #tpu.memory_space<vmem>>, vector<1x4x316xf32>
    %317 = vector.shape_cast %316 : vector<1x4x316xf32> to vector<4x316xf32>
    %cst_384 = arith.constant dense<0.000000e+00> : vector<8x316xf32>
    %318 = tpu.matmul %315, %317, %cst_384 {dimension_numbers = #tpu.dot_dimension_numbers<[1], [0], [0], [1], [0, 0, 1, 1], [], []>} : vector<8x4xf32>, vector<4x316xf32>, vector<8x316xf32> -> vector<8x316xf32>
    %319 = arith.addf %313, %318 : vector<8x316xf32>
    %c2_385 = arith.constant 2 : index
    %c1_386 = arith.constant 1 : index
    %c0_387 = arith.constant 0 : index
    %c0_388 = arith.constant 0 : index
    %320 = vector.load %arg1[%c2_385, %c1_386, %c0_387, %c0_388] : memref<3x3x8x4xf32, #tpu.memory_space<vmem>>, vector<1x1x8x4xf32>
    %321 = vector.shape_cast %320 : vector<1x1x8x4xf32> to vector<8x4xf32>
    %c1_389 = arith.constant 1 : index
    %c0_390 = arith.constant 0 : index
    %c62_391 = arith.constant 62 : index
    %322 = vector.load %arg0[%c1_389, %c0_390, %c62_391] : memref<2x4x400xf32, #tpu.memory_space<vmem>>, vector<1x4x316xf32>
    %323 = vector.shape_cast %322 : vector<1x4x316xf32> to vector<4x316xf32>
    %cst_392 = arith.constant dense<0.000000e+00> : vector<8x316xf32>
    %324 = tpu.matmul %321, %323, %cst_392 {dimension_numbers = #tpu.dot_dimension_numbers<[1], [0], [0], [1], [0, 0, 1, 1], [], []>} : vector<8x4xf32>, vector<4x316xf32>, vector<8x316xf32> -> vector<8x316xf32>
    %325 = arith.addf %319, %324 : vector<8x316xf32>
    %c2_393 = arith.constant 2 : index
    %c2_394 = arith.constant 2 : index
    %c0_395 = arith.constant 0 : index
    %c0_396 = arith.constant 0 : index
    %326 = vector.load %arg1[%c2_393, %c2_394, %c0_395, %c0_396] : memref<3x3x8x4xf32, #tpu.memory_space<vmem>>, vector<1x1x8x4xf32>
    %327 = vector.shape_cast %326 : vector<1x1x8x4xf32> to vector<8x4xf32>
    %c1_397 = arith.constant 1 : index
    %c0_398 = arith.constant 0 : index
    %c63_399 = arith.constant 63 : index
    %328 = vector.load %arg0[%c1_397, %c0_398, %c63_399] : memref<2x4x400xf32, #tpu.memory_space<vmem>>, vector<1x4x316xf32>
    %329 = vector.shape_cast %328 : vector<1x4x316xf32> to vector<4x316xf32>
    %cst_400 = arith.constant dense<0.000000e+00> : vector<8x316xf32>
    %330 = tpu.matmul %327, %329, %cst_400 {dimension_numbers = #tpu.dot_dimension_numbers<[1], [0], [0], [1], [0, 0, 1, 1], [], []>} : vector<8x4xf32>, vector<4x316xf32>, vector<8x316xf32> -> vector<8x316xf32>
    %331 = arith.addf %325, %330 : vector<8x316xf32>
    %c0_401 = arith.constant 0 : index
    %c0_402 = arith.constant 0 : index
    %332 = vector.load %arg2[%c0_401, %c0_402] : memref<8x1xf32, #tpu.memory_space<vmem>>, vector<8x1xf32>
    %333 = vector.broadcast %332 : vector<8x1xf32> to vector<8x316xf32>
    %334 = arith.addf %331, %333 : vector<8x316xf32>
    %cst_403 = arith.constant 0.000000e+00 : f32
    %335 = vector.broadcast %cst_403 : f32 to vector<8x316xf32>
    %336 = arith.maximumf %334, %335 : vector<8x316xf32>
    %337 = vector.broadcast %0 : vector<1x316xf32> to vector<8x316xf32>
    %338 = arith.mulf %336, %337 : vector<8x316xf32>
    %c0_404 = arith.constant 0 : index
    %c42_405 = arith.constant 42 : index
    %339 = vector.load %arg12[%c0_404, %c42_405] : memref<8x400xf32, #tpu.memory_space<vmem>>, vector<8x316xf32>
    tpu.vector_store %arg12[%c0_404, %c42_405], %338 {strides = array<i32>} : memref<8x400xf32, #tpu.memory_space<vmem>>, vector<8x316xf32>,
    %cst_406 = arith.constant 0.000000e+00 : f32
    %340 = vector.broadcast %cst_406 : f32 to vector<8x316xf32>
    %c0_407 = arith.constant 0 : index
    %c0_408 = arith.constant 0 : index
    %c0_409 = arith.constant 0 : index
    %c0_410 = arith.constant 0 : index
    %341 = vector.load %arg3[%c0_407, %c0_408, %c0_409, %c0_410] : memref<3x3x8x8xf32, #tpu.memory_space<vmem>>, vector<1x1x8x8xf32>
    %342 = vector.shape_cast %341 : vector<1x1x8x8xf32> to vector<8x8xf32>
    %c0_411 = arith.constant 0 : index
    %c21_412 = arith.constant 21 : index
    %343 = vector.load %arg12[%c0_411, %c21_412] : memref<8x400xf32, #tpu.memory_space<vmem>>, vector<8x316xf32>
    %cst_413 = arith.constant dense<0.000000e+00> : vector<8x316xf32>
    %344 = tpu.matmul %342, %343, %cst_413 {dimension_numbers = #tpu.dot_dimension_numbers<[1], [0], [0], [1], [0, 0, 1, 1], [], []>} : vector<8x8xf32>, vector<8x316xf32>, vector<8x316xf32> -> vector<8x316xf32>
    %345 = arith.addf %340, %344 : vector<8x316xf32>
    %c0_414 = arith.constant 0 : index
    %c1_415 = arith.constant 1 : index
    %c0_416 = arith.constant 0 : index
    %c0_417 = arith.constant 0 : index
    %346 = vector.load %arg3[%c0_414, %c1_415, %c0_416, %c0_417] : memref<3x3x8x8xf32, #tpu.memory_space<vmem>>, vector<1x1x8x8xf32>
    %347 = vector.shape_cast %346 : vector<1x1x8x8xf32> to vector<8x8xf32>
    %c0_418 = arith.constant 0 : index
    %c22_419 = arith.constant 22 : index
    %348 = vector.load %arg12[%c0_418, %c22_419] : memref<8x400xf32, #tpu.memory_space<vmem>>, vector<8x316xf32>
    %cst_420 = arith.constant dense<0.000000e+00> : vector<8x316xf32>
    %349 = tpu.matmul %347, %348, %cst_420 {dimension_numbers = #tpu.dot_dimension_numbers<[1], [0], [0], [1], [0, 0, 1, 1], [], []>} : vector<8x8xf32>, vector<8x316xf32>, vector<8x316xf32> -> vector<8x316xf32>
    %350 = arith.addf %345, %349 : vector<8x316xf32>
    %c0_421 = arith.constant 0 : index
    %c2_422 = arith.constant 2 : index
    %c0_423 = arith.constant 0 : index
    %c0_424 = arith.constant 0 : index
    %351 = vector.load %arg3[%c0_421, %c2_422, %c0_423, %c0_424] : memref<3x3x8x8xf32, #tpu.memory_space<vmem>>, vector<1x1x8x8xf32>
    %352 = vector.shape_cast %351 : vector<1x1x8x8xf32> to vector<8x8xf32>
    %c0_425 = arith.constant 0 : index
    %c23_426 = arith.constant 23 : index
    %353 = vector.load %arg12[%c0_425, %c23_426] : memref<8x400xf32, #tpu.memory_space<vmem>>, vector<8x316xf32>
    %cst_427 = arith.constant dense<0.000000e+00> : vector<8x316xf32>
    %354 = tpu.matmul %352, %353, %cst_427 {dimension_numbers = #tpu.dot_dimension_numbers<[1], [0], [0], [1], [0, 0, 1, 1], [], []>} : vector<8x8xf32>, vector<8x316xf32>, vector<8x316xf32> -> vector<8x316xf32>
    %355 = arith.addf %350, %354 : vector<8x316xf32>
    %c1_428 = arith.constant 1 : index
    %c0_429 = arith.constant 0 : index
    %c0_430 = arith.constant 0 : index
    %c0_431 = arith.constant 0 : index
    %356 = vector.load %arg3[%c1_428, %c0_429, %c0_430, %c0_431] : memref<3x3x8x8xf32, #tpu.memory_space<vmem>>, vector<1x1x8x8xf32>
    %357 = vector.shape_cast %356 : vector<1x1x8x8xf32> to vector<8x8xf32>
    %c0_432 = arith.constant 0 : index
    %c41_433 = arith.constant 41 : index
    %358 = vector.load %arg12[%c0_432, %c41_433] : memref<8x400xf32, #tpu.memory_space<vmem>>, vector<8x316xf32>
    %cst_434 = arith.constant dense<0.000000e+00> : vector<8x316xf32>
    %359 = tpu.matmul %357, %358, %cst_434 {dimension_numbers = #tpu.dot_dimension_numbers<[1], [0], [0], [1], [0, 0, 1, 1], [], []>} : vector<8x8xf32>, vector<8x316xf32>, vector<8x316xf32> -> vector<8x316xf32>
    %360 = arith.addf %355, %359 : vector<8x316xf32>
    %c1_435 = arith.constant 1 : index
    %c1_436 = arith.constant 1 : index
    %c0_437 = arith.constant 0 : index
    %c0_438 = arith.constant 0 : index
    %361 = vector.load %arg3[%c1_435, %c1_436, %c0_437, %c0_438] : memref<3x3x8x8xf32, #tpu.memory_space<vmem>>, vector<1x1x8x8xf32>
    %362 = vector.shape_cast %361 : vector<1x1x8x8xf32> to vector<8x8xf32>
    %c0_439 = arith.constant 0 : index
    %c42_440 = arith.constant 42 : index
    %363 = vector.load %arg12[%c0_439, %c42_440] : memref<8x400xf32, #tpu.memory_space<vmem>>, vector<8x316xf32>
    %cst_441 = arith.constant dense<0.000000e+00> : vector<8x316xf32>
    %364 = tpu.matmul %362, %363, %cst_441 {dimension_numbers = #tpu.dot_dimension_numbers<[1], [0], [0], [1], [0, 0, 1, 1], [], []>} : vector<8x8xf32>, vector<8x316xf32>, vector<8x316xf32> -> vector<8x316xf32>
    %365 = arith.addf %360, %364 : vector<8x316xf32>
    %c1_442 = arith.constant 1 : index
    %c2_443 = arith.constant 2 : index
    %c0_444 = arith.constant 0 : index
    %c0_445 = arith.constant 0 : index
    %366 = vector.load %arg3[%c1_442, %c2_443, %c0_444, %c0_445] : memref<3x3x8x8xf32, #tpu.memory_space<vmem>>, vector<1x1x8x8xf32>
    %367 = vector.shape_cast %366 : vector<1x1x8x8xf32> to vector<8x8xf32>
    %c0_446 = arith.constant 0 : index
    %c43_447 = arith.constant 43 : index
    %368 = vector.load %arg12[%c0_446, %c43_447] : memref<8x400xf32, #tpu.memory_space<vmem>>, vector<8x316xf32>
    %cst_448 = arith.constant dense<0.000000e+00> : vector<8x316xf32>
    %369 = tpu.matmul %367, %368, %cst_448 {dimension_numbers = #tpu.dot_dimension_numbers<[1], [0], [0], [1], [0, 0, 1, 1], [], []>} : vector<8x8xf32>, vector<8x316xf32>, vector<8x316xf32> -> vector<8x316xf32>
    %370 = arith.addf %365, %369 : vector<8x316xf32>
    %c2_449 = arith.constant 2 : index
    %c0_450 = arith.constant 0 : index
    %c0_451 = arith.constant 0 : index
    %c0_452 = arith.constant 0 : index
    %371 = vector.load %arg3[%c2_449, %c0_450, %c0_451, %c0_452] : memref<3x3x8x8xf32, #tpu.memory_space<vmem>>, vector<1x1x8x8xf32>
    %372 = vector.shape_cast %371 : vector<1x1x8x8xf32> to vector<8x8xf32>
    %c0_453 = arith.constant 0 : index
    %c61_454 = arith.constant 61 : index
    %373 = vector.load %arg12[%c0_453, %c61_454] : memref<8x400xf32, #tpu.memory_space<vmem>>, vector<8x316xf32>
    %cst_455 = arith.constant dense<0.000000e+00> : vector<8x316xf32>
    %374 = tpu.matmul %372, %373, %cst_455 {dimension_numbers = #tpu.dot_dimension_numbers<[1], [0], [0], [1], [0, 0, 1, 1], [], []>} : vector<8x8xf32>, vector<8x316xf32>, vector<8x316xf32> -> vector<8x316xf32>
    %375 = arith.addf %370, %374 : vector<8x316xf32>
    %c2_456 = arith.constant 2 : index
    %c1_457 = arith.constant 1 : index
    %c0_458 = arith.constant 0 : index
    %c0_459 = arith.constant 0 : index
    %376 = vector.load %arg3[%c2_456, %c1_457, %c0_458, %c0_459] : memref<3x3x8x8xf32, #tpu.memory_space<vmem>>, vector<1x1x8x8xf32>
    %377 = vector.shape_cast %376 : vector<1x1x8x8xf32> to vector<8x8xf32>
    %c0_460 = arith.constant 0 : index
    %c62_461 = arith.constant 62 : index
    %378 = vector.load %arg12[%c0_460, %c62_461] : memref<8x400xf32, #tpu.memory_space<vmem>>, vector<8x316xf32>
    %cst_462 = arith.constant dense<0.000000e+00> : vector<8x316xf32>
    %379 = tpu.matmul %377, %378, %cst_462 {dimension_numbers = #tpu.dot_dimension_numbers<[1], [0], [0], [1], [0, 0, 1, 1], [], []>} : vector<8x8xf32>, vector<8x316xf32>, vector<8x316xf32> -> vector<8x316xf32>
    %380 = arith.addf %375, %379 : vector<8x316xf32>
    %c2_463 = arith.constant 2 : index
    %c2_464 = arith.constant 2 : index
    %c0_465 = arith.constant 0 : index
    %c0_466 = arith.constant 0 : index
    %381 = vector.load %arg3[%c2_463, %c2_464, %c0_465, %c0_466] : memref<3x3x8x8xf32, #tpu.memory_space<vmem>>, vector<1x1x8x8xf32>
    %382 = vector.shape_cast %381 : vector<1x1x8x8xf32> to vector<8x8xf32>
    %c0_467 = arith.constant 0 : index
    %c63_468 = arith.constant 63 : index
    %383 = vector.load %arg12[%c0_467, %c63_468] : memref<8x400xf32, #tpu.memory_space<vmem>>, vector<8x316xf32>
    %cst_469 = arith.constant dense<0.000000e+00> : vector<8x316xf32>
    %384 = tpu.matmul %382, %383, %cst_469 {dimension_numbers = #tpu.dot_dimension_numbers<[1], [0], [0], [1], [0, 0, 1, 1], [], []>} : vector<8x8xf32>, vector<8x316xf32>, vector<8x316xf32> -> vector<8x316xf32>
    %385 = arith.addf %380, %384 : vector<8x316xf32>
    %c0_470 = arith.constant 0 : index
    %c0_471 = arith.constant 0 : index
    %386 = vector.load %arg4[%c0_470, %c0_471] : memref<8x1xf32, #tpu.memory_space<vmem>>, vector<8x1xf32>
    %387 = vector.broadcast %386 : vector<8x1xf32> to vector<8x316xf32>
    %388 = arith.addf %385, %387 : vector<8x316xf32>
    %cst_472 = arith.constant 0.000000e+00 : f32
    %389 = vector.broadcast %cst_472 : f32 to vector<8x316xf32>
    %c0_473 = arith.constant 0 : index
    %c0_474 = arith.constant 0 : index
    %c0_475 = arith.constant 0 : index
    %c0_476 = arith.constant 0 : index
    %390 = vector.load %arg5[%c0_473, %c0_474, %c0_475, %c0_476] : memref<5x5x8x8xf32, #tpu.memory_space<vmem>>, vector<1x1x8x8xf32>
    %391 = vector.shape_cast %390 : vector<1x1x8x8xf32> to vector<8x8xf32>
    %c0_477 = arith.constant 0 : index
    %c0_478 = arith.constant 0 : index
    %392 = vector.load %arg12[%c0_477, %c0_478] : memref<8x400xf32, #tpu.memory_space<vmem>>, vector<8x316xf32>
    %cst_479 = arith.constant dense<0.000000e+00> : vector<8x316xf32>
    %393 = tpu.matmul %391, %392, %cst_479 {dimension_numbers = #tpu.dot_dimension_numbers<[1], [0], [0], [1], [0, 0, 1, 1], [], []>} : vector<8x8xf32>, vector<8x316xf32>, vector<8x316xf32> -> vector<8x316xf32>
    %394 = arith.addf %389, %393 : vector<8x316xf32>
    %c0_480 = arith.constant 0 : index
    %c1_481 = arith.constant 1 : index
    %c0_482 = arith.constant 0 : index
    %c0_483 = arith.constant 0 : index
    %395 = vector.load %arg5[%c0_480, %c1_481, %c0_482, %c0_483] : memref<5x5x8x8xf32, #tpu.memory_space<vmem>>, vector<1x1x8x8xf32>
    %396 = vector.shape_cast %395 : vector<1x1x8x8xf32> to vector<8x8xf32>
    %c0_484 = arith.constant 0 : index
    %c1_485 = arith.constant 1 : index
    %397 = vector.load %arg12[%c0_484, %c1_485] : memref<8x400xf32, #tpu.memory_space<vmem>>, vector<8x316xf32>
    %cst_486 = arith.constant dense<0.000000e+00> : vector<8x316xf32>
    %398 = tpu.matmul %396, %397, %cst_486 {dimension_numbers = #tpu.dot_dimension_numbers<[1], [0], [0], [1], [0, 0, 1, 1], [], []>} : vector<8x8xf32>, vector<8x316xf32>, vector<8x316xf32> -> vector<8x316xf32>
    %399 = arith.addf %394, %398 : vector<8x316xf32>
    %c0_487 = arith.constant 0 : index
    %c2_488 = arith.constant 2 : index
    %c0_489 = arith.constant 0 : index
    %c0_490 = arith.constant 0 : index
    %400 = vector.load %arg5[%c0_487, %c2_488, %c0_489, %c0_490] : memref<5x5x8x8xf32, #tpu.memory_space<vmem>>, vector<1x1x8x8xf32>
    %401 = vector.shape_cast %400 : vector<1x1x8x8xf32> to vector<8x8xf32>
    %c0_491 = arith.constant 0 : index
    %c2_492 = arith.constant 2 : index
    %402 = vector.load %arg12[%c0_491, %c2_492] : memref<8x400xf32, #tpu.memory_space<vmem>>, vector<8x316xf32>
    %cst_493 = arith.constant dense<0.000000e+00> : vector<8x316xf32>
    %403 = tpu.matmul %401, %402, %cst_493 {dimension_numbers = #tpu.dot_dimension_numbers<[1], [0], [0], [1], [0, 0, 1, 1], [], []>} : vector<8x8xf32>, vector<8x316xf32>, vector<8x316xf32> -> vector<8x316xf32>
    %404 = arith.addf %399, %403 : vector<8x316xf32>
    %c0_494 = arith.constant 0 : index
    %c3_495 = arith.constant 3 : index
    %c0_496 = arith.constant 0 : index
    %c0_497 = arith.constant 0 : index
    %405 = vector.load %arg5[%c0_494, %c3_495, %c0_496, %c0_497] : memref<5x5x8x8xf32, #tpu.memory_space<vmem>>, vector<1x1x8x8xf32>
    %406 = vector.shape_cast %405 : vector<1x1x8x8xf32> to vector<8x8xf32>
    %c0_498 = arith.constant 0 : index
    %c3_499 = arith.constant 3 : index
    %407 = vector.load %arg12[%c0_498, %c3_499] : memref<8x400xf32, #tpu.memory_space<vmem>>, vector<8x316xf32>
    %cst_500 = arith.constant dense<0.000000e+00> : vector<8x316xf32>
    %408 = tpu.matmul %406, %407, %cst_500 {dimension_numbers = #tpu.dot_dimension_numbers<[1], [0], [0], [1], [0, 0, 1, 1], [], []>} : vector<8x8xf32>, vector<8x316xf32>, vector<8x316xf32> -> vector<8x316xf32>
    %409 = arith.addf %404, %408 : vector<8x316xf32>
    %c0_501 = arith.constant 0 : index
    %c4_502 = arith.constant 4 : index
    %c0_503 = arith.constant 0 : index
    %c0_504 = arith.constant 0 : index
    %410 = vector.load %arg5[%c0_501, %c4_502, %c0_503, %c0_504] : memref<5x5x8x8xf32, #tpu.memory_space<vmem>>, vector<1x1x8x8xf32>
    %411 = vector.shape_cast %410 : vector<1x1x8x8xf32> to vector<8x8xf32>
    %c0_505 = arith.constant 0 : index
    %c4_506 = arith.constant 4 : index
    %412 = vector.load %arg12[%c0_505, %c4_506] : memref<8x400xf32, #tpu.memory_space<vmem>>, vector<8x316xf32>
    %cst_507 = arith.constant dense<0.000000e+00> : vector<8x316xf32>
    %413 = tpu.matmul %411, %412, %cst_507 {dimension_numbers = #tpu.dot_dimension_numbers<[1], [0], [0], [1], [0, 0, 1, 1], [], []>} : vector<8x8xf32>, vector<8x316xf32>, vector<8x316xf32> -> vector<8x316xf32>
    %414 = arith.addf %409, %413 : vector<8x316xf32>
    %c1_508 = arith.constant 1 : index
    %c0_509 = arith.constant 0 : index
    %c0_510 = arith.constant 0 : index
    %c0_511 = arith.constant 0 : index
    %415 = vector.load %arg5[%c1_508, %c0_509, %c0_510, %c0_511] : memref<5x5x8x8xf32, #tpu.memory_space<vmem>>, vector<1x1x8x8xf32>
    %416 = vector.shape_cast %415 : vector<1x1x8x8xf32> to vector<8x8xf32>
    %c0_512 = arith.constant 0 : index
    %c20_513 = arith.constant 20 : index
    %417 = vector.load %arg12[%c0_512, %c20_513] : memref<8x400xf32, #tpu.memory_space<vmem>>, vector<8x316xf32>
    %cst_514 = arith.constant dense<0.000000e+00> : vector<8x316xf32>
    %418 = tpu.matmul %416, %417, %cst_514 {dimension_numbers = #tpu.dot_dimension_numbers<[1], [0], [0], [1], [0, 0, 1, 1], [], []>} : vector<8x8xf32>, vector<8x316xf32>, vector<8x316xf32> -> vector<8x316xf32>
    %419 = arith.addf %414, %418 : vector<8x316xf32>
    %c1_515 = arith.constant 1 : index
    %c1_516 = arith.constant 1 : index
    %c0_517 = arith.constant 0 : index
    %c0_518 = arith.constant 0 : index
    %420 = vector.load %arg5[%c1_515, %c1_516, %c0_517, %c0_518] : memref<5x5x8x8xf32, #tpu.memory_space<vmem>>, vector<1x1x8x8xf32>
    %421 = vector.shape_cast %420 : vector<1x1x8x8xf32> to vector<8x8xf32>
    %c0_519 = arith.constant 0 : index
    %c21_520 = arith.constant 21 : index
    %422 = vector.load %arg12[%c0_519, %c21_520] : memref<8x400xf32, #tpu.memory_space<vmem>>, vector<8x316xf32>
    %cst_521 = arith.constant dense<0.000000e+00> : vector<8x316xf32>
    %423 = tpu.matmul %421, %422, %cst_521 {dimension_numbers = #tpu.dot_dimension_numbers<[1], [0], [0], [1], [0, 0, 1, 1], [], []>} : vector<8x8xf32>, vector<8x316xf32>, vector<8x316xf32> -> vector<8x316xf32>
    %424 = arith.addf %419, %423 : vector<8x316xf32>
    %c1_522 = arith.constant 1 : index
    %c2_523 = arith.constant 2 : index
    %c0_524 = arith.constant 0 : index
    %c0_525 = arith.constant 0 : index
    %425 = vector.load %arg5[%c1_522, %c2_523, %c0_524, %c0_525] : memref<5x5x8x8xf32, #tpu.memory_space<vmem>>, vector<1x1x8x8xf32>
    %426 = vector.shape_cast %425 : vector<1x1x8x8xf32> to vector<8x8xf32>
    %c0_526 = arith.constant 0 : index
    %c22_527 = arith.constant 22 : index
    %427 = vector.load %arg12[%c0_526, %c22_527] : memref<8x400xf32, #tpu.memory_space<vmem>>, vector<8x316xf32>
    %cst_528 = arith.constant dense<0.000000e+00> : vector<8x316xf32>
    %428 = tpu.matmul %426, %427, %cst_528 {dimension_numbers = #tpu.dot_dimension_numbers<[1], [0], [0], [1], [0, 0, 1, 1], [], []>} : vector<8x8xf32>, vector<8x316xf32>, vector<8x316xf32> -> vector<8x316xf32>
    %429 = arith.addf %424, %428 : vector<8x316xf32>
    %c1_529 = arith.constant 1 : index
    %c3_530 = arith.constant 3 : index
    %c0_531 = arith.constant 0 : index
    %c0_532 = arith.constant 0 : index
    %430 = vector.load %arg5[%c1_529, %c3_530, %c0_531, %c0_532] : memref<5x5x8x8xf32, #tpu.memory_space<vmem>>, vector<1x1x8x8xf32>
    %431 = vector.shape_cast %430 : vector<1x1x8x8xf32> to vector<8x8xf32>
    %c0_533 = arith.constant 0 : index
    %c23_534 = arith.constant 23 : index
    %432 = vector.load %arg12[%c0_533, %c23_534] : memref<8x400xf32, #tpu.memory_space<vmem>>, vector<8x316xf32>
    %cst_535 = arith.constant dense<0.000000e+00> : vector<8x316xf32>
    %433 = tpu.matmul %431, %432, %cst_535 {dimension_numbers = #tpu.dot_dimension_numbers<[1], [0], [0], [1], [0, 0, 1, 1], [], []>} : vector<8x8xf32>, vector<8x316xf32>, vector<8x316xf32> -> vector<8x316xf32>
    %434 = arith.addf %429, %433 : vector<8x316xf32>
    %c1_536 = arith.constant 1 : index
    %c4_537 = arith.constant 4 : index
    %c0_538 = arith.constant 0 : index
    %c0_539 = arith.constant 0 : index
    %435 = vector.load %arg5[%c1_536, %c4_537, %c0_538, %c0_539] : memref<5x5x8x8xf32, #tpu.memory_space<vmem>>, vector<1x1x8x8xf32>
    %436 = vector.shape_cast %435 : vector<1x1x8x8xf32> to vector<8x8xf32>
    %c0_540 = arith.constant 0 : index
    %c24_541 = arith.constant 24 : index
    %437 = vector.load %arg12[%c0_540, %c24_541] : memref<8x400xf32, #tpu.memory_space<vmem>>, vector<8x316xf32>
    %cst_542 = arith.constant dense<0.000000e+00> : vector<8x316xf32>
    %438 = tpu.matmul %436, %437, %cst_542 {dimension_numbers = #tpu.dot_dimension_numbers<[1], [0], [0], [1], [0, 0, 1, 1], [], []>} : vector<8x8xf32>, vector<8x316xf32>, vector<8x316xf32> -> vector<8x316xf32>
    %439 = arith.addf %434, %438 : vector<8x316xf32>
    %c2_543 = arith.constant 2 : index
    %c0_544 = arith.constant 0 : index
    %c0_545 = arith.constant 0 : index
    %c0_546 = arith.constant 0 : index
    %440 = vector.load %arg5[%c2_543, %c0_544, %c0_545, %c0_546] : memref<5x5x8x8xf32, #tpu.memory_space<vmem>>, vector<1x1x8x8xf32>
    %441 = vector.shape_cast %440 : vector<1x1x8x8xf32> to vector<8x8xf32>
    %c0_547 = arith.constant 0 : index
    %c40_548 = arith.constant 40 : index
    %442 = vector.load %arg12[%c0_547, %c40_548] : memref<8x400xf32, #tpu.memory_space<vmem>>, vector<8x316xf32>
    %cst_549 = arith.constant dense<0.000000e+00> : vector<8x316xf32>
    %443 = tpu.matmul %441, %442, %cst_549 {dimension_numbers = #tpu.dot_dimension_numbers<[1], [0], [0], [1], [0, 0, 1, 1], [], []>} : vector<8x8xf32>, vector<8x316xf32>, vector<8x316xf32> -> vector<8x316xf32>
    %444 = arith.addf %439, %443 : vector<8x316xf32>
    %c2_550 = arith.constant 2 : index
    %c1_551 = arith.constant 1 : index
    %c0_552 = arith.constant 0 : index
    %c0_553 = arith.constant 0 : index
    %445 = vector.load %arg5[%c2_550, %c1_551, %c0_552, %c0_553] : memref<5x5x8x8xf32, #tpu.memory_space<vmem>>, vector<1x1x8x8xf32>
    %446 = vector.shape_cast %445 : vector<1x1x8x8xf32> to vector<8x8xf32>
    %c0_554 = arith.constant 0 : index
    %c41_555 = arith.constant 41 : index
    %447 = vector.load %arg12[%c0_554, %c41_555] : memref<8x400xf32, #tpu.memory_space<vmem>>, vector<8x316xf32>
    %cst_556 = arith.constant dense<0.000000e+00> : vector<8x316xf32>
    %448 = tpu.matmul %446, %447, %cst_556 {dimension_numbers = #tpu.dot_dimension_numbers<[1], [0], [0], [1], [0, 0, 1, 1], [], []>} : vector<8x8xf32>, vector<8x316xf32>, vector<8x316xf32> -> vector<8x316xf32>
    %449 = arith.addf %444, %448 : vector<8x316xf32>
    %c2_557 = arith.constant 2 : index
    %c2_558 = arith.constant 2 : index
    %c0_559 = arith.constant 0 : index
    %c0_560 = arith.constant 0 : index
    %450 = vector.load %arg5[%c2_557, %c2_558, %c0_559, %c0_560] : memref<5x5x8x8xf32, #tpu.memory_space<vmem>>, vector<1x1x8x8xf32>
    %451 = vector.shape_cast %450 : vector<1x1x8x8xf32> to vector<8x8xf32>
    %c0_561 = arith.constant 0 : index
    %c42_562 = arith.constant 42 : index
    %452 = vector.load %arg12[%c0_561, %c42_562] : memref<8x400xf32, #tpu.memory_space<vmem>>, vector<8x316xf32>
    %cst_563 = arith.constant dense<0.000000e+00> : vector<8x316xf32>
    %453 = tpu.matmul %451, %452, %cst_563 {dimension_numbers = #tpu.dot_dimension_numbers<[1], [0], [0], [1], [0, 0, 1, 1], [], []>} : vector<8x8xf32>, vector<8x316xf32>, vector<8x316xf32> -> vector<8x316xf32>
    %454 = arith.addf %449, %453 : vector<8x316xf32>
    %c2_564 = arith.constant 2 : index
    %c3_565 = arith.constant 3 : index
    %c0_566 = arith.constant 0 : index
    %c0_567 = arith.constant 0 : index
    %455 = vector.load %arg5[%c2_564, %c3_565, %c0_566, %c0_567] : memref<5x5x8x8xf32, #tpu.memory_space<vmem>>, vector<1x1x8x8xf32>
    %456 = vector.shape_cast %455 : vector<1x1x8x8xf32> to vector<8x8xf32>
    %c0_568 = arith.constant 0 : index
    %c43_569 = arith.constant 43 : index
    %457 = vector.load %arg12[%c0_568, %c43_569] : memref<8x400xf32, #tpu.memory_space<vmem>>, vector<8x316xf32>
    %cst_570 = arith.constant dense<0.000000e+00> : vector<8x316xf32>
    %458 = tpu.matmul %456, %457, %cst_570 {dimension_numbers = #tpu.dot_dimension_numbers<[1], [0], [0], [1], [0, 0, 1, 1], [], []>} : vector<8x8xf32>, vector<8x316xf32>, vector<8x316xf32> -> vector<8x316xf32>
    %459 = arith.addf %454, %458 : vector<8x316xf32>
    %c2_571 = arith.constant 2 : index
    %c4_572 = arith.constant 4 : index
    %c0_573 = arith.constant 0 : index
    %c0_574 = arith.constant 0 : index
    %460 = vector.load %arg5[%c2_571, %c4_572, %c0_573, %c0_574] : memref<5x5x8x8xf32, #tpu.memory_space<vmem>>, vector<1x1x8x8xf32>
    %461 = vector.shape_cast %460 : vector<1x1x8x8xf32> to vector<8x8xf32>
    %c0_575 = arith.constant 0 : index
    %c44_576 = arith.constant 44 : index
    %462 = vector.load %arg12[%c0_575, %c44_576] : memref<8x400xf32, #tpu.memory_space<vmem>>, vector<8x316xf32>
    %cst_577 = arith.constant dense<0.000000e+00> : vector<8x316xf32>
    %463 = tpu.matmul %461, %462, %cst_577 {dimension_numbers = #tpu.dot_dimension_numbers<[1], [0], [0], [1], [0, 0, 1, 1], [], []>} : vector<8x8xf32>, vector<8x316xf32>, vector<8x316xf32> -> vector<8x316xf32>
    %464 = arith.addf %459, %463 : vector<8x316xf32>
    %c3_578 = arith.constant 3 : index
    %c0_579 = arith.constant 0 : index
    %c0_580 = arith.constant 0 : index
    %c0_581 = arith.constant 0 : index
    %465 = vector.load %arg5[%c3_578, %c0_579, %c0_580, %c0_581] : memref<5x5x8x8xf32, #tpu.memory_space<vmem>>, vector<1x1x8x8xf32>
    %466 = vector.shape_cast %465 : vector<1x1x8x8xf32> to vector<8x8xf32>
    %c0_582 = arith.constant 0 : index
    %c60_583 = arith.constant 60 : index
    %467 = vector.load %arg12[%c0_582, %c60_583] : memref<8x400xf32, #tpu.memory_space<vmem>>, vector<8x316xf32>
    %cst_584 = arith.constant dense<0.000000e+00> : vector<8x316xf32>
    %468 = tpu.matmul %466, %467, %cst_584 {dimension_numbers = #tpu.dot_dimension_numbers<[1], [0], [0], [1], [0, 0, 1, 1], [], []>} : vector<8x8xf32>, vector<8x316xf32>, vector<8x316xf32> -> vector<8x316xf32>
    %469 = arith.addf %464, %468 : vector<8x316xf32>
    %c3_585 = arith.constant 3 : index
    %c1_586 = arith.constant 1 : index
    %c0_587 = arith.constant 0 : index
    %c0_588 = arith.constant 0 : index
    %470 = vector.load %arg5[%c3_585, %c1_586, %c0_587, %c0_588] : memref<5x5x8x8xf32, #tpu.memory_space<vmem>>, vector<1x1x8x8xf32>
    %471 = vector.shape_cast %470 : vector<1x1x8x8xf32> to vector<8x8xf32>
    %c0_589 = arith.constant 0 : index
    %c61_590 = arith.constant 61 : index
    %472 = vector.load %arg12[%c0_589, %c61_590] : memref<8x400xf32, #tpu.memory_space<vmem>>, vector<8x316xf32>
    %cst_591 = arith.constant dense<0.000000e+00> : vector<8x316xf32>
    %473 = tpu.matmul %471, %472, %cst_591 {dimension_numbers = #tpu.dot_dimension_numbers<[1], [0], [0], [1], [0, 0, 1, 1], [], []>} : vector<8x8xf32>, vector<8x316xf32>, vector<8x316xf32> -> vector<8x316xf32>
    %474 = arith.addf %469, %473 : vector<8x316xf32>
    %c3_592 = arith.constant 3 : index
    %c2_593 = arith.constant 2 : index
    %c0_594 = arith.constant 0 : index
    %c0_595 = arith.constant 0 : index
    %475 = vector.load %arg5[%c3_592, %c2_593, %c0_594, %c0_595] : memref<5x5x8x8xf32, #tpu.memory_space<vmem>>, vector<1x1x8x8xf32>
    %476 = vector.shape_cast %475 : vector<1x1x8x8xf32> to vector<8x8xf32>
    %c0_596 = arith.constant 0 : index
    %c62_597 = arith.constant 62 : index
    %477 = vector.load %arg12[%c0_596, %c62_597] : memref<8x400xf32, #tpu.memory_space<vmem>>, vector<8x316xf32>
    %cst_598 = arith.constant dense<0.000000e+00> : vector<8x316xf32>
    %478 = tpu.matmul %476, %477, %cst_598 {dimension_numbers = #tpu.dot_dimension_numbers<[1], [0], [0], [1], [0, 0, 1, 1], [], []>} : vector<8x8xf32>, vector<8x316xf32>, vector<8x316xf32> -> vector<8x316xf32>
    %479 = arith.addf %474, %478 : vector<8x316xf32>
    %c3_599 = arith.constant 3 : index
    %c3_600 = arith.constant 3 : index
    %c0_601 = arith.constant 0 : index
    %c0_602 = arith.constant 0 : index
    %480 = vector.load %arg5[%c3_599, %c3_600, %c0_601, %c0_602] : memref<5x5x8x8xf32, #tpu.memory_space<vmem>>, vector<1x1x8x8xf32>
    %481 = vector.shape_cast %480 : vector<1x1x8x8xf32> to vector<8x8xf32>
    %c0_603 = arith.constant 0 : index
    %c63_604 = arith.constant 63 : index
    %482 = vector.load %arg12[%c0_603, %c63_604] : memref<8x400xf32, #tpu.memory_space<vmem>>, vector<8x316xf32>
    %cst_605 = arith.constant dense<0.000000e+00> : vector<8x316xf32>
    %483 = tpu.matmul %481, %482, %cst_605 {dimension_numbers = #tpu.dot_dimension_numbers<[1], [0], [0], [1], [0, 0, 1, 1], [], []>} : vector<8x8xf32>, vector<8x316xf32>, vector<8x316xf32> -> vector<8x316xf32>
    %484 = arith.addf %479, %483 : vector<8x316xf32>
    %c3_606 = arith.constant 3 : index
    %c4_607 = arith.constant 4 : index
    %c0_608 = arith.constant 0 : index
    %c0_609 = arith.constant 0 : index
    %485 = vector.load %arg5[%c3_606, %c4_607, %c0_608, %c0_609] : memref<5x5x8x8xf32, #tpu.memory_space<vmem>>, vector<1x1x8x8xf32>
    %486 = vector.shape_cast %485 : vector<1x1x8x8xf32> to vector<8x8xf32>
    %c0_610 = arith.constant 0 : index
    %c64_611 = arith.constant 64 : index
    %487 = vector.load %arg12[%c0_610, %c64_611] : memref<8x400xf32, #tpu.memory_space<vmem>>, vector<8x316xf32>
    %cst_612 = arith.constant dense<0.000000e+00> : vector<8x316xf32>
    %488 = tpu.matmul %486, %487, %cst_612 {dimension_numbers = #tpu.dot_dimension_numbers<[1], [0], [0], [1], [0, 0, 1, 1], [], []>} : vector<8x8xf32>, vector<8x316xf32>, vector<8x316xf32> -> vector<8x316xf32>
    %489 = arith.addf %484, %488 : vector<8x316xf32>
    %c4_613 = arith.constant 4 : index
    %c0_614 = arith.constant 0 : index
    %c0_615 = arith.constant 0 : index
    %c0_616 = arith.constant 0 : index
    %490 = vector.load %arg5[%c4_613, %c0_614, %c0_615, %c0_616] : memref<5x5x8x8xf32, #tpu.memory_space<vmem>>, vector<1x1x8x8xf32>
    %491 = vector.shape_cast %490 : vector<1x1x8x8xf32> to vector<8x8xf32>
    %c0_617 = arith.constant 0 : index
    %c80_618 = arith.constant 80 : index
    %492 = vector.load %arg12[%c0_617, %c80_618] : memref<8x400xf32, #tpu.memory_space<vmem>>, vector<8x316xf32>
    %cst_619 = arith.constant dense<0.000000e+00> : vector<8x316xf32>
    %493 = tpu.matmul %491, %492, %cst_619 {dimension_numbers = #tpu.dot_dimension_numbers<[1], [0], [0], [1], [0, 0, 1, 1], [], []>} : vector<8x8xf32>, vector<8x316xf32>, vector<8x316xf32> -> vector<8x316xf32>
    %494 = arith.addf %489, %493 : vector<8x316xf32>
    %c4_620 = arith.constant 4 : index
    %c1_621 = arith.constant 1 : index
    %c0_622 = arith.constant 0 : index
    %c0_623 = arith.constant 0 : index
    %495 = vector.load %arg5[%c4_620, %c1_621, %c0_622, %c0_623] : memref<5x5x8x8xf32, #tpu.memory_space<vmem>>, vector<1x1x8x8xf32>
    %496 = vector.shape_cast %495 : vector<1x1x8x8xf32> to vector<8x8xf32>
    %c0_624 = arith.constant 0 : index
    %c81_625 = arith.constant 81 : index
    %497 = vector.load %arg12[%c0_624, %c81_625] : memref<8x400xf32, #tpu.memory_space<vmem>>, vector<8x316xf32>
    %cst_626 = arith.constant dense<0.000000e+00> : vector<8x316xf32>
    %498 = tpu.matmul %496, %497, %cst_626 {dimension_numbers = #tpu.dot_dimension_numbers<[1], [0], [0], [1], [0, 0, 1, 1], [], []>} : vector<8x8xf32>, vector<8x316xf32>, vector<8x316xf32> -> vector<8x316xf32>
    %499 = arith.addf %494, %498 : vector<8x316xf32>
    %c4_627 = arith.constant 4 : index
    %c2_628 = arith.constant 2 : index
    %c0_629 = arith.constant 0 : index
    %c0_630 = arith.constant 0 : index
    %500 = vector.load %arg5[%c4_627, %c2_628, %c0_629, %c0_630] : memref<5x5x8x8xf32, #tpu.memory_space<vmem>>, vector<1x1x8x8xf32>
    %501 = vector.shape_cast %500 : vector<1x1x8x8xf32> to vector<8x8xf32>
    %c0_631 = arith.constant 0 : index
    %c82_632 = arith.constant 82 : index
    %502 = vector.load %arg12[%c0_631, %c82_632] : memref<8x400xf32, #tpu.memory_space<vmem>>, vector<8x316xf32>
    %cst_633 = arith.constant dense<0.000000e+00> : vector<8x316xf32>
    %503 = tpu.matmul %501, %502, %cst_633 {dimension_numbers = #tpu.dot_dimension_numbers<[1], [0], [0], [1], [0, 0, 1, 1], [], []>} : vector<8x8xf32>, vector<8x316xf32>, vector<8x316xf32> -> vector<8x316xf32>
    %504 = arith.addf %499, %503 : vector<8x316xf32>
    %c4_634 = arith.constant 4 : index
    %c3_635 = arith.constant 3 : index
    %c0_636 = arith.constant 0 : index
    %c0_637 = arith.constant 0 : index
    %505 = vector.load %arg5[%c4_634, %c3_635, %c0_636, %c0_637] : memref<5x5x8x8xf32, #tpu.memory_space<vmem>>, vector<1x1x8x8xf32>
    %506 = vector.shape_cast %505 : vector<1x1x8x8xf32> to vector<8x8xf32>
    %c0_638 = arith.constant 0 : index
    %c83_639 = arith.constant 83 : index
    %507 = vector.load %arg12[%c0_638, %c83_639] : memref<8x400xf32, #tpu.memory_space<vmem>>, vector<8x316xf32>
    %cst_640 = arith.constant dense<0.000000e+00> : vector<8x316xf32>
    %508 = tpu.matmul %506, %507, %cst_640 {dimension_numbers = #tpu.dot_dimension_numbers<[1], [0], [0], [1], [0, 0, 1, 1], [], []>} : vector<8x8xf32>, vector<8x316xf32>, vector<8x316xf32> -> vector<8x316xf32>
    %509 = arith.addf %504, %508 : vector<8x316xf32>
    %c4_641 = arith.constant 4 : index
    %c4_642 = arith.constant 4 : index
    %c0_643 = arith.constant 0 : index
    %c0_644 = arith.constant 0 : index
    %510 = vector.load %arg5[%c4_641, %c4_642, %c0_643, %c0_644] : memref<5x5x8x8xf32, #tpu.memory_space<vmem>>, vector<1x1x8x8xf32>
    %511 = vector.shape_cast %510 : vector<1x1x8x8xf32> to vector<8x8xf32>
    %c0_645 = arith.constant 0 : index
    %c84_646 = arith.constant 84 : index
    %512 = vector.load %arg12[%c0_645, %c84_646] : memref<8x400xf32, #tpu.memory_space<vmem>>, vector<8x316xf32>
    %cst_647 = arith.constant dense<0.000000e+00> : vector<8x316xf32>
    %513 = tpu.matmul %511, %512, %cst_647 {dimension_numbers = #tpu.dot_dimension_numbers<[1], [0], [0], [1], [0, 0, 1, 1], [], []>} : vector<8x8xf32>, vector<8x316xf32>, vector<8x316xf32> -> vector<8x316xf32>
    %514 = arith.addf %509, %513 : vector<8x316xf32>
    %c0_648 = arith.constant 0 : index
    %c0_649 = arith.constant 0 : index
    %515 = vector.load %arg6[%c0_648, %c0_649] : memref<8x1xf32, #tpu.memory_space<vmem>>, vector<8x1xf32>
    %516 = vector.broadcast %515 : vector<8x1xf32> to vector<8x316xf32>
    %517 = arith.addf %514, %516 : vector<8x316xf32>
    %c0_650 = arith.constant 0 : index
    %c42_651 = arith.constant 42 : index
    %518 = vector.load %arg12[%c0_650, %c42_651] : memref<8x400xf32, #tpu.memory_space<vmem>>, vector<8x316xf32>
    %519 = vector.broadcast %1 : f32 to vector<8x316xf32>
    %520 = arith.mulf %519, %388 : vector<8x316xf32>
    %521 = vector.broadcast %2 : f32 to vector<8x316xf32>
    %522 = arith.mulf %521, %517 : vector<8x316xf32>
    %523 = arith.addf %520, %522 : vector<8x316xf32>
    %524 = vector.broadcast %3 : f32 to vector<8x316xf32>
    %525 = arith.mulf %524, %518 : vector<8x316xf32>
    %526 = arith.addf %523, %525 : vector<8x316xf32>
    %527 = vector.broadcast %0 : vector<1x316xf32> to vector<8x316xf32>
    %528 = arith.mulf %526, %527 : vector<8x316xf32>
    %c0_652 = arith.constant 0 : index
    %c42_653 = arith.constant 42 : index
    %529 = vector.load %arg13[%c0_652, %c42_653] : memref<8x400xf32, #tpu.memory_space<vmem>>, vector<8x316xf32>
    tpu.vector_store %arg13[%c0_652, %c42_653], %528 {strides = array<i32>} : memref<8x400xf32, #tpu.memory_space<vmem>>, vector<8x316xf32>,
    %c0_654 = arith.constant 0 : index
    %c0_655 = arith.constant 0 : index
    %c0_656 = arith.constant 0 : index
    %c0_657 = arith.constant 0 : index
    %530 = vector.load %arg7[%c0_654, %c0_655, %c0_656, %c0_657] : memref<1x1x4x8xf32, #tpu.memory_space<vmem>>, vector<1x1x4x8xf32>
    %531 = vector.shape_cast %530 : vector<1x1x4x8xf32> to vector<4x8xf32>
    %c0_658 = arith.constant 0 : index
    %c42_659 = arith.constant 42 : index
    %532 = vector.load %arg13[%c0_658, %c42_659] : memref<8x400xf32, #tpu.memory_space<vmem>>, vector<8x316xf32>
    %cst_660 = arith.constant dense<0.000000e+00> : vector<4x316xf32>
    %533 = tpu.matmul %531, %532, %cst_660 {dimension_numbers = #tpu.dot_dimension_numbers<[1], [0], [0], [1], [0, 0, 1, 1], [], []>} : vector<4x8xf32>, vector<8x316xf32>, vector<4x316xf32> -> vector<4x316xf32>
    %c0_661 = arith.constant 0 : index
    %c0_662 = arith.constant 0 : index
    %534 = vector.load %arg8[%c0_661, %c0_662] : memref<4x1xf32, #tpu.memory_space<vmem>>, vector<4x1xf32>
    %535 = vector.broadcast %534 : vector<4x1xf32> to vector<4x316xf32>
    %536 = arith.addf %533, %535 : vector<4x316xf32>
    %cst_663 = arith.constant 0.000000e+00 : f32
    %537 = vector.broadcast %cst_663 : f32 to vector<4x316xf32>
    %538 = arith.maximumf %536, %537 : vector<4x316xf32>
    %539 = vector.broadcast %0 : vector<1x316xf32> to vector<4x316xf32>
    %540 = arith.mulf %538, %539 : vector<4x316xf32>
    %c1_664 = arith.constant 1 : index
    %c0_665 = arith.constant 0 : index
    %c42_666 = arith.constant 42 : index
    %541 = vector.load %arg11[%c1_664, %c0_665, %c42_666] : memref<2x4x400xf32, #tpu.memory_space<vmem>>, vector<1x4x316xf32>
    %542 = vector.shape_cast %541 : vector<1x4x316xf32> to vector<4x316xf32>
    %543 = vector.shape_cast %540 : vector<4x316xf32> to vector<1x4x316xf32>
    tpu.vector_store %arg11[%c1_664, %c0_665, %c42_666], %543 {strides = array<i32>} : memref<2x4x400xf32, #tpu.memory_space<vmem>>, vector<1x4x316xf32>,
    return
  }
}

</mosaic_0001>

<bundles_post_ra>
// kernel: finalnet_forward_pallas.1
= control target key start
LH: loop header
LB: loop body
LE: loop exit
PB: predicated region body
PF: predicated region fallthrough
CT: control target
= control target key end

     0   :  { %16 = vsyncpa [#allocation5], 0  ;;  %s8057_s20 = smov [#allocation4]   ;;  %s9770_s0 = inlined_call_operand.vmem [shape: f32[2,4,400], index: 0, kind: input, shape index: {}]   ;;  %s9771_s1 = inlined_call_operand.vmem [shape: f32[3,3,8,4], index: 1, kind: input, shape index: {}]   ;;  %s9772_s2 = inlined_call_operand.vmem [shape: f32[8,1], index: 2, kind: input, shape index: {}]   ;;  %s9773_s3 = inlined_call_operand.vmem [shape: f32[3,3,8,8], index: 3, kind: input, shape index: {}]   ;;  %s9774_s4 = inlined_call_operand.vmem [shape: f32[8,1], index: 4, kind: input, shape index: {}]   ;;  %s9775_s5 = inlined_call_operand.vmem [shape: f32[5,5,8,8], index: 5, kind: input, shape index: {}]   ;;  %s9776_s6 = inlined_call_operand.vmem [shape: f32[8,1], index: 6, kind: input, shape index: {}]   ;;  %s9777_s7 = inlined_call_operand.vmem [shape: f32[1,1,4,8], index: 7, kind: input, shape index: {}]   ;;  %s9778_s8 = inlined_call_operand.vmem [shape: f32[4,1], index: 8, kind: input, shape index: {}]   ;;  %s9779_s9 = inlined_call_operand.vmem [shape: f32[1,316], index: 9, kind: input, shape index: {}]   ;;  %s9780_s10 = inlined_call_operand.vmem [shape: f32[3], index: 10, kind: input, shape index: {}]   ;;  %s9781_s11 = inlined_call_operand.vmem [shape: f32[2,4,400], index: 11, kind: output, shape index: {}]  }
   0x1   :  { %s42_s19 = sshll.u32 %s9780_s10, 4  ;;  %s43_s19 = int_to_ptr.vmem [resolvable:$true] %s42_s19 }
   0x2   :  { %45 = dma.vmem_to_smem %s43_s19, 16, %s8057_s20, [#allocation5]  }
   0x3   :  { %8055 = dma.done.wait [#allocation5], 16  }
   0x4   :  { %8056 = vsyncadd [#allocation5], 4294967280 }
   0x5   :  { %50 = sfence }
   0x6   :  { %v73_v0 = vld [vmem:[%s9770_s0 + $0x8] sm:$0xf]  ;;  %v8154_v1 = vld [vmem:[%s9770_s0] sm:$0xff]  ;;  %s8058_s10 = smov 106   ;;  %s8059_s27 = smov 107   ;;  %vm65_vm0 = vcmask 1043456  }
   0x7   :  { %80 = vst [vmem:[#allocation1 + $0x10] ss:$2 sm:$0xff] %v73_v0  ;;  %v250_v5 = vld [vmem:[%s9770_s0 + $0x8] sm:$0xf]  ;;  %s8060_s30 = smov 105   ;;  %s8061_s14 = smov 87  }
   0x8   :  { %78 = vst [vmem:[#allocation1] ss:$2 sm:$0xff] %v8154_v1  ;;  %v343_v9 = vld [vmem:[%s9770_s0 + $0x8] sm:$0xf]  ;;  %s8062_s17 = smov 86   ;;  %s8063_s20 = smov 85  }
   0x9   :  { %v436_v13 = vld [vmem:[%s9770_s0 + $0x8] sm:$0xf]  ;;  %s8064_s23 = smov 67   ;;  %s8065_s26 = smov 66   ;;  %vm93_vm1 = vcmask 31744   ;;  %vm90_vm2 = vcmask 867328  }
   0xa   :  { %v529_v17 = vld [vmem:[%s9770_s0 + $0x8] sm:$0xf]  ;;  %s8066_s28 = smov 65   ;;  %vm175_vm3 = vcmask 875520   ;;  %v71_v46 = vld [vmem:[%s9771_s1] sm:$0xff]  ;;  %vm265_vm4 = vcmask 859136  }
   0xb   :  { %v622_v21 = vld [vmem:[%s9770_s0 + $0x8] sm:$0xf]  ;;  %v7328_v54 = vld [vmem:[%s9771_s1 + $0x10] sm:$0xff]  ;;  %vm358_vm5 = vcmask 711680   ;;  %v7335_v58 = vld [vmem:[%s9771_s1 + $0x18] sm:$0xff]  ;;  %vm451_vm6 = vcmask 703488  }
   0xc   :  { %v715_v25 = vld [vmem:[%s9770_s0 + $0x8] sm:$0xf]  ;;  %vm544_vm7 = vcmask 695296   ;;  %vm637_vm8 = vcmask 547840   ;;  %vm9801_vm9 = vcmask 539648   ;;  %vm9800_vm10 = vcmask 531456  }
   0xd   :  { %v808_v29 = vld [vmem:[%s9770_s0 + $0x8] sm:$0xf]  ;;  %vm58_vm11 = vcmask 130048   ;;  %vm935_vm12 = vcmask 1047888   ;;  %vm929_vm13 = vcmask 343040   ;;  %vm938_vm14 = vcmask 834560  }
   0xe   :  { %v83_v2 = vld.sshfl [vmem:[#allocation1 + $0x10] sm:$0xff pattern:$0x75316420]  ;;  %v7315_v38 = vld [vmem:[%s9771_s1 + $0x8] sm:$0xff]  ;;  %s8070_s16 = smov 126   ;;  %s8071_s18 = smov 127  }
   0xf   :  { %88 = vrot.lane.b32.xlu1 %v83_v2, %s8058_s10  ;;  %165 = vst [vmem:[#allocation1 + $0x10] ss:$2 sm:$0xff] %v73_v0  ;;  %v81_v3 = vld.sshfl [vmem:[#allocation1] sm:$0xff pattern:$0x75316420]  ;;  %s8072_s19 = smov 125  }
  0x10   :  { %84 = vrot.lane.b32.xlu0 %v81_v3, %s8058_s10  ;;  %v82_v4 = vld.sshfl [vmem:[#allocation1 + $0x8] sm:$0xff pattern:$0x75316420]  ;;  %v7342_v0 = vld [vmem:[%s9771_s1 + $0x20] sm:$0xff]  ;;  %s8073_s21 = smov 108   ;;  %s9798_s22 = smov 124  }
  0x11   :  { %163 = vst [vmem:[#allocation1] ss:$2 sm:$0xff] %v8154_v1  ;;  %v898_v3 = vld [vmem:[%s9772_s2] sm:$0xff]  ;;  %s9790_s24 = smov 104   ;;  %s9786_s25 = smov 84   ;;  %vm960_vm15 = vcmask 64512  }
  0x12   :  { %s9782_s29 = smov 88   ;;  %s9784_s12 = smov 68  }
  0x13   :  { %s9792_s13 = smov 47   ;;  %s8082_s15 = smov 45  }
  0x16   :  { %v168_v6 = vld.sshfl [vmem:[#allocation1 + $0x10] sm:$0xff pattern:$0x75316420] }
  0x17   :  { %255 = vst [vmem:[#allocation1 + $0x10] ss:$2 sm:$0xff] %v250_v5  ;;  %v8067_v5 = vmov 0  }
  0x18   :  { %86 = vrot.lane.b32.xlu0 %v82_v4, %s8058_s10  ;;  %v166_v7 = vld.sshfl [vmem:[#allocation1] sm:$0xff pattern:$0x75316420]  ;;  %v167_v8 = vld.sshfl [vmem:[#allocation1 + $0x8] sm:$0xff pattern:$0x75316420]  ;;  %7895 = vset.pattern.permute.xlu1 %v8067_v5 }
  0x19   :  { %169 = vrot.lane.b32.xlu1 %v166_v7, %s8059_s27  ;;  %253 = vst [vmem:[#allocation1] ss:$2 sm:$0xff] %v8154_v1  ;;  %171 = vrot.lane.b32.xlu2 %v167_v8, %s8059_s27  ;;  %v7349_v8 = vld [vmem:[%s9771_s1 + $0x28] sm:$0xff] }
  0x1a   :  { %7759 = vset.pattern.permute.xlu0 %v8067_v5  ;;  %7896 = vset.pattern.permute.xlu2 %v8067_v5 }
  0x1e   :  { %v258_v10 = vld.sshfl [vmem:[#allocation1 + $0x10] sm:$0xff pattern:$0x75316420] }
  0x1f   :  { %348 = vst [vmem:[#allocation1 + $0x10] ss:$2 sm:$0xff] %v343_v9 }
  0x20   :  { %v257_v11 = vld.sshfl [vmem:[#allocation1 + $0x8] sm:$0xff pattern:$0x75316420]  ;;  %v256_v12 = vld.sshfl [vmem:[#allocation1] sm:$0xff pattern:$0x75316420] }
  0x21   :  { %261 = vrot.lane.b32.xlu1 %v257_v11, %s8060_s30  ;;  %259 = vrot.lane.b32.xlu0 %v256_v12, %s8060_s30  ;;  %346 = vst [vmem:[#allocation1] ss:$2 sm:$0xff] %v8154_v1 }
  0x22   :  { %173 = vrot.lane.b32.xlu2 %v168_v6, %s8059_s27 }
  0x26   :  { %v351_v14 = vld.sshfl [vmem:[#allocation1 + $0x10] sm:$0xff pattern:$0x75316420] }
  0x27   :  { %441 = vst [vmem:[#allocation1 + $0x10] ss:$2 sm:$0xff] %v436_v13 }
  0x28   :  { %v350_v15 = vld.sshfl [vmem:[#allocation1 + $0x8] sm:$0xff pattern:$0x75316420]  ;;  %v349_v16 = vld.sshfl [vmem:[#allocation1] sm:$0xff pattern:$0x75316420] }
  0x29   :  { %354 = vrot.lane.b32.xlu1 %v350_v15, %s8061_s14  ;;  %352 = vrot.lane.b32.xlu0 %v349_v16, %s8061_s14  ;;  %439 = vst [vmem:[#allocation1] ss:$2 sm:$0xff] %v8154_v1 }
  0x2a   :  { %263 = vrot.lane.b32.xlu2 %v258_v10, %s8060_s30 }
  0x2e   :  { %v444_v18 = vld.sshfl [vmem:[#allocation1 + $0x10] sm:$0xff pattern:$0x75316420] }
  0x2f   :  { %534 = vst [vmem:[#allocation1 + $0x10] ss:$2 sm:$0xff] %v529_v17 }
  0x30   :  { %v443_v19 = vld.sshfl [vmem:[#allocation1 + $0x8] sm:$0xff pattern:$0x75316420]  ;;  %v442_v20 = vld.sshfl [vmem:[#allocation1] sm:$0xff pattern:$0x75316420] }
  0x31   :  { %447 = vrot.lane.b32.xlu1 %v443_v19, %s8062_s17  ;;  %445 = vrot.lane.b32.xlu0 %v442_v20, %s8062_s17  ;;  %532 = vst [vmem:[#allocation1] ss:$2 sm:$0xff] %v8154_v1  ;;  %v7363_v19 = vld [vmem:[%s9771_s1 + $0x38] sm:$0xff] }
  0x32   :  { %356 = vrot.lane.b32.xlu2 %v351_v14, %s8061_s14  ;;  %v7356_v14 = vld [vmem:[%s9771_s1 + $0x30] sm:$0xff] }
  0x36   :  { %v537_v22 = vld.sshfl [vmem:[#allocation1 + $0x10] sm:$0xff pattern:$0x75316420] }
  0x37   :  { %627 = vst [vmem:[#allocation1 + $0x10] ss:$2 sm:$0xff] %v622_v21 }
  0x38   :  { %v536_v23 = vld.sshfl [vmem:[#allocation1 + $0x8] sm:$0xff pattern:$0x75316420]  ;;  %v535_v24 = vld.sshfl [vmem:[#allocation1] sm:$0xff pattern:$0x75316420] }
  0x39   :  { %540 = vrot.lane.b32.xlu1 %v536_v23, %s8063_s20  ;;  %538 = vrot.lane.b32.xlu0 %v535_v24, %s8063_s20  ;;  %625 = vst [vmem:[#allocation1] ss:$2 sm:$0xff] %v8154_v1 }
  0x3a   :  { %449 = vrot.lane.b32.xlu2 %v444_v18, %s8062_s17 }
  0x3e   :  { %v630_v26 = vld.sshfl [vmem:[#allocation1 + $0x10] sm:$0xff pattern:$0x75316420] }
  0x3f   :  { %720 = vst [vmem:[#allocation1 + $0x10] ss:$2 sm:$0xff] %v715_v25  ;;  %v7370_v25 = vld [vmem:[%s9771_s1 + $0x40] sm:$0xff] }
  0x40   :  { %v629_v27 = vld.sshfl [vmem:[#allocation1 + $0x8] sm:$0xff pattern:$0x75316420]  ;;  %v628_v28 = vld.sshfl [vmem:[#allocation1] sm:$0xff pattern:$0x75316420] }
  0x41   :  { %633 = vrot.lane.b32.xlu1 %v629_v27, %s8064_s23  ;;  %631 = vrot.lane.b32.xlu0 %v628_v28, %s8064_s23  ;;  %718 = vst [vmem:[#allocation1] ss:$2 sm:$0xff] %v8154_v1 }
  0x42   :  { %542 = vrot.lane.b32.xlu2 %v537_v22, %s8063_s20 }
  0x46   :  { %v723_v30 = vld.sshfl [vmem:[#allocation1 + $0x10] sm:$0xff pattern:$0x75316420] }
  0x47   :  { %813 = vst [vmem:[#allocation1 + $0x10] ss:$2 sm:$0xff] %v808_v29 }
  0x48   :  { %v722_v31 = vld.sshfl [vmem:[#allocation1 + $0x8] sm:$0xff pattern:$0x75316420]  ;;  %v721_v32 = vld.sshfl [vmem:[#allocation1] sm:$0xff pattern:$0x75316420] }
  0x49   :  { %726 = vrot.lane.b32.xlu1 %v722_v31, %s8065_s26  ;;  %724 = vrot.lane.b32.xlu0 %v721_v32, %s8065_s26  ;;  %811 = vst [vmem:[#allocation1] ss:$2 sm:$0xff] %v8154_v1 }
  0x4a   :  { %635 = vrot.lane.b32.xlu2 %v630_v26, %s8064_s23 }
  0x4e   :  { %v816_v35 = vld.sshfl [vmem:[#allocation1 + $0x10] sm:$0xff pattern:$0x75316420] }
  0x50   :  { %v815_v33 = vld.sshfl [vmem:[#allocation1 + $0x8] sm:$0xff pattern:$0x75316420]  ;;  %v814_v34 = vld.sshfl [vmem:[#allocation1] sm:$0xff pattern:$0x75316420] }
  0x51   :  { %819 = vrot.lane.b32.xlu1 %v815_v33, %s8066_s28  ;;  %817 = vrot.lane.b32.xlu0 %v814_v34, %s8066_s28 }
  0x52   :  { %728 = vrot.lane.b32.xlu2 %v723_v30, %s8065_s26 }
  0x59   :  { %901 = vperm.xlu0 %7759, %v898_v3  }
  0x5a   :  { %821 = vrot.lane.b32.xlu2 %v816_v35, %s8066_s28 }
  0x73   :  { %v172_v36 = vpop.permute.xlu2 %171 }
  0x7c   :  { %v174_v37 = vpop.permute.xlu2 %173 }
  0x7d   :  { %v177_v49 = vsel %vm175_vm3, %v172_v36, %v174_v37 }
  0x81   :  { %v89_v39 = vpop.permute.xlu1 %88 }
  0x82   :  { %v85_v40 = vpop.permute.xlu0 %84  ;;  %7320 = vmatpush.msk.msra.mxu2 %vm65_vm0, %v89_v39 }
  0x83   :  { %7321 = vmatmul.msk.f32.vlgmr.msra.gmra.mxu2 %vm93_vm1, %v7315_v38 }
  0x84   :  { %v264_v41 = vpop.permute.xlu2 %263 }
  0x8a   :  { %v87_v42 = vpop.permute.xlu0 %86 }
  0x8b   :  { %v170_v43 = vpop.permute.xlu1 %169  ;;  %v91_v44 = vsel %vm90_vm2, %v85_v40, %v87_v42  ;;  %v92_v45 = vsel %vm90_vm2, %v87_v42, %v89_v39 }
  0x8c   :  { %7316 = vmatpush.msk.msra.mxu0 %vm65_vm0, %v91_v44  ;;  %7318 = vmatpush.msk.msra.mxu1 %vm65_vm0, %v92_v45  ;;  %v176_v47 = vsel %vm175_vm3, %v170_v43, %v172_v36  ;;  %v357_v48 = vpop.permute.xlu2 %356 }
  0x8d   :  { %7322 = vmatpush.msk.msra.mxu3 %vm65_vm0, %v176_v47  ;;  %7317 = vmatmul.msk.f32.vlgmr.msra.gmra.mxu0 %vm93_vm1, %v7315_v38 }
  0x8e   :  { %7319 = vmatmul.msk.f32.vlgmr.msra.gmra.mxu1 %vm93_vm1, %v7315_v38  ;;  %7323 = vmatmul.msk.f32.vlgmr.msra.gmra.mxu3 %vm93_vm1, %v71_v46 }
  0x8f   :  { %7324 = vmatpush.msk.msrb.mxu0 %vm65_vm0, %v177_v49  ;;  %7326 = vmatpush.msk.msrb.mxu1 %vm65_vm0, %v174_v37 }
  0x91   :  { %7333 = vmatpush.msk.msra.mxu0 %vm65_vm0, %v264_v41 }
  0x93   :  { %v262_v50 = vpop.permute.xlu1 %261  ;;  %v260_v51 = vpop.permute.xlu0 %259 }
  0x94   :  { %v266_v52 = vsel %vm265_vm4, %v260_v51, %v262_v50  ;;  %v267_v53 = vsel %vm265_vm4, %v262_v50, %v264_v41  ;;  %v450_v55 = vpop.permute.xlu2 %449 }
  0x95   :  { %7329 = vmatpush.msk.msrb.mxu2 %vm65_vm0, %v266_v52  ;;  %7331 = vmatpush.msk.msrb.mxu3 %vm65_vm0, %v267_v53 }
  0x96   :  { %7325 = vmatmul.msk.f32.vlgmr.msrb.gmra.mxu0 %vm93_vm1, %v71_v46  ;;  %7327 = vmatmul.msk.f32.vlgmr.msrb.gmra.mxu1 %vm93_vm1, %v71_v46 }
  0x97   :  { %7330 = vmatmul.msk.f32.vlgmr.msrb.gmra.mxu2 %vm93_vm1, %v7328_v54  ;;  %7332 = vmatmul.msk.f32.vlgmr.msrb.gmra.mxu3 %vm93_vm1, %v7328_v54 }
  0x98   :  { %7340 = vmatpush.msk.msra.mxu3 %vm65_vm0, %v357_v48 }
  0x9b   :  { %v355_v56 = vpop.permute.xlu1 %354  ;;  %v353_v57 = vpop.permute.xlu0 %352 }
  0x9c   :  { %v360_v59 = vsel %vm358_vm5, %v355_v56, %v357_v48  ;;  %v359_v60 = vsel %vm358_vm5, %v353_v57, %v355_v56  ;;  %v543_v61 = vpop.permute.xlu2 %542 }
  0x9d   :  { %7336 = vmatpush.msk.msra.mxu1 %vm65_vm0, %v359_v60  ;;  %7338 = vmatpush.msk.msra.mxu2 %vm65_vm0, %v360_v59 }
  0x9e   :  { %7334 = vmatmul.msk.f32.vlgmr.msra.gmra.mxu0 %vm93_vm1, %v7328_v54  ;;  %7337 = vmatmul.msk.f32.vlgmr.msra.gmra.mxu1 %vm93_vm1, %v7335_v58 }
  0x9f   :  { %7339 = vmatmul.msk.f32.vlgmr.msra.gmra.mxu2 %vm93_vm1, %v7335_v58  ;;  %7341 = vmatmul.msk.f32.vlgmr.msra.gmra.mxu3 %vm93_vm1, %v7335_v58 }
  0xa0   :  { %7347 = vmatpush.msk.msrb.mxu2 %vm65_vm0, %v450_v55 }
  0xa3   :  { %v448_v62 = vpop.permute.xlu1 %447  ;;  %v446_v63 = vpop.permute.xlu0 %445 }
  0xa4   :  { %v453_v1 = vsel %vm451_vm6, %v448_v62, %v450_v55  ;;  %v452_v2 = vsel %vm451_vm6, %v446_v63, %v448_v62  ;;  %v636_v4 = vpop.permute.xlu2 %635 }
  0xa5   :  { %7343 = vmatpush.msk.msrb.mxu0 %vm65_vm0, %v452_v2  ;;  %7345 = vmatpush.msk.msrb.mxu1 %vm65_vm0, %v453_v1 }
  0xa6   :  { %7344 = vmatmul.msk.f32.vlgmr.msrb.gmra.mxu0 %vm93_vm1, %v7342_v0  ;;  %7346 = vmatmul.msk.f32.vlgmr.msrb.gmra.mxu1 %vm93_vm1, %v7342_v0 }
  0xa7   :  { %7348 = vmatmul.msk.f32.vlgmr.msrb.gmra.mxu2 %vm93_vm1, %v7342_v0  ;;  %7354 = vmatpush.msk.msra.mxu1 %vm65_vm0, %v543_v61 }
  0xab   :  { %v541_v6 = vpop.permute.xlu1 %540  ;;  %v539_v7 = vpop.permute.xlu0 %538 }
  0xac   :  { %v546_v9 = vsel %vm544_vm7, %v541_v6, %v543_v61  ;;  %v545_v10 = vsel %vm544_vm7, %v539_v7, %v541_v6  ;;  %v729_v11 = vpop.permute.xlu2 %728 }
  0xad   :  { %7350 = vmatpush.msk.msrb.mxu3 %vm65_vm0, %v545_v10  ;;  %7352 = vmatpush.msk.msra.mxu0 %vm65_vm0, %v546_v9 }
  0xae   :  { %7351 = vmatmul.msk.f32.vlgmr.msrb.gmra.mxu3 %vm93_vm1, %v7349_v8  ;;  %7353 = vmatmul.msk.f32.vlgmr.msra.gmra.mxu0 %vm93_vm1, %v7349_v8 }
  0xaf   :  { %7355 = vmatmul.msk.f32.vlgmr.msra.gmra.mxu1 %vm93_vm1, %v7349_v8  ;;  %7361 = vmatpush.msk.msrb.mxu0 %vm65_vm0, %v636_v4  ;;  %v51_v8 = vld [vmem:[%s9779_s9] sm:$0x7]  ;;  %s8068_s9 = smov 42  }
  0xb3   :  { %v634_v12 = vpop.permute.xlu1 %633  ;;  %v632_v13 = vpop.permute.xlu0 %631 }
  0xb4   :  { %v639_v15 = vsel %vm637_vm8, %v634_v12, %v636_v4  ;;  %v638_v16 = vsel %vm637_vm8, %v632_v13, %v634_v12  ;;  %v822_v22 = vpop.permute.xlu2 %821 }
  0xb5   :  { %7357 = vmatpush.msk.msra.mxu2 %vm65_vm0, %v638_v16  ;;  %7359 = vmatpush.msk.msra.mxu3 %vm65_vm0, %v639_v15  ;;  %v8318_v15 = vperm.slane %v51_v8, 1  ;;  %v8320_v16 = vperm.slane %v51_v8, 0 }
  0xb6   :  { %7358 = vmatmul.msk.f32.vlgmr.msra.gmra.mxu2 %vm93_vm1, %v7356_v14  ;;  %7360 = vmatmul.msk.f32.vlgmr.msra.gmra.mxu3 %vm93_vm1, %v7356_v14 }
  0xb7   :  { %7362 = vmatmul.msk.f32.vlgmr.msrb.gmra.mxu0 %vm93_vm1, %v7356_v14  ;;  %7368 = vmatpush.msk.msrb.mxu3 %vm65_vm0, %v729_v11  ;;  %9826 = vst [vmem:[#allocation7_spill] sm:$0xff] %v8318_v15 }
  0xb8   :  { %9827 = vst [vmem:[#allocation8_spill] sm:$0xff] %v8320_v16 }
  0xbb   :  { %v727_v17 = vpop.permute.xlu1 %726  ;;  %v725_v18 = vpop.permute.xlu0 %724 }
  0xbc   :  { %v732_v20 = vsel %vm9801_vm9, %v727_v17, %v729_v11  ;;  %v731_v21 = vsel %vm9801_vm9, %v725_v18, %v727_v17 }
  0xbd   :  { %7364 = vmatpush.msk.msrb.mxu1 %vm65_vm0, %v731_v21  ;;  %7366 = vmatpush.msk.msrb.mxu2 %vm65_vm0, %v732_v20 }
  0xbe   :  { %7365 = vmatmul.msk.f32.vlgmr.msrb.gmra.mxu1 %vm93_vm1, %v7363_v19  ;;  %7367 = vmatmul.msk.f32.vlgmr.msrb.gmra.mxu2 %vm93_vm1, %v7363_v19 }
  0xbf   :  { %7369 = vmatmul.msk.f32.vlgmr.msrb.gmra.mxu3 %vm93_vm1, %v7363_v19  ;;  %7375 = vmatpush.msk.msra.mxu2 %vm65_vm0, %v822_v22 }
  0xc3   :  { %v820_v23 = vpop.permute.xlu1 %819  ;;  %v818_v24 = vpop.permute.xlu0 %817 }
  0xc4   :  { %v825_v26 = vsel %vm9800_vm10, %v820_v23, %v822_v22  ;;  %v824_v27 = vsel %vm9800_vm10, %v818_v24, %v820_v23 }
  0xc5   :  { %7371 = vmatpush.msk.msra.mxu0 %vm65_vm0, %v824_v27  ;;  %7373 = vmatpush.msk.msra.mxu1 %vm65_vm0, %v825_v26  ;;  %v8326_v26 = vperm.slane %v51_v8, 2 }
  0xc6   :  { %7372 = vmatmul.msk.f32.vlgmr.msra.gmra.mxu0 %vm93_vm1, %v7370_v25  ;;  %7374 = vmatmul.msk.f32.vlgmr.msra.gmra.mxu1 %vm93_vm1, %v7370_v25 }
  0xc7   :  { %7376 = vmatmul.msk.f32.vlgmr.msra.gmra.mxu2 %vm93_vm1, %v7370_v25  ;;  %9828 = vst [vmem:[#allocation9_spill] sm:$0xff] %v8326_v26 }
  0xcb   :  { %v902_v5 = vpop.permute.xlu0 %901 }
 0x106   :  { %v160_v30 = vpop.f32.mrf.mxu2 }
 0x10a   :  { %v120_v28 = vpop.f32.mrf.mxu0 }
 0x10b   :  { %v140_v29 = vpop.f32.mrf.mxu1 }
 0x111   :  { %v204_v33 = vpop.f32.mrf.mxu3 }
 0x112   :  { %v205_v44 = vadd.f32 %v204_v33, %v120_v28 }
 0x113   :  { %v224_v31 = vpop.f32.mrf.mxu0  ;;  %v244_v32 = vpop.f32.mrf.mxu1 }
 0x114   :  { %v225_v45 = vadd.f32 %v224_v31, %v140_v29  ;;  %v245_v52 = vadd.f32 %v244_v32, %v160_v30  ;;  %v8069_v29 = vmov 0.0  }
 0x115   :  { %55 = vst [vmem:[#allocation2] sm:$0xff] %v8069_v29 }
 0x116   :  { %57 = vst [vmem:[#allocation2 + $0x10] sm:$0xff] %v8069_v29 }
 0x117   :  { %60 = vst [vmem:[#allocation3] sm:$0xff] %v8069_v29 }
 0x118   :  { %62 = vst [vmem:[#allocation3 + $0x10] sm:$0xff] %v8069_v29 }
 0x119   :  { %64 = vst [vmem:[%s9781_s11] sm:$0xff] %v8069_v29 }
 0x11a   :  { %v294_v34 = vpop.f32.mrf.mxu2  ;;  %v314_v37 = vpop.f32.mrf.mxu3  ;;  %69 = vst [vmem:[%s9781_s11 + $0x10] sm:$0xff] %v8069_v29 }
 0x11b   :  { %v334_v35 = vpop.f32.mrf.mxu0  ;;  %v387_v36 = vpop.f32.mrf.mxu1  ;;  %v337_v48 = vadd.f32 %v294_v34, %v205_v44  ;;  %v338_v49 = vadd.f32 %v314_v37, %v225_v45  ;;  %59 = vst.msk [vmem:[#allocation2 + $0x18] sm:$0xff] %vm58_vm11, %v8069_v29  ;;  %vm9802_vm11 = vcmask 1039360  }
 0x11c   :  { %v339_v60 = vadd.f32 %v334_v35, %v245_v52  ;;  %v940_v52 = vld [vmem:[%s9773_s3] sm:$0xff] }
 0x11d   :  { %v430_v50 = vadd.f32 %v387_v36, %v337_v48 }
 0x122   :  { %v407_v38 = vpop.f32.mrf.mxu2  ;;  %v427_v41 = vpop.f32.mrf.mxu3  ;;  %v8432_v44 = vld [vmem:[#allocation2 + $0x18] sm:$0xff] }
 0x123   :  { %v480_v39 = vpop.f32.mrf.mxu0  ;;  %v500_v40 = vpop.f32.mrf.mxu1  ;;  %v431_v51 = vadd.f32 %v407_v38, %v338_v49  ;;  %v432_v63 = vadd.f32 %v427_v41, %v339_v60 }
 0x124   :  { %v523_v54 = vadd.f32 %v480_v39, %v430_v50 }
 0x125   :  { %v524_v57 = vadd.f32 %v500_v40, %v431_v51 }
 0x12a   :  { %v520_v42 = vpop.f32.mrf.mxu2 }
 0x12b   :  { %v593_v43 = vpop.f32.mrf.mxu0  ;;  %v525_v1 = vadd.f32 %v520_v42, %v432_v63  ;;  %v7377_v42 = vld [vmem:[%s9773_s3 + $0x8] sm:$0xff] }
 0x12c   :  { %v613_v47 = vpop.f32.mrf.mxu1  ;;  %v617_v61 = vadd.f32 %v593_v43, %v524_v57 }
 0x12d   :  { %v618_v11 = vadd.f32 %v613_v47, %v525_v1 }
 0x131   :  { %v573_v46 = vpop.f32.mrf.mxu3 }
 0x132   :  { %v616_v58 = vadd.f32 %v573_v46, %v523_v54 }
 0x134   :  { %v706_v55 = vpop.f32.mrf.mxu0 }
 0x135   :  { %v711_v17 = vadd.f32 %v706_v55, %v618_v11 }
 0x139   :  { %v666_v53 = vpop.f32.mrf.mxu2  ;;  %v686_v59 = vpop.f32.mrf.mxu3 }
 0x13a   :  { %v709_v62 = vadd.f32 %v666_v53, %v616_v58  ;;  %v710_v0 = vadd.f32 %v686_v59, %v617_v61 }
 0x13b   :  { %v759_v56 = vpop.f32.mrf.mxu1 }
 0x13c   :  { %v802_v3 = vadd.f32 %v759_v56, %v709_v62  ;;  %v1651_v62 = vld [vmem:[%s9774_s4] sm:$0xff] }
 0x141   :  { %v779_v2 = vpop.f32.mrf.mxu2 }
 0x142   :  { %v803_v4 = vadd.f32 %v779_v2, %v710_v0  ;;  %v799_v12 = vpop.f32.mrf.mxu3 }
 0x143   :  { %v852_v6 = vpop.f32.mrf.mxu0  ;;  %v872_v7 = vpop.f32.mrf.mxu1  ;;  %v804_v20 = vadd.f32 %v799_v12, %v711_v17  ;;  %v7388_v12 = vld [vmem:[%s9773_s3 + $0x18] sm:$0xff] }
 0x144   :  { %v895_v9 = vadd.f32 %v852_v6, %v802_v3  ;;  %v896_v10 = vadd.f32 %v872_v7, %v803_v4  ;;  %v7384_v3 = vld [vmem:[%s9773_s3 + $0x10] sm:$0xff] }
 0x146   :  { %v904_v13 = vadd.f32 %v902_v5, %v895_v9  ;;  %v905_v14 = vadd.f32 %v902_v5, %v896_v10  ;;  %v3556_v10 = vld [vmem:[%s9776_s6] sm:$0xff] }
 0x148   :  { %v908_v18 = vmax.f32 %v905_v14, 0.0  ;;  %v907_v19 = vmax.f32 %v904_v13, 0.0 }
 0x14a   :  { %v892_v21 = vpop.f32.mrf.mxu2  ;;  %v918_v22 = vmul.f32 %v8318_v15, %v908_v18  ;;  %v917_v23 = vmul.f32 %v8320_v16, %v907_v19  ;;  %v7392_v18 = vld [vmem:[%s9773_s3 + $0x20] sm:$0xff] }
 0x14b   :  { %v897_v24 = vadd.f32 %v892_v21, %v804_v20 }
 0x14c   :  { %925 = vrot.lane.b32.xlu2 %v918_v22, %s8068_s9  ;;  %923 = vrot.lane.b32.xlu1 %v917_v23, %s8068_s9 }
 0x14d   :  { %v906_v25 = vadd.f32 %v902_v5, %v897_v24 }
 0x14f   :  { %v909_v27 = vmax.f32 %v906_v25, 0.0 }
 0x151   :  { %v919_v28 = vmul.f32 %v8326_v26, %v909_v27 }
 0x154   :  { %927 = vrot.lane.b32.xlu1 %v919_v28, %s8068_s9 }
 0x1a6   :  { %v926_v31 = vpop.permute.xlu2 %925 }
 0x1be   :  { %v924_v30 = vpop.permute.xlu1 %923 }
 0x1bf   :  { %936 = vst.msk [vmem:[#allocation2] sm:$0xff] %vm935_vm12, %v924_v30  ;;  %v8338_v32 = vsel %vm929_vm13, %v924_v30, %v926_v31 }
 0x1c6   :  { %v8340_v33 = vld [vmem:[#allocation2] sm:$0xff]  ;;  %v928_v34 = vpop.permute.xlu1 %927 }
 0x1c7   :  { %v931_v35 = vsel %vm929_vm13, %v926_v31, %v928_v34  ;;  %v8345_v36 = vpack.i.bf16 %v8338_v32, %v8340_v33  ;;  %v7865_v45 = vpack.i.bf16 %v8340_v33, %v8432_v44 }
 0x1c8   :  { %939 = vst.msk [vmem:[#allocation2 + $0x10] sm:$0xff] %vm938_vm14, %v931_v35  ;;  %v7396_v35 = vld [vmem:[%s9773_s3 + $0x28] sm:$0xff] }
 0x1c9   :  { %7766 = vrot.lane.b32.xlu1 %v8345_v36, %s8059_s27  ;;  %7761 = vrot.lane.b32.xlu2 %v8345_v36, %s8058_s10 }
 0x1cf   :  { %v8352_v37 = vld [vmem:[#allocation2 + $0x10] sm:$0xff] }
 0x1d0   :  { %953 = vrot.lane.b32.xlu0 %v8352_v37, %s8058_s10  ;;  %v7775_v38 = vpack.i.bf16 %v8352_v37, %v8338_v32  ;;  %v7860_v46 = vpack.i.bf16 %v8432_v44, %v8352_v37 }
 0x1d1   :  { %1100 = vrot.lane.b32.xlu1 %v8340_v33, %s8060_s30  ;;  %1028 = vrot.lane.b32.xlu2 %v8352_v37, %s8059_s27 }
 0x1d8   :  { %7776 = vrot.lane.b32.xlu0 %v7775_v38, %s8060_s30 }
 0x1d9   :  { %1183 = vrot.lane.b32.xlu1 %v8352_v37, %s8061_s14  ;;  %7771 = vrot.lane.b32.xlu2 %v8345_v36, %s8061_s14 }
 0x1e0   :  { %7781 = vrot.lane.b32.xlu0 %v8345_v36, %s8062_s17 }
 0x1e1   :  { %1341 = vrot.lane.b32.xlu1 %v8352_v37, %s8063_s20  ;;  %1262 = vrot.lane.b32.xlu2 %v8352_v37, %s8062_s17 }
 0x1e8   :  { %7786 = vrot.lane.b32.xlu0 %v8345_v36, %s8063_s20 }
 0x1e9   :  { %7791 = vrot.lane.b32.xlu1 %v8345_v36, %s8065_s26  ;;  %7796 = vrot.lane.b32.xlu2 %v7775_v38, %s8064_s23 }
 0x1f0   :  { %1416 = vrot.lane.b32.xlu0 %v8340_v33, %s8064_s23 }
 0x1f1   :  { %1578 = vrot.lane.b32.xlu1 %v8352_v37, %s8066_s28  ;;  %7801 = vrot.lane.b32.xlu2 %v8345_v36, %s8066_s28 }
 0x1f8   :  { %1499 = vrot.lane.b32.xlu0 %v8352_v37, %s8065_s26 }
 0x1f9   :  { %7811 = vrot.lane.b32.xlu1 %v8345_v36, %s8070_s16  ;;  %7806 = vrot.lane.b32.xlu2 %v8345_v36, %s8071_s18 }
 0x200   :  { %1667 = vrot.lane.b32.xlu0 %v8352_v37, %s8071_s18 }
 0x201   :  { %1887 = vrot.lane.b32.xlu1 %v8352_v37, %s8072_s19  ;;  %7816 = vrot.lane.b32.xlu2 %v8345_v36, %s8072_s19 }
 0x208   :  { %1807 = vrot.lane.b32.xlu0 %v8352_v37, %s8070_s16 }
 0x209   :  { %7826 = vrot.lane.b32.xlu1 %v7775_v38, %s8073_s21  ;;  %7821 = vrot.lane.b32.xlu2 %v8345_v36, %s9798_s22 }
 0x210   :  { %1967 = vrot.lane.b32.xlu0 %v8352_v37, %s9798_s22 }
 0x211   :  { %2327 = vrot.lane.b32.xlu1 %v8340_v33, %s9790_s24  ;;  %2043 = vrot.lane.b32.xlu2 %v8340_v33, %s8073_s21 }
 0x218   :  { %7831 = vrot.lane.b32.xlu0 %v7775_v38, %s9790_s24  ;;  %s7314_s24 = sld [smem:[#allocation4 + $0x2]] }
 0x219   :  { %7841 = vrot.lane.b32.xlu1 %v8345_v36, %s9786_s25  ;;  %7836 = vrot.lane.b32.xlu2 %v8345_v36, %s9782_s29 }
 0x21e   :  { %v8508_v6 = vstv %s7314_s24 }
 0x21f   :  { %9829 = vst [vmem:[#allocation10_spill] sm:$0xff] %v8508_v6  ;;  %v3578_v9 = vmul.f32 %v8508_v6, %v8338_v32  ;;  %v3577_v21 = vmul.f32 %v8508_v6, %v8340_v33  ;;  %v3579_v22 = vmul.f32 %v8508_v6, %v8352_v37 }
 0x220   :  { %2411 = vrot.lane.b32.xlu0 %v8352_v37, %s9782_s29  ;;  %s9796_s29 = smov 48  }
 0x221   :  { %2775 = vrot.lane.b32.xlu1 %v8352_v37, %s9784_s12  ;;  %7846 = vrot.lane.b32.xlu2 %v8345_v36, %s9784_s12  ;;  %s9788_s12 = smov 64  }
 0x223   :  { %v7762_v39 = vpop.permute.xlu2 %7761 }
 0x224   :  { %v7764_v40 = vunpack.i.h.bf16 %v7762_v39  ;;  %v7763_v41 = vunpack.i.l.bf16 %v7762_v39 }
 0x226   :  { %v8422_v43 = vsel %vm90_vm2, %v7763_v41, %v7764_v40 }
 0x227   :  { %979 = vmatpush.msra.mxu3 %v8422_v43 }
 0x228   :  { %2695 = vrot.lane.b32.xlu0 %v8352_v37, %s9786_s25  ;;  %7378 = vmatmul.msk.f32.vlgmr.msra.gmra.mxu3 %vm960_vm15, %v7377_v42  ;;  %s9794_s25 = smov 46  }
 0x229   :  { %7856 = vrot.lane.b32.xlu1 %v8345_v36, %s9796_s29  ;;  %7851 = vrot.lane.b32.xlu2 %v8345_v36, %s9788_s12 }
 0x22b   :  { %v8442_v47 = vpop.permute.xlu2 %1028 }
 0x230   :  { %3059 = vrot.lane.b32.xlu0 %v8352_v37, %s9788_s12  ;;  %s9898_s12 = smov 44  }
 0x231   :  { %7866 = vrot.lane.b32.xlu1 %v7865_v45, %s9792_s13  ;;  %7861 = vrot.lane.b32.xlu2 %v7860_v46, %s9796_s29  ;;  %s7313_s29 = sld [smem:[#allocation4 + $0x1]] }
 0x233   :  { %v7772_v49 = vpop.permute.xlu2 %7771 }
 0x234   :  { %v7774_v55 = vunpack.i.h.bf16 %v7772_v49  ;;  %v7773_v56 = vunpack.i.l.bf16 %v7772_v49 }
 0x236   :  { %v8482_v61 = vsel %vm358_vm5, %v7773_v56, %v7774_v55 }
 0x238   :  { %7881 = vrot.lane.b32.xlu0 %v7775_v38, %s9792_s13  ;;  %s9822_s13 = smov 44  }
 0x239   :  { %7876 = vrot.lane.b32.xlu1 %v8345_v36, %s8082_s15  ;;  %7871 = vrot.lane.b32.xlu2 %v8345_v36, %s9794_s25 }
 0x23b   :  { %v7767_v48 = vpop.permute.xlu1 %7766  ;;  %v8478_v60 = vpop.permute.xlu2 %1262 }
 0x23c   :  { %v7769_v50 = vunpack.i.h.bf16 %v7767_v48  ;;  %v7768_v51 = vunpack.i.l.bf16 %v7767_v48 }
 0x23e   :  { %v8453_v53 = vsel %vm175_vm3, %v7768_v51, %v7769_v50  ;;  %v8457_v54 = vsel %vm175_vm3, %v7769_v50, %v8442_v47  ;;  %v7400_v51 = vld [vmem:[%s9773_s3 + $0x30] sm:$0xff] }
 0x23f   :  { %1053 = vmatpush.msrb.mxu2 %v8453_v53  ;;  %1073 = vmatpush.msrb.mxu3 %v8457_v54 }
 0x240   :  { %7886 = vrot.lane.b32.xlu0 %v7860_v46, %s9794_s25  ;;  %7381 = vmatmul.msk.f32.vlgmr.msrb.gmra.mxu2 %vm960_vm15, %v940_v52  ;;  %s8939_s25 = sld [smem:[#allocation4]] }
 0x241   :  { %3479 = vrot.lane.b32.xlu1 %v8352_v37, %s9822_s13  ;;  %3396 = vrot.lane.b32.xlu2 %v8352_v37, %s8082_s15 }
 0x242   :  { %v8467_v57 = vpop.permute.xlu0 %953  ;;  %7382 = vmatmul.msk.f32.vlgmr.msrb.gmra.mxu3 %vm960_vm15, %v940_v52 }
 0x243   :  { %1019 = vmatpush.msrb.mxu1 %v8467_v57  ;;  %v8473_v58 = vsel %vm90_vm2, %v7764_v40, %v8467_v57  ;;  %v1101_v59 = vpop.permute.xlu1 %1100  ;;  %v7797_v8 = vpop.permute.xlu2 %7796 }
 0x244   :  { %999 = vmatpush.msrb.mxu0 %v8473_v58  ;;  %7380 = vmatmul.msk.f32.vlgmr.msrb.gmra.mxu1 %vm960_vm15, %v7377_v42  ;;  %v8558_v29 = vunpack.i.h.bf16 %v7797_v8  ;;  %v7798_v30 = vunpack.i.l.bf16 %v7797_v8 }
 0x245   :  { %7379 = vmatmul.msk.f32.vlgmr.msrb.gmra.mxu0 %vm960_vm15, %v7377_v42 }
 0x246   :  { %1093 = vmatpush.msra.mxu0 %v8442_v47  ;;  %v8581_v42 = vsel %vm637_vm8, %v7798_v30, %v8558_v29 }
 0x248   :  { %1208 = vmatpush.msrb.mxu0 %v8482_v61  ;;  %7891 = vrot.lane.b32.xlu0 %v8345_v36, %s9822_s13 }
 0x249   :  { %1654 = vperm.xlu1 %7895, %v1651_v62   ;;  %3398 = vrot.lane.b32.xlu2 %v8432_v44, %s8082_s15 }
 0x24a   :  { %v7777_v63 = vpop.permute.xlu0 %7776 }
 0x24b   :  { %v8492_v0 = vunpack.i.h.bf16 %v7777_v63  ;;  %v7778_v1 = vunpack.i.l.bf16 %v7777_v63  ;;  %v8494_v2 = vpop.permute.xlu1 %1183  ;;  %v7802_v23 = vpop.permute.xlu2 %7801 }
 0x24c   :  { %v8516_v7 = vsel %vm358_vm5, %v7774_v55, %v8494_v2  ;;  %v7804_v36 = vunpack.i.h.bf16 %v7802_v23  ;;  %v7803_v38 = vunpack.i.l.bf16 %v7802_v23 }
 0x24d   :  { %7383 = vmatmul.msk.f32.vlgmr.msra.gmra.mxu0 %vm960_vm15, %v940_v52  ;;  %1169 = vmatpush.msra.mxu3 %v8492_v0  ;;  %v8502_v4 = vsel %vm265_vm4, %v1101_v59, %v7778_v1  ;;  %v8506_v5 = vsel %vm265_vm4, %v7778_v1, %v8492_v0  ;;  %v7404_v59 = vld [vmem:[%s9773_s3 + $0x38] sm:$0xff] }
 0x24e   :  { %1129 = vmatpush.msra.mxu1 %v8502_v4  ;;  %1149 = vmatpush.msra.mxu2 %v8506_v5 }
 0x24f   :  { %7387 = vmatmul.msk.f32.vlgmr.msra.gmra.mxu3 %vm960_vm15, %v7384_v3  ;;  %7385 = vmatmul.msk.f32.vlgmr.msra.gmra.mxu1 %vm960_vm15, %v7384_v3 }
 0x250   :  { %7386 = vmatmul.msk.f32.vlgmr.msra.gmra.mxu2 %vm960_vm15, %v7384_v3  ;;  %1228 = vmatpush.msrb.mxu1 %v8516_v7  ;;  %v7408_v3 = vld [vmem:[%s9773_s3 + $0x40] sm:$0xff] }
 0x251   :  { %1248 = vmatpush.msrb.mxu2 %v8494_v2  ;;  %3481 = vrot.lane.b32.xlu0 %v8432_v44, %s9822_s13  ;;  %v8587_v44 = vsel %vm9800_vm10, %v7803_v38, %v7804_v36 }
 0x252   :  { %1327 = vmatpush.msra.mxu1 %v8478_v60  ;;  %3585 = vrot.lane.b32.xlu1 %v3578_v9, %s8062_s17  ;;  %v7782_v11 = vpop.permute.xlu0 %7781 }
 0x253   :  { %3559 = vperm.xlu2 %7896, %v3556_v10   ;;  %v7784_v13 = vunpack.i.h.bf16 %v7782_v11  ;;  %v7783_v14 = vunpack.i.l.bf16 %v7782_v11  ;;  %v8533_v17 = vpop.permute.xlu1 %1341  ;;  %v7807_v49 = vpop.permute.xlu2 %7806 }
 0x254   :  { %v7809_v52 = vunpack.i.h.bf16 %v7807_v49  ;;  %v7808_v55 = vunpack.i.l.bf16 %v7807_v49  ;;  %v7423_v49 = vld [vmem:[%s9775_s5 + $0x18] sm:$0xff] }
 0x255   :  { %7389 = vmatmul.msk.f32.vlgmr.msrb.gmra.mxu0 %vm960_vm15, %v7388_v12  ;;  %v8540_v19 = vsel %vm451_vm6, %v7783_v14, %v7784_v13  ;;  %v8544_v20 = vsel %vm451_vm6, %v7784_v13, %v8478_v60 }
 0x256   :  { %1287 = vmatpush.msrb.mxu3 %v8540_v19  ;;  %1307 = vmatpush.msra.mxu0 %v8544_v20  ;;  %v1670_v63 = vsel %vm9802_vm11, %v7808_v55, %v7809_v52 }
 0x257   :  { %7390 = vmatmul.msk.f32.vlgmr.msrb.gmra.mxu1 %vm960_vm15, %v7388_v12  ;;  %7393 = vmatmul.msk.f32.vlgmr.msrb.gmra.mxu3 %vm960_vm15, %v7392_v18 }
 0x258   :  { %7391 = vmatmul.msk.f32.vlgmr.msrb.gmra.mxu2 %vm960_vm15, %v7388_v12  ;;  %1406 = vmatpush.msrb.mxu0 %v8533_v17 }
 0x259   :  { %3583 = vrot.lane.b32.xlu0 %v3577_v21, %s8062_s17 }
 0x25a   :  { %v7787_v24 = vpop.permute.xlu0 %7786 }
 0x25b   :  { %v7789_v25 = vunpack.i.h.bf16 %v7787_v24  ;;  %v7788_v27 = vunpack.i.l.bf16 %v7787_v24  ;;  %3587 = vrot.lane.b32.xlu2 %v3579_v22, %s8062_s17  ;;  %v7792_v28 = vpop.permute.xlu1 %7791  ;;  %v7817_v8 = vpop.permute.xlu2 %7816 }
 0x25c   :  { %v7794_v31 = vunpack.i.h.bf16 %v7792_v28  ;;  %v7793_v34 = vunpack.i.l.bf16 %v7792_v28  ;;  %v7819_v12 = vunpack.i.h.bf16 %v7817_v8  ;;  %v7818_v13 = vunpack.i.l.bf16 %v7817_v8 }
 0x25d   :  { %7394 = vmatmul.msk.f32.vlgmr.msra.gmra.mxu0 %vm960_vm15, %v7392_v18  ;;  %v8565_v39 = vsel %vm544_vm7, %v7788_v27, %v7789_v25  ;;  %v8569_v40 = vsel %vm544_vm7, %v7789_v25, %v8533_v17  ;;  %v1660_v27 = vld [vmem:[%s9775_s5] sm:$0xff] }
 0x25e   :  { %1366 = vmatpush.msra.mxu2 %v8565_v39  ;;  %1386 = vmatpush.msra.mxu3 %v8569_v40  ;;  %v8574_v41 = vsel %vm9801_vm9, %v7793_v34, %v7794_v31 }
 0x25f   :  { %7395 = vmatmul.msk.f32.vlgmr.msra.gmra.mxu1 %vm960_vm15, %v7392_v18  ;;  %7398 = vmatmul.msk.f32.vlgmr.msra.gmra.mxu3 %vm960_vm15, %v7396_v35  ;;  %v7412_v18 = vld [vmem:[%s9775_s5 + $0x8] sm:$0xff] }
 0x260   :  { %7397 = vmatmul.msk.f32.vlgmr.msra.gmra.mxu2 %vm960_vm15, %v7396_v35  ;;  %1485 = vmatpush.msrb.mxu3 %v8558_v29 }
 0x261   :  { %1465 = vmatpush.msrb.mxu2 %v8581_v42  ;;  %1524 = vmatpush.msra.mxu0 %v8574_v41 }
 0x262   :  { %1603 = vmatpush.msra.mxu3 %v8587_v44  ;;  %v1417_v45 = vpop.permute.xlu0 %1416 }
 0x263   :  { %v8591_v46 = vsel %vm637_vm8, %v1417_v45, %v7798_v30  ;;  %v8593_v48 = vpop.permute.xlu1 %1578  ;;  %v7822_v22 = vpop.permute.xlu2 %7821 }
 0x264   :  { %1445 = vmatpush.msrb.mxu1 %v8591_v46  ;;  %v8598_v50 = vsel %vm9800_vm10, %v7804_v36, %v8593_v48  ;;  %vm1809_vm10 = vcmask 1031168   ;;  %v7824_v25 = vunpack.i.h.bf16 %v7822_v22 }
 0x265   :  { %7399 = vmatmul.msk.f32.vlgmr.msrb.gmra.mxu0 %vm960_vm15, %v7396_v35  ;;  %v7419_v35 = vld [vmem:[%s9775_s5 + $0x10] sm:$0xff] }
 0x266   :  { %1623 = vmatpush.msrb.mxu0 %v8598_v50 }
 0x267   :  { %7401 = vmatmul.msk.f32.vlgmr.msrb.gmra.mxu1 %vm960_vm15, %v7400_v51  ;;  %7403 = vmatmul.msk.f32.vlgmr.msrb.gmra.mxu3 %vm960_vm15, %v7400_v51 }
 0x268   :  { %7402 = vmatmul.msk.f32.vlgmr.msrb.gmra.mxu2 %vm960_vm15, %v7400_v51 }
 0x26a   :  { %v8608_v56 = vpop.permute.xlu0 %1499 }
 0x26b   :  { %1564 = vmatpush.msra.mxu2 %v8608_v56  ;;  %v8616_v62 = vsel %vm9801_vm9, %v7794_v31, %v8608_v56  ;;  %v7812_v1 = vpop.permute.xlu1 %7811  ;;  %vm9803_vm9 = vcmask 1022976   ;;  %v2044_v51 = vpop.permute.xlu2 %2043 }
 0x26c   :  { %1544 = vmatpush.msra.mxu1 %v8616_v62  ;;  %v7814_v9 = vunpack.i.h.bf16 %v7812_v1  ;;  %v7813_v10 = vunpack.i.l.bf16 %v7812_v1  ;;  %v1890_v21 = vsel %vm9803_vm9, %v7818_v13, %v7819_v12 }
 0x26d   :  { %1693 = vmatpush.msrb.mxu2 %v1670_v63  ;;  %7405 = vmatmul.msk.f32.vlgmr.msra.gmra.mxu0 %vm960_vm15, %v7404_v59  ;;  %v7431_v63 = vld [vmem:[%s9775_s5 + $0x28] sm:$0xff] }
 0x26e   :  { %1643 = vmatpush.msrb.mxu1 %v8593_v48 }
 0x26f   :  { %7406 = vmatmul.msk.f32.vlgmr.msra.gmra.mxu1 %vm960_vm15, %v7404_v59  ;;  %7409 = vmatmul.msk.f32.vlgmr.msra.gmra.mxu3 %vm960_vm15, %v7408_v3 }
 0x270   :  { %7407 = vmatmul.msk.f32.vlgmr.msra.gmra.mxu2 %vm960_vm15, %v7404_v59  ;;  %1756 = vmatpush.msra.mxu1 %v8340_v33  ;;  %v1810_v33 = vsel %vm1809_vm10, %v7813_v10, %v7814_v9  ;;  %v7427_v59 = vld [vmem:[%s9775_s5 + $0x20] sm:$0xff] }
 0x271   :  { %1776 = vmatpush.msra.mxu2 %v8338_v32 }
 0x272   :  { %v1668_v11 = vpop.permute.xlu0 %1667 }
 0x273   :  { %v1671_v14 = vsel %vm9802_vm11, %v7809_v52, %v1668_v11  ;;  %1733 = vmatpush.msra.mxu0 %v1668_v11  ;;  %v1888_v32 = vpop.permute.xlu1 %1887  ;;  %vm9805_vm11 = vcmask 1014784   ;;  %v7837_v1 = vpop.permute.xlu2 %7836 }
 0x274   :  { %1713 = vmatpush.msrb.mxu3 %v1671_v14  ;;  %v1891_v28 = vsel %vm9803_vm9, %v7819_v12, %v1888_v32  ;;  %vm9804_vm9 = vcmask 883712   ;;  %v7838_v8 = vunpack.i.l.bf16 %v7837_v1  ;;  %v7447_v12 = vld [vmem:[%s9775_s5 + $0x48] sm:$0xff] }
 0x275   :  { %7410 = vmatmul.msk.f32.vlgmr.msrb.gmra.mxu0 %vm960_vm15, %v7408_v3 }
 0x276   :  { %1796 = vmatpush.msra.mxu3 %v8352_v37  ;;  %1833 = vmatpush.msrb.mxu0 %v1810_v33  ;;  %v7823_v37 = vunpack.i.l.bf16 %v7822_v22 }
 0x277   :  { %7411 = vmatmul.msk.f32.vlgmr.msrb.gmra.mxu1 %vm960_vm15, %v7408_v3  ;;  %7414 = vmatmul.msk.f32.vlgmr.msrb.gmra.mxu3 %vm960_vm15, %v7412_v18 }
 0x278   :  { %7413 = vmatmul.msk.f32.vlgmr.msrb.gmra.mxu2 %vm960_vm15, %v7412_v18  ;;  %1913 = vmatpush.msrb.mxu3 %v1890_v21  ;;  %v1970_v31 = vsel %vm9805_vm11, %v7823_v37, %v7824_v25 }
 0x27a   :  { %v1808_v23 = vpop.permute.xlu0 %1807 }
 0x27b   :  { %v1811_v24 = vsel %vm1809_vm10, %v7814_v9, %v1808_v23  ;;  %1873 = vmatpush.msrb.mxu2 %v1808_v23  ;;  %v7827_v30 = vpop.permute.xlu1 %7826 }
 0x27c   :  { %1853 = vmatpush.msrb.mxu1 %v1811_v24  ;;  %v7828_v36 = vunpack.i.l.bf16 %v7827_v30  ;;  %v7829_v45 = vunpack.i.h.bf16 %v7827_v30  ;;  %v7463_v24 = vld [vmem:[%s9775_s5 + $0x68] sm:$0xff] }
 0x27d   :  { %7415 = vmatmul.msk.f32.vlgmr.msra.gmra.mxu0 %vm960_vm15, %v7412_v18 }
 0x27e   :  { %1933 = vmatpush.msra.mxu0 %v1891_v28  ;;  %v2050_v52 = vsel %vm9804_vm9, %v2044_v51, %v7828_v36  ;;  %v2051_v55 = vsel %vm9804_vm9, %v7828_v36, %v7829_v45  ;;  %vm9807_vm9 = vcmask 850944   ;;  %v7467_v28 = vld [vmem:[%s9775_s5 + $0x70] sm:$0xff]  ;;  %v7475_v51 = vld [vmem:[%s9775_s5 + $0x80] sm:$0xff] }
 0x27f   :  { %7416 = vmatmul.msk.f32.vlgmr.msra.gmra.mxu1 %vm960_vm15, %v1660_v27  ;;  %7418 = vmatmul.msk.f32.vlgmr.msra.gmra.mxu3 %vm960_vm15, %v1660_v27 }
 0x280   :  { %7417 = vmatmul.msk.f32.vlgmr.msra.gmra.mxu2 %vm960_vm15, %v1660_v27  ;;  %1953 = vmatpush.msra.mxu1 %v1888_v32 }
 0x281   :  { %1993 = vmatpush.msra.mxu2 %v1970_v31 }
 0x282   :  { %v1968_v34 = vpop.permute.xlu0 %1967 }
 0x283   :  { %v1971_v38 = vsel %vm9805_vm11, %v7824_v25, %v1968_v34  ;;  %v2328_v3 = vpop.permute.xlu1 %2327  ;;  %vm9806_vm11 = vcmask 719872  }
 0x284   :  { %2013 = vmatpush.msra.mxu3 %v1971_v38 }
 0x285   :  { %7420 = vmatmul.msk.f32.vlgmr.msrb.gmra.mxu0 %vm960_vm15, %v7419_v35 }
 0x286   :  { %2033 = vmatpush.msrb.mxu0 %v1968_v34 }
 0x287   :  { %7421 = vmatmul.msk.f32.vlgmr.msrb.gmra.mxu1 %vm960_vm15, %v7419_v35  ;;  %7424 = vmatmul.msk.f32.vlgmr.msrb.gmra.mxu3 %vm960_vm15, %v7423_v49 }
 0x288   :  { %7422 = vmatmul.msk.f32.vlgmr.msrb.gmra.mxu2 %vm960_vm15, %v7419_v35  ;;  %2073 = vmatpush.msrb.mxu1 %v2050_v52  ;;  %v7471_v35 = vld [vmem:[%s9775_s5 + $0x78] sm:$0xff] }
 0x289   :  { %2093 = vmatpush.msrb.mxu2 %v2051_v55  ;;  %2113 = vmatpush.msrb.mxu3 %v7829_v45 }
 0x28b   :  { %v7842_v13 = vpop.permute.xlu1 %7841 }
 0x28d   :  { %7425 = vmatmul.msk.f32.vlgmr.msra.gmra.mxu0 %vm960_vm15, %v7423_v49 }
 0x28e   :  { %2141 = vmatpush.msra.mxu0 %v8453_v53  ;;  %v7832_v53 = vpop.permute.xlu0 %7831 }
 0x28f   :  { %7426 = vmatmul.msk.f32.vlgmr.msra.gmra.mxu1 %vm960_vm15, %v7423_v49  ;;  %7429 = vmatmul.msk.f32.vlgmr.msra.gmra.mxu3 %vm960_vm15, %v7427_v59 }
 0x290   :  { %7428 = vmatmul.msk.f32.vlgmr.msra.gmra.mxu2 %vm960_vm15, %v7427_v59  ;;  %2161 = vmatpush.msra.mxu1 %v8457_v54  ;;  %v7834_v54 = vunpack.i.h.bf16 %v7832_v53 }
 0x291   :  { %2181 = vmatpush.msra.mxu2 %v8442_v47  ;;  %2209 = vmatpush.msra.mxu3 %v8422_v43  ;;  %v7435_v43 = vld [vmem:[%s9775_s5 + $0x30] sm:$0xff]  ;;  %v7833_v47 = vunpack.i.l.bf16 %v7832_v53 }
 0x293   :  { %v2776_v21 = vpop.permute.xlu1 %2775 }
 0x295   :  { %7430 = vmatmul.msk.f32.vlgmr.msrb.gmra.mxu0 %vm960_vm15, %v7427_v59 }
 0x296   :  { %2229 = vmatpush.msrb.mxu0 %v8473_v58  ;;  %v7439_v58 = vld [vmem:[%s9775_s5 + $0x38] sm:$0xff]  ;;  %v2412_v9 = vpop.permute.xlu0 %2411 }
 0x297   :  { %7432 = vmatmul.msk.f32.vlgmr.msrb.gmra.mxu1 %vm960_vm15, %v7431_v63  ;;  %7434 = vmatmul.msk.f32.vlgmr.msrb.gmra.mxu3 %vm960_vm15, %v7431_v63 }
 0x298   :  { %7433 = vmatmul.msk.f32.vlgmr.msrb.gmra.mxu2 %vm960_vm15, %v7431_v63  ;;  %2249 = vmatpush.msrb.mxu1 %v8467_v57  ;;  %v2334_v57 = vsel %vm9807_vm9, %v2328_v3, %v7833_v47 }
 0x299   :  { %2277 = vmatpush.msrb.mxu2 %v8502_v4  ;;  %2297 = vmatpush.msrb.mxu3 %v8506_v5  ;;  %v2335_v4 = vsel %vm9807_vm9, %v7833_v47, %v7834_v54  ;;  %v7839_v5 = vunpack.i.h.bf16 %v7837_v1  ;;  %vm9808_vm9 = vcmask 556032  }
 0x29b   :  { %v2414_v10 = vsel %vm9806_vm11, %v7838_v8, %v7839_v5  ;;  %v2415_v11 = vsel %vm9806_vm11, %v7839_v5, %v2412_v9  ;;  %vm9809_vm11 = vcmask 687104   ;;  %v7857_v52 = vpop.permute.xlu1 %7856  ;;  %v7483_v8 = vld [vmem:[%s9775_s5 + $0x90] sm:$0xff] }
 0x29c   :  { %v7858_v53 = vunpack.i.l.bf16 %v7857_v52 }
 0x29d   :  { %7436 = vmatmul.msk.f32.vlgmr.msra.gmra.mxu0 %vm960_vm15, %v7435_v43 }
 0x29e   :  { %2317 = vmatpush.msra.mxu0 %v8492_v0  ;;  %v7443_v0 = vld [vmem:[%s9775_s5 + $0x40] sm:$0xff]  ;;  %v2696_v33 = vpop.permute.xlu0 %2695 }
 0x29f   :  { %7437 = vmatmul.msk.f32.vlgmr.msra.gmra.mxu1 %vm960_vm15, %v7435_v43  ;;  %7440 = vmatmul.msk.f32.vlgmr.msra.gmra.mxu3 %vm960_vm15, %v7439_v58 }
 0x2a0   :  { %7438 = vmatmul.msk.f32.vlgmr.msra.gmra.mxu2 %vm960_vm15, %v7435_v43  ;;  %2357 = vmatpush.msra.mxu1 %v2334_v57 }
 0x2a1   :  { %2377 = vmatpush.msra.mxu2 %v2335_v4  ;;  %2397 = vmatpush.msra.mxu3 %v7834_v54 }
 0x2a5   :  { %7441 = vmatmul.msk.f32.vlgmr.msrb.gmra.mxu0 %vm960_vm15, %v7439_v58 }
 0x2a6   :  { %2437 = vmatpush.msrb.mxu0 %v2414_v10 }
 0x2a7   :  { %7442 = vmatmul.msk.f32.vlgmr.msrb.gmra.mxu1 %vm960_vm15, %v7439_v58  ;;  %7445 = vmatmul.msk.f32.vlgmr.msrb.gmra.mxu3 %vm960_vm15, %v7443_v0  ;;  %v7867_v58 = vpop.permute.xlu1 %7866 }
 0x2a8   :  { %7444 = vmatmul.msk.f32.vlgmr.msrb.gmra.mxu2 %vm960_vm15, %v7443_v0  ;;  %2457 = vmatpush.msrb.mxu1 %v2415_v11 }
 0x2a9   :  { %2477 = vmatpush.msrb.mxu2 %v2412_v9  ;;  %2505 = vmatpush.msrb.mxu3 %v8482_v61  ;;  %v7451_v61 = vld [vmem:[%s9775_s5 + $0x50] sm:$0xff] }
 0x2ab   :  { %v8739_v32 = vpop.f32.mrf.mxu3 }
 0x2ac   :  { %9830 = vst [vmem:[#allocation11_spill] sm:$0xff] %v8739_v32 }
 0x2ad   :  { %7446 = vmatmul.msk.f32.vlgmr.msra.gmra.mxu0 %vm960_vm15, %v7443_v0 }
 0x2ae   :  { %2525 = vmatpush.msra.mxu0 %v8516_v7  ;;  %v7455_v7 = vld [vmem:[%s9775_s5 + $0x58] sm:$0xff] }
 0x2af   :  { %7448 = vmatmul.msk.f32.vlgmr.msra.gmra.mxu1 %vm960_vm15, %v7447_v12  ;;  %7450 = vmatmul.msk.f32.vlgmr.msra.gmra.mxu3 %vm960_vm15, %v7447_v12 }
 0x2b0   :  { %7449 = vmatmul.msk.f32.vlgmr.msra.gmra.mxu2 %vm960_vm15, %v7447_v12  ;;  %2545 = vmatpush.msra.mxu1 %v8494_v2  ;;  %v7847_v2 = vpop.permute.xlu2 %7846  ;;  %v7487_v12 = vld [vmem:[%s9775_s5 + $0x98] sm:$0xff] }
 0x2b1   :  { %2573 = vmatpush.msra.mxu2 %v8540_v19  ;;  %2593 = vmatpush.msra.mxu3 %v8544_v20  ;;  %v7844_v19 = vunpack.i.h.bf16 %v7842_v13  ;;  %v7843_v20 = vunpack.i.l.bf16 %v7842_v13  ;;  %v7849_v14 = vunpack.i.h.bf16 %v7847_v2  ;;  %v7848_v18 = vunpack.i.l.bf16 %v7847_v2 }
 0x2b2   :  { %v7868_v2 = vunpack.i.l.bf16 %v7867_v58 }
 0x2b3   :  { %v2779_v25 = vsel %vm9808_vm9, %v7849_v14, %v2776_v21 }
 0x2b5   :  { %7452 = vmatmul.msk.f32.vlgmr.msrb.gmra.mxu0 %vm960_vm15, %v7451_v61 }
 0x2b6   :  { %2613 = vmatpush.msrb.mxu0 %v8478_v60  ;;  %v7459_v60 = vld [vmem:[%s9775_s5 + $0x60] sm:$0xff] }
 0x2b7   :  { %7453 = vmatmul.msk.f32.vlgmr.msrb.gmra.mxu1 %vm960_vm15, %v7451_v61  ;;  %7456 = vmatmul.msk.f32.vlgmr.msrb.gmra.mxu3 %vm960_vm15, %v7455_v7 }
 0x2b8   :  { %7454 = vmatmul.msk.f32.vlgmr.msrb.gmra.mxu2 %vm960_vm15, %v7451_v61  ;;  %2641 = vmatpush.msrb.mxu1 %v8565_v39  ;;  %v2698_v39 = vsel %vm9809_vm11, %v7843_v20, %v7844_v19  ;;  %v7852_v30 = vpop.permute.xlu2 %7851  ;;  %v7869_v61 = vunpack.i.h.bf16 %v7867_v58 }
 0x2b9   :  { %2661 = vmatpush.msrb.mxu2 %v8569_v40  ;;  %2681 = vmatpush.msrb.mxu3 %v8533_v17  ;;  %v2699_v40 = vsel %vm9809_vm11, %v7844_v19, %v2696_v33  ;;  %v2778_v17 = vsel %vm9808_vm9, %v7848_v18, %v7849_v14  ;;  %v7853_v45 = vunpack.i.l.bf16 %v7852_v30  ;;  %vm9810_vm9 = vcmask 523264  }
 0x2ba   :  { %vm9811_vm11 = vcmask 392192  }
 0x2bd   :  { %7457 = vmatmul.msk.f32.vlgmr.msra.gmra.mxu0 %vm960_vm15, %v7455_v7 }
 0x2be   :  { %2721 = vmatpush.msra.mxu0 %v2698_v39  ;;  %v7877_v39 = vpop.permute.xlu1 %7876 }
 0x2bf   :  { %7458 = vmatmul.msk.f32.vlgmr.msra.gmra.mxu1 %vm960_vm15, %v7455_v7  ;;  %7461 = vmatmul.msk.f32.vlgmr.msra.gmra.mxu3 %vm960_vm15, %v7459_v60 }
 0x2c0   :  { %7460 = vmatmul.msk.f32.vlgmr.msra.gmra.mxu2 %vm960_vm15, %v7459_v60  ;;  %2741 = vmatpush.msra.mxu1 %v2699_v40 }
 0x2c1   :  { %2761 = vmatpush.msra.mxu2 %v2696_v33  ;;  %2801 = vmatpush.msra.mxu3 %v2778_v17  ;;  %v8748_v23 = vpop.f32.mrf.mxu1 }
 0x2c2   :  { %v8746_v22 = vpop.f32.mrf.mxu0 }
 0x2c3   :  { %9831 = vst [vmem:[#allocation12_spill] sm:$0xff] %v8746_v22  ;;  %v8767_v31 = vpop.f32.mrf.mxu2 }
 0x2c4   :  { %9833 = vst [vmem:[#allocation14_spill] sm:$0xff] %v8767_v31 }
 0x2c5   :  { %7462 = vmatmul.msk.f32.vlgmr.msrb.gmra.mxu0 %vm960_vm15, %v7459_v60  ;;  %v8758_v37 = vpop.f32.mrf.mxu3 }
 0x2c6   :  { %2821 = vmatpush.msrb.mxu0 %v2779_v25  ;;  %9832 = vst [vmem:[#allocation13_spill] sm:$0xff] %v8758_v37  ;;  %v7879_v25 = vunpack.i.h.bf16 %v7877_v39 }
 0x2c7   :  { %7464 = vmatmul.msk.f32.vlgmr.msrb.gmra.mxu1 %vm960_vm15, %v7463_v24  ;;  %7466 = vmatmul.msk.f32.vlgmr.msrb.gmra.mxu3 %vm960_vm15, %v7463_v24 }
 0x2c8   :  { %7465 = vmatmul.msk.f32.vlgmr.msrb.gmra.mxu2 %vm960_vm15, %v7463_v24  ;;  %2841 = vmatpush.msrb.mxu1 %v2776_v21 }
 0x2c9   :  { %2869 = vmatpush.msrb.mxu2 %v8591_v46  ;;  %2889 = vmatpush.msrb.mxu3 %v8581_v42  ;;  %v3060_v42 = vpop.permute.xlu0 %3059 }
 0x2ca   :  { %v8762_v27 = vpop.f32.mrf.mxu0 }
 0x2cc   :  { %v8769_v34 = vpop.f32.mrf.mxu1 }
 0x2cd   :  { %9834 = vst [vmem:[#allocation15_spill] sm:$0xff] %v8769_v34  ;;  %7468 = vmatmul.msk.f32.vlgmr.msra.gmra.mxu0 %vm960_vm15, %v7467_v28 }
 0x2ce   :  { %2909 = vmatpush.msra.mxu0 %v8558_v29  ;;  %v7854_v29 = vunpack.i.h.bf16 %v7852_v30 }
 0x2cf   :  { %7469 = vmatmul.msk.f32.vlgmr.msra.gmra.mxu1 %vm960_vm15, %v7467_v28  ;;  %7472 = vmatmul.msk.f32.vlgmr.msra.gmra.mxu3 %vm960_vm15, %v7471_v35 }
 0x2d0   :  { %7470 = vmatmul.msk.f32.vlgmr.msra.gmra.mxu2 %vm960_vm15, %v7467_v28  ;;  %2937 = vmatpush.msra.mxu1 %v8574_v41  ;;  %v7862_v41 = vpop.permute.xlu2 %7861  ;;  %v3063_v47 = vsel %vm9810_vm9, %v7854_v29, %v3060_v42  ;;  %v7878_v28 = vunpack.i.l.bf16 %v7877_v39 }
 0x2d1   :  { %2957 = vmatpush.msra.mxu2 %v8616_v62  ;;  %2977 = vmatpush.msra.mxu3 %v8608_v56  ;;  %v3062_v56 = vsel %vm9810_vm9, %v7853_v45, %v7854_v29  ;;  %v7882_v59 = vpop.permute.xlu0 %7881  ;;  %v7864_v57 = vunpack.i.h.bf16 %v7862_v41  ;;  %vm9812_vm9 = vcmask 384000  }
 0x2d2   :  { %v8782_v46 = vpop.f32.mrf.mxu3  ;;  %v8784_v36 = vpop.f32.mrf.mxu0  ;;  %v7883_v9 = vunpack.i.l.bf16 %v7882_v59  ;;  %v7884_v10 = vunpack.i.h.bf16 %v7882_v59 }
 0x2d3   :  { %9835 = vst [vmem:[#allocation16_spill] sm:$0xff] %v8782_v46  ;;  %v8786_v38 = vpop.f32.mrf.mxu2 }
 0x2d4   :  { %9836 = vst [vmem:[#allocation17_spill] sm:$0xff] %v8784_v36  ;;  %v8788_v49 = vpop.f32.mrf.mxu1  ;;  %v3235_v19 = vsel %vm9812_vm9, %v7869_v61, %v7883_v9  ;;  %v3236_v20 = vsel %vm9812_vm9, %v7883_v9, %v7884_v10  ;;  %v3237_v14 = vsel %vm9812_vm9, %v7884_v10, %v7868_v2  ;;  %vm9825_vm9 = vcmask 367616   ;;  %v7499_v61 = vld [vmem:[%s9775_s5 + $0xb0] sm:$0xff]  ;;  %v7503_v2 = vld [vmem:[%s9775_s5 + $0xb8] sm:$0xff] }
 0x2d5   :  { %9837 = vst [vmem:[#allocation18_spill] sm:$0xff] %v8786_v38  ;;  %7473 = vmatmul.msk.f32.vlgmr.msrb.gmra.mxu0 %vm960_vm15, %v7471_v35 }
 0x2d6   :  { %9838 = vst [vmem:[#allocation19_spill] sm:$0xff] %v8788_v49  ;;  %3005 = vmatpush.msrb.mxu0 %v8587_v44  ;;  %v7859_v44 = vunpack.i.h.bf16 %v7857_v52  ;;  %v3401_v52 = vsel %vm9825_vm9, %v7878_v28, %v7879_v25 }
 0x2d7   :  { %7474 = vmatmul.msk.f32.vlgmr.msrb.gmra.mxu1 %vm960_vm15, %v7471_v35  ;;  %7477 = vmatmul.msk.f32.vlgmr.msrb.gmra.mxu3 %vm960_vm15, %v7475_v51 }
 0x2d8   :  { %7476 = vmatmul.msk.f32.vlgmr.msrb.gmra.mxu2 %vm960_vm15, %v7475_v51  ;;  %3025 = vmatpush.msrb.mxu1 %v8598_v50  ;;  %v7479_v50 = vld [vmem:[%s9775_s5 + $0x88] sm:$0xff]  ;;  %v7872_v54 = vpop.permute.xlu2 %7871  ;;  %v3152_v1 = vsel %vm9811_vm11, %v7858_v53, %v7859_v44 }
 0x2d9   :  { %3045 = vmatpush.msrb.mxu2 %v8593_v48  ;;  %3085 = vmatpush.msrb.mxu3 %v3062_v56  ;;  %v7863_v48 = vunpack.i.l.bf16 %v7862_v41  ;;  %v7887_v7 = vpop.permute.xlu0 %7886  ;;  %v7874_v18 = vunpack.i.h.bf16 %v7872_v54  ;;  %v7873_v33 = vunpack.i.l.bf16 %v7872_v54  ;;  %v7495_v54 = vld [vmem:[%s9775_s5 + $0xa8] sm:$0xff] }
 0x2da   :  { %v8801_v62 = vpop.f32.mrf.mxu3  ;;  %v8803_v55 = vpop.f32.mrf.mxu0  ;;  %v7888_v21 = vunpack.i.l.bf16 %v7887_v7  ;;  %v7889_v30 = vunpack.i.h.bf16 %v7887_v7 }
 0x2db   :  { %9839 = vst [vmem:[#allocation20_spill] sm:$0xff] %v8801_v62  ;;  %v8805_v63 = vpop.f32.mrf.mxu2  ;;  %v3153_v3 = vsel %vm9811_vm11, %v7859_v44, %v7863_v48  ;;  %v3154_v13 = vsel %vm9811_vm11, %v7863_v48, %v7864_v57  ;;  %vm9813_vm11 = vcmask 375808  }
 0x2dc   :  { %9840 = vst [vmem:[#allocation21_spill] sm:$0xff] %v8803_v55  ;;  %v8807_v43 = vpop.f32.mrf.mxu1  ;;  %v3318_v29 = vsel %vm9813_vm11, %v7873_v33, %v7874_v18  ;;  %v3320_v41 = vsel %vm9813_vm11, %v7888_v21, %v7889_v30 }
 0x2dd   :  { %9841 = vst [vmem:[#allocation22_spill] sm:$0xff] %v8805_v63  ;;  %7478 = vmatmul.msk.f32.vlgmr.msra.gmra.mxu0 %vm960_vm15, %v7475_v51  ;;  %v3319_v51 = vsel %vm9813_vm11, %v7874_v18, %v7888_v21  ;;  %vm9824_vm11 = vcmask 359424  }
 0x2de   :  { %9842 = vst [vmem:[#allocation23_spill] sm:$0xff] %v8807_v43  ;;  %3105 = vmatpush.msra.mxu0 %v3063_v47 }
 0x2df   :  { %7480 = vmatmul.msk.f32.vlgmr.msra.gmra.mxu1 %vm960_vm15, %v7479_v50  ;;  %7482 = vmatmul.msk.f32.vlgmr.msra.gmra.mxu3 %vm960_vm15, %v7479_v50 }
 0x2e0   :  { %7481 = vmatmul.msk.f32.vlgmr.msra.gmra.mxu2 %vm960_vm15, %v7479_v50  ;;  %3125 = vmatpush.msra.mxu1 %v3060_v42  ;;  %v3397_v60 = vpop.permute.xlu2 %3396  ;;  %v7491_v42 = vld [vmem:[%s9775_s5 + $0xa0] sm:$0xff] }
 0x2e1   :  { %3176 = vmatpush.msra.mxu2 %v3152_v1  ;;  %3196 = vmatpush.msra.mxu3 %v3153_v3  ;;  %v7892_v45 = vpop.permute.xlu0 %7891  ;;  %v3402_v58 = vsel %vm9825_vm9, %v7879_v25, %v3397_v60  ;;  %v3480_v3 = vpop.permute.xlu1 %3479 }
 0x2e2   :  { %v8819_v4 = vpop.f32.mrf.mxu3  ;;  %v8821_v5 = vpop.f32.mrf.mxu0  ;;  %v7894_v50 = vunpack.i.h.bf16 %v7892_v45  ;;  %v7893_v47 = vunpack.i.l.bf16 %v7892_v45 }
 0x2e3   :  { %9843 = vst [vmem:[#allocation24_spill] sm:$0xff] %v8819_v4  ;;  %v8826_v0 = vpop.f32.mrf.mxu2 }
 0x2e4   :  { %9844 = vst [vmem:[#allocation25_spill] sm:$0xff] %v8821_v5  ;;  %v8828_v11 = vpop.f32.mrf.mxu1  ;;  %v3484_v57 = vsel %vm9824_vm11, %v7893_v47, %v7894_v50 }
 0x2e5   :  { %9845 = vst [vmem:[#allocation26_spill] sm:$0xff] %v8826_v0  ;;  %7484 = vmatmul.msk.f32.vlgmr.msrb.gmra.mxu0 %vm960_vm15, %v7483_v8 }
 0x2e6   :  { %9846 = vst [vmem:[#allocation27_spill] sm:$0xff] %v8828_v11  ;;  %3216 = vmatpush.msrb.mxu0 %v3154_v13 }
 0x2e7   :  { %7485 = vmatmul.msk.f32.vlgmr.msrb.gmra.mxu1 %vm960_vm15, %v7483_v8  ;;  %7488 = vmatmul.msk.f32.vlgmr.msrb.gmra.mxu3 %vm960_vm15, %v7487_v12 }
 0x2e8   :  { %7486 = vmatmul.msk.f32.vlgmr.msrb.gmra.mxu2 %vm960_vm15, %v7483_v8  ;;  %3259 = vmatpush.msrb.mxu1 %v3235_v19  ;;  %v3399_v53 = vpop.permute.xlu2 %3398  ;;  %v3485_v8 = vsel %vm9824_vm11, %v7894_v50, %v3480_v3 }
 0x2e9   :  { %3279 = vmatpush.msrb.mxu2 %v3236_v20  ;;  %3299 = vmatpush.msrb.mxu3 %v3237_v14  ;;  %v3403_v1 = vsel %vm9825_vm9, %v3397_v60, %v3399_v53  ;;  %v3482_v9 = vpop.permute.xlu0 %3481  ;;  %v7507_v60 = vld [vmem:[%s9775_s5 + $0xc0] sm:$0xff] }
 0x2ea   :  { %v8841_v40 = vpop.f32.mrf.mxu3  ;;  %v8843_v17 = vpop.f32.mrf.mxu0  ;;  %v3486_v19 = vsel %vm9824_vm11, %v3480_v3, %v3482_v9  ;;  %vm9885_vm11 = vcmask 539648  }
 0x2eb   :  { %9847 = vst [vmem:[#allocation28_spill] sm:$0xff] %v8841_v40  ;;  %v8845_v24 = vpop.f32.mrf.mxu2  ;;  %vm9886_vm9 = vmmov %vm9885_vm11 }
 0x2ec   :  { %9848 = vst [vmem:[#allocation29_spill] sm:$0xff] %v8843_v17  ;;  %v8847_v35 = vpop.f32.mrf.mxu1 }
 0x2ed   :  { %9849 = vst [vmem:[#allocation30_spill] sm:$0xff] %v8845_v24  ;;  %7489 = vmatmul.msk.f32.vlgmr.msra.gmra.mxu0 %vm960_vm15, %v7487_v12 }
 0x2ee   :  { %9850 = vst [vmem:[#allocation31_spill] sm:$0xff] %v8847_v35  ;;  %3342 = vmatpush.msra.mxu0 %v3318_v29 }
 0x2ef   :  { %7490 = vmatmul.msk.f32.vlgmr.msra.gmra.mxu1 %vm960_vm15, %v7487_v12  ;;  %7493 = vmatmul.msk.f32.vlgmr.msra.gmra.mxu3 %vm960_vm15, %v7491_v42 }
 0x2f0   :  { %7492 = vmatmul.msk.f32.vlgmr.msra.gmra.mxu2 %vm960_vm15, %v7491_v42  ;;  %3362 = vmatpush.msra.mxu1 %v3319_v51 }
 0x2f1   :  { %3382 = vmatpush.msra.mxu2 %v3320_v41  ;;  %3425 = vmatpush.msra.mxu3 %v3401_v52 }
 0x2f2   :  { %v8860_v56 = vpop.f32.mrf.mxu3  ;;  %v8862_v59 = vpop.f32.mrf.mxu0 }
 0x2f3   :  { %9851 = vst [vmem:[#allocation32_spill] sm:$0xff] %v8860_v56  ;;  %v8864_v44 = vpop.f32.mrf.mxu2 }
 0x2f4   :  { %9852 = vst [vmem:[#allocation33_spill] sm:$0xff] %v8862_v59  ;;  %v8866_v48 = vpop.f32.mrf.mxu1 }
 0x2f5   :  { %9853 = vst [vmem:[#allocation34_spill] sm:$0xff] %v8864_v44  ;;  %7494 = vmatmul.msk.f32.vlgmr.msrb.gmra.mxu0 %vm960_vm15, %v7491_v42 }
 0x2f6   :  { %9854 = vst [vmem:[#allocation35_spill] sm:$0xff] %v8866_v48  ;;  %3445 = vmatpush.msrb.mxu0 %v3402_v58 }
 0x2f7   :  { %7496 = vmatmul.msk.f32.vlgmr.msrb.gmra.mxu1 %vm960_vm15, %v7495_v54  ;;  %7498 = vmatmul.msk.f32.vlgmr.msrb.gmra.mxu3 %vm960_vm15, %v7495_v54 }
 0x2f8   :  { %7497 = vmatmul.msk.f32.vlgmr.msrb.gmra.mxu2 %vm960_vm15, %v7495_v54  ;;  %3465 = vmatpush.msrb.mxu1 %v3403_v1 }
 0x2f9   :  { %3508 = vmatpush.msrb.mxu2 %v3484_v57  ;;  %3528 = vmatpush.msrb.mxu3 %v3485_v8 }
 0x2fa   :  { %v1715_v10 = vpop.f32.mrf.mxu3  ;;  %v1735_v12 = vpop.f32.mrf.mxu0 }
 0x2fb   :  { %v1695_v7 = vpop.f32.mrf.mxu2 }
 0x2fc   :  { %v1758_v13 = vpop.f32.mrf.mxu1 }
 0x2fd   :  { %7500 = vmatmul.msk.f32.vlgmr.msra.gmra.mxu0 %vm960_vm15, %v7499_v61  ;;  %v1759_v43 = vadd.f32 %v1758_v13, %v1695_v7 }
 0x2fe   :  { %3548 = vmatpush.msra.mxu0 %v3486_v19 }
 0x2ff   :  { %7501 = vmatmul.msk.f32.vlgmr.msra.gmra.mxu1 %vm960_vm15, %v7499_v61  ;;  %7504 = vmatmul.msk.f32.vlgmr.msra.gmra.mxu3 %vm960_vm15, %v7503_v2 }
 0x300   :  { %7502 = vmatmul.msk.f32.vlgmr.msra.gmra.mxu2 %vm960_vm15, %v7499_v61 }
 0x302   :  { %v1798_v20 = vpop.f32.mrf.mxu3  ;;  %v1835_v14 = vpop.f32.mrf.mxu0 }
 0x303   :  { %v1778_v18 = vpop.f32.mrf.mxu2  ;;  %v1799_v24 = vadd.f32 %v1798_v20, %v1735_v12  ;;  %v1878_v49 = vadd.f32 %v1835_v14, %v1759_v43 }
 0x304   :  { %v1855_v33 = vpop.f32.mrf.mxu1  ;;  %v1779_v40 = vadd.f32 %v1778_v18, %v1715_v10 }
 0x305   :  { %7505 = vmatmul.msk.f32.vlgmr.msrb.gmra.mxu0 %vm960_vm15, %v7503_v2 }
 0x306   :  { %v1879_v36 = vadd.f32 %v1855_v33, %v1779_v40 }
 0x307   :  { %7506 = vmatmul.msk.f32.vlgmr.msrb.gmra.mxu1 %vm960_vm15, %v7503_v2  ;;  %7509 = vmatmul.msk.f32.vlgmr.msrb.gmra.mxu3 %vm960_vm15, %v7507_v60 }
 0x308   :  { %7508 = vmatmul.msk.f32.vlgmr.msrb.gmra.mxu2 %vm960_vm15, %v7507_v60 }
 0x30a   :  { %v1915_v39 = vpop.f32.mrf.mxu3  ;;  %v1935_v21 = vpop.f32.mrf.mxu0 }
 0x30b   :  { %v1875_v25 = vpop.f32.mrf.mxu2  ;;  %v1959_v34 = vadd.f32 %v1935_v21, %v1879_v36  ;;  %v1958_v31 = vadd.f32 %v1915_v39, %v1878_v49 }
 0x30c   :  { %v1955_v28 = vpop.f32.mrf.mxu1  ;;  %v1880_v4 = vadd.f32 %v1875_v25, %v1799_v24 }
 0x30d   :  { %7510 = vmatmul.msk.f32.vlgmr.msra.gmra.mxu0 %vm960_vm15, %v7507_v60 }
 0x30e   :  { %v1960_v63 = vadd.f32 %v1955_v28, %v1880_v4 }
 0x312   :  { %v2015_v30 = vpop.f32.mrf.mxu3  ;;  %v2035_v42 = vpop.f32.mrf.mxu0 }
 0x313   :  { %v1995_v29 = vpop.f32.mrf.mxu2  ;;  %v2039_v32 = vadd.f32 %v2015_v30, %v1959_v34  ;;  %v2040_v38 = vadd.f32 %v2035_v42, %v1960_v63 }
 0x314   :  { %v2075_v45 = vpop.f32.mrf.mxu1  ;;  %v2038_v46 = vadd.f32 %v1995_v29, %v1958_v31 }
 0x316   :  { %v2118_v24 = vadd.f32 %v2075_v45, %v2038_v46 }
 0x31a   :  { %v2115_v51 = vpop.f32.mrf.mxu3  ;;  %v2143_v41 = vpop.f32.mrf.mxu0 }
 0x31b   :  { %v2095_v52 = vpop.f32.mrf.mxu2  ;;  %v2120_v10 = vadd.f32 %v2115_v51, %v2040_v38  ;;  %v2186_v7 = vadd.f32 %v2143_v41, %v2118_v24  ;;  %v8917_v24 = vld [vmem:[%s9770_s0 + $0x10] sm:$0xff] }
 0x31c   :  { %v2163_v53 = vpop.f32.mrf.mxu1  ;;  %3737 = vst [vmem:[#allocation1] ss:$2 sm:$0xff] %v8917_v24 }
 0x322   :  { %v2211_v50 = vpop.f32.mrf.mxu3  ;;  %v2231_v47 = vpop.f32.mrf.mxu0 }
 0x323   :  { %v2183_v54 = vpop.f32.mrf.mxu2  ;;  %v2254_v43 = vadd.f32 %v2211_v50, %v2186_v7 }
 0x324   :  { %v2251_v58 = vpop.f32.mrf.mxu1  ;;  %v2188_v18 = vadd.f32 %v2183_v54, %v2120_v10 }
 0x326   :  { %v2256_v40 = vadd.f32 %v2251_v58, %v2188_v18  ;;  %v9861_v18 = vld [vmem:[#allocation11_spill] sm:$0xff] }
 0x32a   :  { %v2299_v1 = vpop.f32.mrf.mxu3  ;;  %v2319_v3 = vpop.f32.mrf.mxu0 }
 0x32b   :  { %v2279_v57 = vpop.f32.mrf.mxu2  ;;  %v2324_v34 = vadd.f32 %v2319_v3, %v2256_v40 }
 0x32c   :  { %v2359_v8 = vpop.f32.mrf.mxu1  ;;  %v2322_v31 = vadd.f32 %v2279_v57, %v2254_v43 }
 0x32e   :  { %v2402_v39 = vadd.f32 %v2359_v8, %v2322_v31 }
 0x332   :  { %v2399_v9 = vpop.f32.mrf.mxu3  ;;  %v2439_v61 = vpop.f32.mrf.mxu0 }
 0x333   :  { %v2379_v2 = vpop.f32.mrf.mxu2  ;;  %v2482_v28 = vadd.f32 %v2439_v61, %v2402_v39  ;;  %v9857_v61 = vld [vmem:[#allocation12_spill] sm:$0xff] }
 0x334   :  { %v2459_v19 = vpop.f32.mrf.mxu1 }
 0x33a   :  { %v2507_v60 = vpop.f32.mrf.mxu3  ;;  %v2527_v6 = vpop.f32.mrf.mxu0 }
 0x33b   :  { %v2479_v16 = vpop.f32.mrf.mxu2  ;;  %v2550_v45 = vadd.f32 %v2507_v60, %v2482_v28  ;;  %v9869_v28 = vld [vmem:[#allocation20_spill] sm:$0xff] }
 0x33c   :  { %v2547_v15 = vpop.f32.mrf.mxu1 }
 0x342   :  { %v2595_v26 = vpop.f32.mrf.mxu3  ;;  %v2615_v56 = vpop.f32.mrf.mxu0 }
 0x343   :  { %v2575_v48 = vpop.f32.mrf.mxu2 }
 0x344   :  { %v2643_v59 = vpop.f32.mrf.mxu1 }
 0x34a   :  { %v2683_v17 = vpop.f32.mrf.mxu3  ;;  %v8898_v35 = vpop.f32.mrf.mxu0 }
 0x34b   :  { %9855 = vst [vmem:[#allocation36_spill] sm:$0xff] %v8898_v35  ;;  %v2663_v11 = vpop.f32.mrf.mxu2  ;;  %v2119_v35 = vadd.f32 %v2095_v52, %v2039_v32  ;;  %v2404_v32 = vadd.f32 %v2399_v9, %v2324_v34 }
 0x34c   :  { %v2743_v44 = vpop.f32.mrf.mxu1 }
 0x34d   :  { %v2187_v25 = vadd.f32 %v2163_v53, %v2119_v35  ;;  %v2484_v38 = vadd.f32 %v2479_v16, %v2404_v32  ;;  %v2618_v53 = vadd.f32 %v2575_v48, %v2550_v45  ;;  %v1096_v16 = vadd.f32 %v8762_v27, %v8748_v23  ;;  %v9862_v23 = vld [vmem:[#allocation14_spill] sm:$0xff]  ;;  %v9870_v45 = vld [vmem:[#allocation24_spill] sm:$0xff] }
 0x34e   :  { %v1056_v27 = vadd.f32 %v9862_v23, %v9861_v18  ;;  %v3560_v23 = vpop.permute.xlu2 %3559 }
 0x34f   :  { %v2255_v13 = vadd.f32 %v2231_v47, %v2187_v25  ;;  %v2552_v42 = vadd.f32 %v2547_v15, %v2484_v38  ;;  %v2686_v58 = vadd.f32 %v2643_v59, %v2618_v53  ;;  %v9860_v59 = vld [vmem:[#allocation18_spill] sm:$0xff]  ;;  %v9867_v38 = vld [vmem:[#allocation21_spill] sm:$0xff] }
 0x350   :  { %v9863_v25 = vld [vmem:[#allocation22_spill] sm:$0xff] }
 0x351   :  { %v2323_v49 = vadd.f32 %v2299_v1, %v2255_v13  ;;  %v2620_v52 = vadd.f32 %v2615_v56, %v2552_v42 }
 0x352   :  { %v8900_v0 = vpop.f32.mrf.mxu3  ;;  %v2823_v5 = vpop.f32.mrf.mxu0  ;;  %v9856_v9 = vld [vmem:[#allocation36_spill] sm:$0xff] }
 0x353   :  { %v2763_v62 = vpop.f32.mrf.mxu2  ;;  %v2403_v33 = vadd.f32 %v2379_v2, %v2323_v49  ;;  %v2688_v47 = vadd.f32 %v2683_v17, %v2620_v52  ;;  %v9858_v2 = vld [vmem:[#allocation13_spill] sm:$0xff]  ;;  %v9859_v17 = vld [vmem:[#allocation16_spill] sm:$0xff] }
 0x354   :  { %v2843_v55 = vpop.f32.mrf.mxu1  ;;  %v9871_v52 = vld [vmem:[#allocation25_spill] sm:$0xff] }
 0x355   :  { %v2483_v21 = vadd.f32 %v2459_v19, %v2403_v33  ;;  %v2768_v54 = vadd.f32 %v2763_v62, %v2688_v47  ;;  %v1076_v19 = vadd.f32 %v9858_v2, %v9857_v61  ;;  %v1176_v62 = vadd.f32 %v9859_v17, %v1096_v16  ;;  %v9872_v47 = vld [vmem:[#allocation26_spill] sm:$0xff]  ;;  %v9876_v17 = vld [vmem:[#allocation27_spill] sm:$0xff] }
 0x356   :  { %v8931_v16 = vld.sshfl [vmem:[#allocation1] sm:$0xff pattern:$0x75316420] }
 0x357   :  { %v2551_v35 = vadd.f32 %v2527_v6, %v2483_v21  ;;  %v2766_v6 = vadd.f32 %v9856_v9, %v2686_v58  ;;  %v2848_v56 = vadd.f32 %v2843_v55, %v2768_v54  ;;  %v1175_v48 = vadd.f32 %v9860_v59, %v1076_v19  ;;  %v9868_v21 = vld [vmem:[#allocation23_spill] sm:$0xff]  ;;  %v1655_v59 = vpop.permute.xlu1 %1654 }
 0x359   :  { %v2619_v41 = vadd.f32 %v2595_v26, %v2551_v35 }
 0x35a   :  { %v2891_v37 = vpop.f32.mrf.mxu3  ;;  %v2911_v22 = vpop.f32.mrf.mxu0 }
 0x35b   :  { %v2871_v12 = vpop.f32.mrf.mxu2  ;;  %v2687_v50 = vadd.f32 %v2663_v11, %v2619_v41  ;;  %v2846_v11 = vadd.f32 %v8900_v0, %v2766_v6  ;;  %v2916_v10 = vadd.f32 %v2911_v22, %v2848_v56  ;;  %v9864_v0 = vld [vmem:[#allocation15_spill] sm:$0xff]  ;;  %v9874_v6 = vld [vmem:[#allocation28_spill] sm:$0xff] }
 0x35c   :  { %v8902_v20 = vpop.f32.mrf.mxu1  ;;  %v1174_v13 = vadd.f32 %v9864_v0, %v1056_v27  ;;  %v9865_v22 = vld [vmem:[#allocation19_spill] sm:$0xff]  ;;  %v9879_v27 = vld [vmem:[#allocation33_spill] sm:$0xff] }
 0x35d   :  { %v2767_v57 = vadd.f32 %v2743_v44, %v2687_v50  ;;  %v2914_v44 = vadd.f32 %v2871_v12, %v2846_v11  ;;  %v1254_v43 = vadd.f32 %v9865_v22, %v1175_v48  ;;  %v9866_v12 = vld [vmem:[#allocation17_spill] sm:$0xff]  ;;  %v9877_v48 = vld [vmem:[#allocation31_spill] sm:$0xff] }
 0x35e   :  { %v1253_v31 = vadd.f32 %v9866_v12, %v1174_v13 }
 0x35f   :  { %v2847_v26 = vadd.f32 %v2823_v5, %v2767_v57  ;;  %v1255_v5 = vadd.f32 %v9863_v25, %v1176_v62  ;;  %v2982_v33 = vadd.f32 %v8902_v20, %v2914_v44  ;;  %v1333_v39 = vadd.f32 %v9867_v38, %v1254_v43  ;;  %v8933_v20 = vld.sshfl [vmem:[#allocation1 + $0x8] sm:$0xff pattern:$0x75316420]  ;;  %v9873_v57 = vld [vmem:[#allocation30_spill] sm:$0xff] }
 0x360   :  { %v1332_v35 = vadd.f32 %v9869_v28, %v1253_v31  ;;  %3820 = vst [vmem:[#allocation1] ss:$2 sm:$0xff] %v8917_v24  ;;  %v9880_v25 = vld [vmem:[#allocation35_spill] sm:$0xff]  ;;  %v8951_v28 = vstv %s7313_s29 }
 0x361   :  { %v2915_v60 = vadd.f32 %v2891_v37, %v2847_v26  ;;  %v1412_v41 = vadd.f32 %v9870_v45, %v1333_v39  ;;  %v3586_v45 = vpop.permute.xlu1 %3585 }
 0x362   :  { %v2979_v36 = vpop.f32.mrf.mxu3  ;;  %v3007_v4 = vpop.f32.mrf.mxu0  ;;  %v1411_v54 = vadd.f32 %v9872_v47, %v1332_v35 }
 0x363   :  { %v2959_v63 = vpop.f32.mrf.mxu2  ;;  %v2984_v7 = vadd.f32 %v2979_v36, %v2916_v10  ;;  %v3050_v42 = vadd.f32 %v3007_v4, %v2982_v33  ;;  %v1491_v9 = vadd.f32 %v9873_v57, %v1412_v41 }
 0x364   :  { %v3027_v14 = vpop.f32.mrf.mxu1  ;;  %v2983_v55 = vadd.f32 %v2959_v63, %v2915_v60  ;;  %v1334_v63 = vadd.f32 %v9868_v21, %v1255_v5  ;;  %v1490_v62 = vadd.f32 %v9876_v17, %v1411_v54  ;;  %v9884_v17 = vld [vmem:[#allocation8_spill] sm:$0xff] }
 0x365   :  { %v1570_v60 = vadd.f32 %v9877_v48, %v1491_v9  ;;  %v3588_v9 = vpop.permute.xlu2 %3587 }
 0x366   :  { %v3051_v36 = vadd.f32 %v3027_v14, %v2983_v55  ;;  %v1413_v53 = vadd.f32 %v9871_v52, %v1334_v63 }
 0x367   :  { %v1649_v44 = vadd.f32 %v9879_v27, %v1570_v60  ;;  %v3824_v22 = vld.sshfl [vmem:[#allocation1 + $0x8] sm:$0xff pattern:$0x75316420]  ;;  %v7515_v27 = vld [vmem:[%s9770_s0 + $0x18] sm:$0xf] }
 0x368   :  { %v1492_v14 = vadd.f32 %v9874_v6, %v1413_v53  ;;  %3739 = vst [vmem:[#allocation1 + $0x10] ss:$2 sm:$0xff] %v7515_v27 }
 0x369   :  { %v1658_v31 = vadd.f32 %v1655_v59, %v1649_v44 }
 0x36a   :  { %v3087_v30 = vpop.f32.mrf.mxu3  ;;  %v3107_v46 = vpop.f32.mrf.mxu0 }
 0x36b   :  { %v3047_v29 = vpop.f32.mrf.mxu2  ;;  %v3131_v50 = vadd.f32 %v3107_v46, %v3051_v36  ;;  %v3130_v58 = vadd.f32 %v3087_v30, %v3050_v42  ;;  %v9875_v46 = vld [vmem:[#allocation34_spill] sm:$0xff] }
 0x36c   :  { %v3127_v51 = vpop.f32.mrf.mxu1  ;;  %v3052_v49 = vadd.f32 %v3047_v29, %v2984_v7  ;;  %v9881_v7 = vld [vmem:[#allocation32_spill] sm:$0xff] }
 0x36e   :  { %v3132_v29 = vadd.f32 %v3127_v51, %v3052_v49  ;;  %v1571_v51 = vadd.f32 %v9875_v46, %v1492_v14 }
 0x36f   :  { %v3742_v44 = vld.sshfl [vmem:[#allocation1 + $0x10] sm:$0xff pattern:$0x75316420] }
 0x370   :  { %v1650_v5 = vadd.f32 %v9880_v25, %v1571_v51  ;;  %v9882_v51 = vld [vmem:[#allocation9_spill] sm:$0xff]  ;;  %3822 = vst [vmem:[#allocation1 + $0x10] ss:$2 sm:$0xff] %v7515_v27 }
 0x372   :  { %v3198_v1 = vpop.f32.mrf.mxu3  ;;  %v3218_v3 = vpop.f32.mrf.mxu0  ;;  %v1659_v33 = vadd.f32 %v1655_v59, %v1650_v5  ;;  %v7531_v5 = vld [vmem:[%s9770_s0 + $0x18] sm:$0xf] }
 0x373   :  { %v3178_v8 = vpop.f32.mrf.mxu2  ;;  %v3222_v61 = vadd.f32 %v3198_v1, %v3131_v50  ;;  %v3223_v2 = vadd.f32 %v3218_v3, %v3132_v29  ;;  %v9878_v3 = vld [vmem:[#allocation29_spill] sm:$0xff]  ;;  %v3584_v29 = vpop.permute.xlu0 %3583 }
 0x374   :  { %v3261_v15 = vpop.f32.mrf.mxu1  ;;  %v3221_v4 = vadd.f32 %v3178_v8, %v3130_v58  ;;  %v1569_v10 = vadd.f32 %v9878_v3, %v1490_v62 }
 0x376   :  { %v3304_v18 = vadd.f32 %v3261_v15, %v3221_v4  ;;  %v1648_v0 = vadd.f32 %v9881_v7, %v1569_v10  ;;  %v3589_v4 = vsel %vm451_vm6, %v3584_v29, %v3586_v45  ;;  %v7540_v7 = vld [vmem:[%s9770_s0 + $0x18] sm:$0xf] }
 0x377   :  { %v3825_v25 = vld.sshfl [vmem:[#allocation1 + $0x10] sm:$0xff pattern:$0x75316420] }
 0x378   :  { %v1657_v63 = vadd.f32 %v1655_v59, %v1648_v0  ;;  %3910 = vst [vmem:[#allocation1 + $0x10] ss:$2 sm:$0xff] %v7531_v5 }
 0x37a   :  { %v3301_v40 = vpop.f32.mrf.mxu3  ;;  %v3344_v37 = vpop.f32.mrf.mxu0 }
 0x37b   :  { %v3281_v34 = vpop.f32.mrf.mxu2  ;;  %v3306_v56 = vadd.f32 %v3301_v40, %v3223_v2  ;;  %v3387_v13 = vadd.f32 %v3344_v37, %v3304_v18  ;;  %v3823_v40 = vld.sshfl [vmem:[#allocation1] sm:$0xff pattern:$0x75316420] }
 0x37c   :  { %v3364_v32 = vpop.f32.mrf.mxu1  ;;  %v3305_v30 = vadd.f32 %v3281_v34, %v3222_v61  ;;  %3908 = vst [vmem:[#allocation1] ss:$2 sm:$0xff] %v8917_v24  ;;  %v3590_v61 = vsel %vm451_vm6, %v3586_v45, %v3588_v9 }
 0x37e   :  { %v3388_v55 = vadd.f32 %v3364_v32, %v3305_v30  ;;  %v8949_v32 = vstv %s8939_s25 }
 0x37f   :  { %v3567_v41 = vmul.f32 %v8949_v32, %v1658_v31  ;;  %v3568_v52 = vmul.f32 %v8949_v32, %v1659_v33  ;;  %v3566_v47 = vmul.f32 %v8949_v32, %v1657_v63 }
 0x382   :  { %v3427_v19 = vpop.f32.mrf.mxu3  ;;  %v3447_v26 = vpop.f32.mrf.mxu0 }
 0x383   :  { %v3384_v11 = vpop.f32.mrf.mxu2  ;;  %v3471_v43 = vadd.f32 %v3447_v26, %v3388_v55  ;;  %v3470_v34 = vadd.f32 %v3427_v19, %v3387_v13  ;;  %v3911_v58 = vld.sshfl [vmem:[#allocation1] sm:$0xff pattern:$0x75316420]  ;;  %v8959_v57 = vld.sshfl [vmem:[#allocation1 + $0x8] sm:$0xff pattern:$0x75316420] }
 0x384   :  { %v3389_v1 = vadd.f32 %v3384_v11, %v3306_v56  ;;  %v3467_v8 = vpop.f32.mrf.mxu1  ;;  %3999 = vst [vmem:[#allocation1] ss:$2 sm:$0xff] %v8917_v24  ;;  %v9883_v56 = vld [vmem:[#allocation7_spill] sm:$0xff]  ;;  %v3913_v55 = vld.sshfl [vmem:[#allocation1 + $0x10] sm:$0xff pattern:$0x75316420] }
 0x385   :  { %4001 = vst [vmem:[#allocation1 + $0x10] ss:$2 sm:$0xff] %v7540_v7  ;;  %v7549_v13 = vld [vmem:[%s9770_s0 + $0x18] sm:$0xf] }
 0x386   :  { %v3472_v49 = vadd.f32 %v3467_v8, %v3389_v1 }
 0x38a   :  { %v3530_v12 = vpop.f32.mrf.mxu3  ;;  %v3550_v15 = vpop.f32.mrf.mxu0 }
 0x38b   :  { %v3510_v38 = vpop.f32.mrf.mxu2  ;;  %v3554_v39 = vadd.f32 %v3530_v12, %v3471_v43  ;;  %v3555_v21 = vadd.f32 %v3550_v15, %v3472_v49  ;;  %v4002_v59 = vld.sshfl [vmem:[#allocation1] sm:$0xff pattern:$0x75316420]  ;;  %v8970_v48 = vld.sshfl [vmem:[#allocation1 + $0x8] sm:$0xff pattern:$0x75316420] }
 0x38c   :  { %v3553_v36 = vadd.f32 %v3510_v38, %v3470_v34  ;;  %4090 = vst [vmem:[#allocation1] ss:$2 sm:$0xff] %v8917_v24  ;;  %v4004_v0 = vld.sshfl [vmem:[#allocation1 + $0x10] sm:$0xff pattern:$0x75316420] }
 0x38d   :  { %v3563_v37 = vadd.f32 %v3560_v23, %v3554_v39  ;;  %v3564_v35 = vadd.f32 %v3560_v23, %v3555_v21  ;;  %4092 = vst [vmem:[#allocation1 + $0x10] ss:$2 sm:$0xff] %v7549_v13  ;;  %v7558_v12 = vld [vmem:[%s9770_s0 + $0x18] sm:$0xf]  ;;  %v7556_v13 = vld [vmem:[%s9771_s1 + $0x28] sm:$0xff] }
 0x38e   :  { %v3562_v42 = vadd.f32 %v3560_v23, %v3553_v36  ;;  %v7567_v21 = vld [vmem:[%s9770_s0 + $0x18] sm:$0xf] }
 0x38f   :  { %v3571_v53 = vmul.f32 %v8951_v28, %v3563_v37  ;;  %v3572_v50 = vmul.f32 %v8951_v28, %v3564_v35  ;;  %v7576_v36 = vld [vmem:[%s9770_s0 + $0x18] sm:$0xf] }
 0x390   :  { %v3570_v54 = vmul.f32 %v8951_v28, %v3562_v42  ;;  %v7585_v35 = vld [vmem:[%s9770_s0 + $0x18] sm:$0xf] }
 0x391   :  { %v3574_v6 = vadd.f32 %v3571_v53, %v3567_v41  ;;  %v3575_v14 = vadd.f32 %v3572_v50, %v3568_v52 }
 0x392   :  { %v3573_v2 = vadd.f32 %v3570_v54, %v3566_v47 }
 0x393   :  { %v3596_v19 = vadd.f32 %v3588_v9, %v3575_v14  ;;  %v3595_v26 = vadd.f32 %v3590_v61, %v3574_v6  ;;  %v4093_v60 = vld.sshfl [vmem:[#allocation1] sm:$0xff pattern:$0x75316420]  ;;  %v8975_v1 = vld.sshfl [vmem:[#allocation1 + $0x8] sm:$0xff pattern:$0x75316420] }
 0x394   :  { %v3594_v46 = vadd.f32 %v3589_v4, %v3573_v2  ;;  %4181 = vst [vmem:[#allocation1] ss:$2 sm:$0xff] %v8917_v24  ;;  %v4095_v34 = vld.sshfl [vmem:[#allocation1 + $0x10] sm:$0xff pattern:$0x75316420] }
 0x395   :  { %v3599_v30 = vmul.f32 %v3596_v19, %v9882_v51  ;;  %v3598_v11 = vmul.f32 %v3595_v26, %v9883_v56  ;;  %4183 = vst [vmem:[#allocation1 + $0x10] ss:$2 sm:$0xff] %v7558_v12  ;;  %v3617_v14 = vld [vmem:[%s9777_s7] sm:$0xf]  ;;  %v7565_v12 = vld [vmem:[%s9771_s1 + $0x30] sm:$0xff] }
 0x396   :  { %v3597_v62 = vmul.f32 %v3594_v46, %v9884_v17 }
 0x397   :  { %3607 = vrot.lane.b32.xlu2 %v3599_v30, %s8068_s9  ;;  %3605 = vrot.lane.b32.xlu1 %v3598_v11, %s8068_s9 }
 0x398   :  { %3603 = vrot.lane.b32.xlu0 %v3597_v62, %s8068_s9 }
 0x39b   :  { %v4184_v3 = vld.sshfl [vmem:[#allocation1] sm:$0xff pattern:$0x75316420]  ;;  %v8981_v10 = vld.sshfl [vmem:[#allocation1 + $0x8] sm:$0xff pattern:$0x75316420] }
 0x39c   :  { %4272 = vst [vmem:[#allocation1] ss:$2 sm:$0xff] %v8917_v24  ;;  %v4186_v39 = vld.sshfl [vmem:[#allocation1 + $0x10] sm:$0xff pattern:$0x75316420] }
 0x39d   :  { %4274 = vst [vmem:[#allocation1 + $0x10] ss:$2 sm:$0xff] %v7567_v21  ;;  %v7574_v21 = vld [vmem:[%s9771_s1 + $0x38] sm:$0xff] }
 0x39f   :  { %3743 = vrot.lane.b32.xlu2 %v8931_v16, %s8058_s10  ;;  %3747 = vrot.lane.b32.xlu1 %v3742_v44, %s8058_s10  ;;  %v7547_v44 = vld [vmem:[%s9771_s1 + $0x20] sm:$0xff] }
 0x3a0   :  { %3745 = vrot.lane.b32.xlu0 %v8933_v20, %s8058_s10 }
 0x3a3   :  { %v4275_v16 = vld.sshfl [vmem:[#allocation1] sm:$0xff pattern:$0x75316420]  ;;  %v8986_v18 = vld.sshfl [vmem:[#allocation1 + $0x8] sm:$0xff pattern:$0x75316420] }
 0x3a4   :  { %4363 = vst [vmem:[#allocation1] ss:$2 sm:$0xff] %v8917_v24  ;;  %v4277_v63 = vld.sshfl [vmem:[#allocation1 + $0x10] sm:$0xff pattern:$0x75316420] }
 0x3a5   :  { %4365 = vst [vmem:[#allocation1 + $0x10] ss:$2 sm:$0xff] %v7576_v36 }
 0x3a7   :  { %3826 = vrot.lane.b32.xlu2 %v3823_v40, %s8059_s27  ;;  %3830 = vrot.lane.b32.xlu1 %v3825_v25, %s8059_s27 }
 0x3a8   :  { %3828 = vrot.lane.b32.xlu0 %v3824_v22, %s8059_s27 }
 0x3ab   :  { %v4366_v20 = vld.sshfl [vmem:[#allocation1] sm:$0xff pattern:$0x75316420]  ;;  %v8990_v8 = vld.sshfl [vmem:[#allocation1 + $0x8] sm:$0xff pattern:$0x75316420] }
 0x3ac   :  { %4454 = vst [vmem:[#allocation1] ss:$2 sm:$0xff] %v8917_v24  ;;  %v4540_v24 = vld [vmem:[%s9772_s2] sm:$0xff]  ;;  %v4368_v37 = vld.sshfl [vmem:[#allocation1 + $0x10] sm:$0xff pattern:$0x75316420] }
 0x3ad   :  { %4456 = vst [vmem:[#allocation1 + $0x10] ss:$2 sm:$0xff] %v7585_v35 }
 0x3af   :  { %3914 = vrot.lane.b32.xlu2 %v3911_v58, %s8060_s30  ;;  %v7516_v58 = vld [vmem:[%s9771_s1 + $0x8] sm:$0xff] }
 0x3b3   :  { %v4457_v23 = vld.sshfl [vmem:[#allocation1] sm:$0xff pattern:$0x75316420]  ;;  %v4458_v53 = vld.sshfl [vmem:[#allocation1 + $0x8] sm:$0xff pattern:$0x75316420] }
 0x3b4   :  { %v4459_v52 = vld.sshfl [vmem:[#allocation1 + $0x10] sm:$0xff pattern:$0x75316420] }
 0x3b7   :  { %4005 = vrot.lane.b32.xlu2 %v4002_v59, %s8061_s14 }
 0x3bf   :  { %4096 = vrot.lane.b32.xlu2 %v4093_v60, %s8062_s17  ;;  %v7529_v60 = vld [vmem:[%s9771_s1 + $0x10] sm:$0xff] }
 0x3c7   :  { %4187 = vrot.lane.b32.xlu2 %v4184_v3, %s8063_s20 }
 0x3cf   :  { %4278 = vrot.lane.b32.xlu2 %v4275_v16, %s8064_s23 }
 0x3d7   :  { %4369 = vrot.lane.b32.xlu2 %v4366_v20, %s8065_s26 }
 0x3df   :  { %4460 = vrot.lane.b32.xlu2 %v4457_v23, %s8066_s28  ;;  %v7538_v23 = vld [vmem:[%s9771_s1 + $0x18] sm:$0xff] }
 0x3e7   :  { %4543 = vperm.xlu2 %7896, %v4540_v24  }
 0x3f1   :  { %v3608_v40 = vpop.permute.xlu2 %3607 }
 0x3f9   :  { %v3744_v42 = vpop.permute.xlu2 %3743 }
 0x401   :  { %v3827_v9 = vpop.permute.xlu2 %3826 }
 0x409   :  { %v3606_v22 = vpop.permute.xlu1 %3605  ;;  %v3915_v6 = vpop.permute.xlu2 %3914 }
 0x40a   :  { %v3610_v43 = vsel %vm929_vm13, %v3606_v22, %v3608_v40  ;;  %v3604_v49 = vpop.permute.xlu0 %3603 }
 0x40b   :  { %3616 = vst.msk [vmem:[#allocation3 + $0x10] sm:$0xff] %vm938_vm14, %v3610_v43  ;;  %v3609_v31 = vsel %vm929_vm13, %v3604_v49, %v3606_v22 }
 0x40c   :  { %3614 = vst.msk [vmem:[#allocation3] sm:$0xff] %vm935_vm12, %v3604_v49 }
 0x411   :  { %v3748_v50 = vpop.permute.xlu1 %3747  ;;  %v4006_v59 = vpop.permute.xlu2 %4005 }
 0x412   :  { %v3620_v15 = vld [vmem:[#allocation3 + $0x10] sm:$0xff]  ;;  %v3746_v45 = vpop.permute.xlu0 %3745 }
 0x413   :  { %3634 = vrot.lane.b32.xlu1 %v3620_v15, %s8062_s17  ;;  %v3618_v33 = vld [vmem:[#allocation3] sm:$0xff]  ;;  %v3749_v41 = vsel %vm90_vm2, %v3744_v42, %v3746_v45  ;;  %v3750_v11 = vsel %vm90_vm2, %v3746_v45, %v3748_v50  ;;  %v7583_v45 = vld [vmem:[%s9771_s1 + $0x40] sm:$0xff] }
 0x414   :  { %v7897_v38 = vpack.i.bf16 %v3609_v31, %v3618_v33  ;;  %7517 = vmatpush.msk.msrb.mxu0 %vm65_vm0, %v3749_v41 }
 0x415   :  { %7518 = vmatmul.msk.f32.vlgmr.msrb.gmra.mxu0 %vm93_vm1, %v7516_v58 }
 0x416   :  { %7898 = vrot.lane.b32.xlu0 %v7897_v38, %s8062_s17 }
 0x419   :  { %v3831_v47 = vpop.permute.xlu1 %3830  ;;  %v4097_v16 = vpop.permute.xlu2 %4096 }
 0x41a   :  { %v3829_v29 = vpop.permute.xlu0 %3828 }
 0x41b   :  { %3918 = vrot.lane.b32.xlu1 %v3913_v55, %s8060_s30  ;;  %v3833_v54 = vsel %vm175_vm3, %v3829_v29, %v3831_v47  ;;  %v3832_v2 = vsel %vm175_vm3, %v3827_v9, %v3829_v29 }
 0x41c   :  { %7525 = vmatpush.msk.msra.mxu0 %vm65_vm0, %v3833_v54 }
 0x41e   :  { %3916 = vrot.lane.b32.xlu0 %v8959_v57, %s8060_s30  ;;  %v3730_v57 = vld [vmem:[%s9771_s1] sm:$0xff]  ;;  %s9889_s1 = smov 124  }
 0x41f   :  { %7526 = vmatmul.msk.f32.vlgmr.msra.gmra.mxu0 %vm93_vm1, %v3730_v57 }
 0x421   :  { %v4188_v55 = vpop.permute.xlu2 %4187 }
 0x423   :  { %4009 = vrot.lane.b32.xlu1 %v4004_v0, %s8061_s14 }
 0x426   :  { %4007 = vrot.lane.b32.xlu0 %v8970_v48, %s8061_s14 }
 0x429   :  { %v4279_v43 = vpop.permute.xlu2 %4278 }
 0x42b   :  { %4100 = vrot.lane.b32.xlu1 %v4095_v34, %s8062_s17 }
 0x42e   :  { %4098 = vrot.lane.b32.xlu0 %v8975_v1, %s8062_s17 }
 0x431   :  { %v4370_v38 = vpop.permute.xlu2 %4369 }
 0x433   :  { %4191 = vrot.lane.b32.xlu1 %v4186_v39, %s8063_s20 }
 0x436   :  { %4189 = vrot.lane.b32.xlu0 %v8981_v10, %s8063_s20 }
 0x439   :  { %v4461_v35 = vpop.permute.xlu2 %4460 }
 0x43b   :  { %4282 = vrot.lane.b32.xlu1 %v4277_v63, %s8064_s23 }
 0x43e   :  { %4280 = vrot.lane.b32.xlu0 %v8986_v18, %s8064_s23 }
 0x443   :  { %4373 = vrot.lane.b32.xlu1 %v4368_v37, %s8065_s26 }
 0x446   :  { %4371 = vrot.lane.b32.xlu0 %v8990_v8, %s8065_s26 }
 0x44b   :  { %4464 = vrot.lane.b32.xlu1 %v4459_v52, %s8066_s28 }
 0x44e   :  { %4462 = vrot.lane.b32.xlu0 %v4458_v53, %s8066_s28 }
 0x485   :  { %v3635_v61 = vpop.permute.xlu1 %3634 }
 0x486   :  { %3699 = vmatpush.msra.mxu3 %v3635_v61 }
 0x487   :  { %7513 = vmatmul.msk.f32.vlgmr.msra.gmra.mxu3 %vm960_vm15, %v3617_v14 }
 0x488   :  { %7523 = vmatpush.msk.msrb.mxu3 %vm65_vm0, %v3832_v2  ;;  %v7899_v4 = vpop.permute.xlu0 %7898 }
 0x489   :  { %v7901_v19 = vunpack.i.h.bf16 %v7899_v4  ;;  %v7900_v26 = vunpack.i.l.bf16 %v7899_v4 }
 0x48b   :  { %v3636_v46 = vsel %vm451_vm6, %v7900_v26, %v7901_v19  ;;  %v3637_v30 = vsel %vm451_vm6, %v7901_v19, %v3635_v61 }
 0x48c   :  { %3659 = vmatpush.msra.mxu1 %v3636_v46  ;;  %3679 = vmatpush.msra.mxu2 %v3637_v30 }
 0x48d   :  { %7511 = vmatmul.msk.f32.vlgmr.msra.gmra.mxu1 %vm960_vm15, %v3617_v14  ;;  %7512 = vmatmul.msk.f32.vlgmr.msra.gmra.mxu2 %vm960_vm15, %v3617_v14  ;;  %v3919_v62 = vpop.permute.xlu1 %3918 }
 0x48e   :  { %7519 = vmatpush.msk.msrb.mxu1 %vm65_vm0, %v3750_v11  ;;  %7521 = vmatpush.msk.msrb.mxu2 %vm65_vm0, %v3748_v50 }
 0x48f   :  { %7524 = vmatmul.msk.f32.vlgmr.msrb.gmra.mxu3 %vm93_vm1, %v3730_v57  ;;  %7536 = vmatpush.msk.msrb.mxu0 %vm65_vm0, %v3919_v62 }
 0x490   :  { %7527 = vmatpush.msk.msra.mxu1 %vm65_vm0, %v3831_v47  ;;  %v3917_v48 = vpop.permute.xlu0 %3916  ;;  %7537 = vmatmul.msk.f32.vlgmr.msrb.gmra.mxu0 %vm93_vm1, %v7529_v60 }
 0x491   :  { %v3920_v1 = vsel %vm265_vm4, %v3915_v6, %v3917_v48  ;;  %v3921_v3 = vsel %vm265_vm4, %v3917_v48, %v3919_v62 }
 0x492   :  { %7532 = vmatpush.msk.msra.mxu2 %vm65_vm0, %v3920_v1  ;;  %7534 = vmatpush.msk.msra.mxu3 %vm65_vm0, %v3921_v3  ;;  %v3777_v53 = vpop.f32.mrf.mxu0 }
 0x495   :  { %7520 = vmatmul.msk.f32.vlgmr.msrb.gmra.mxu1 %vm93_vm1, %v7516_v58  ;;  %7522 = vmatmul.msk.f32.vlgmr.msrb.gmra.mxu2 %vm93_vm1, %v7516_v58  ;;  %v4010_v10 = vpop.permute.xlu1 %4009 }
 0x496   :  { %7545 = vmatpush.msk.msrb.mxu3 %vm65_vm0, %v4010_v10 }
 0x497   :  { %7535 = vmatmul.msk.f32.vlgmr.msra.gmra.mxu3 %vm93_vm1, %v7529_v60 }
 0x498   :  { %v4008_v18 = vpop.permute.xlu0 %4007 }
 0x499   :  { %v4011_v20 = vsel %vm358_vm5, %v4006_v59, %v4008_v18  ;;  %v4012_v8 = vsel %vm358_vm5, %v4008_v18, %v4010_v10 }
 0x49a   :  { %7541 = vmatpush.msk.msrb.mxu1 %vm65_vm0, %v4011_v20  ;;  %7543 = vmatpush.msk.msrb.mxu2 %vm65_vm0, %v4012_v8 }
 0x49c   :  { %v3880_v54 = vpop.f32.mrf.mxu0 }
 0x49d   :  { %7528 = vmatmul.msk.f32.vlgmr.msra.gmra.mxu1 %vm93_vm1, %v3730_v57  ;;  %7533 = vmatmul.msk.f32.vlgmr.msra.gmra.mxu2 %vm93_vm1, %v7529_v60  ;;  %v4101_v27 = vpop.permute.xlu1 %4100 }
 0x49e   :  { %7554 = vmatpush.msk.msra.mxu2 %vm65_vm0, %v4101_v27 }
 0x49f   :  { %7546 = vmatmul.msk.f32.vlgmr.msrb.gmra.mxu3 %vm93_vm1, %v7538_v23 }
 0x4a0   :  { %v4099_v24 = vpop.permute.xlu0 %4098 }
 0x4a1   :  { %v4102_v25 = vsel %vm451_vm6, %v4097_v16, %v4099_v24  ;;  %v4103_v5 = vsel %vm451_vm6, %v4099_v24, %v4101_v27 }
 0x4a2   :  { %7550 = vmatpush.msk.msra.mxu0 %vm65_vm0, %v4102_v25  ;;  %7552 = vmatpush.msk.msra.mxu1 %vm65_vm0, %v4103_v5 }
 0x4a3   :  { %7551 = vmatmul.msk.f32.vlgmr.msra.gmra.mxu0 %vm93_vm1, %v7547_v44 }
 0x4a5   :  { %7542 = vmatmul.msk.f32.vlgmr.msrb.gmra.mxu1 %vm93_vm1, %v7538_v23  ;;  %7544 = vmatmul.msk.f32.vlgmr.msrb.gmra.mxu2 %vm93_vm1, %v7538_v23  ;;  %v4192_v7 = vpop.permute.xlu1 %4191 }
 0x4a6   :  { %7563 = vmatpush.msk.msrb.mxu1 %vm65_vm0, %v4192_v7 }
 0x4a8   :  { %v4190_v0 = vpop.permute.xlu0 %4189 }
 0x4a9   :  { %v4193_v40 = vsel %vm544_vm7, %v4188_v55, %v4190_v0  ;;  %v4194_v22 = vsel %vm544_vm7, %v4190_v0, %v4192_v7 }
 0x4aa   :  { %7559 = vmatpush.msk.msra.mxu3 %vm65_vm0, %v4193_v40  ;;  %7561 = vmatpush.msk.msrb.mxu0 %vm65_vm0, %v4194_v22 }
 0x4ab   :  { %7560 = vmatmul.msk.f32.vlgmr.msra.gmra.mxu3 %vm93_vm1, %v7556_v13  ;;  %7562 = vmatmul.msk.f32.vlgmr.msrb.gmra.mxu0 %vm93_vm1, %v7556_v13 }
 0x4ad   :  { %7553 = vmatmul.msk.f32.vlgmr.msra.gmra.mxu1 %vm93_vm1, %v7547_v44  ;;  %7555 = vmatmul.msk.f32.vlgmr.msra.gmra.mxu2 %vm93_vm1, %v7547_v44  ;;  %v4283_v49 = vpop.permute.xlu1 %4282 }
 0x4ae   :  { %7572 = vmatpush.msk.msra.mxu0 %vm65_vm0, %v4283_v49 }
 0x4b0   :  { %v4281_v34 = vpop.permute.xlu0 %4280 }
 0x4b1   :  { %v4284_v15 = vsel %vm637_vm8, %v4279_v43, %v4281_v34  ;;  %v4285_v31 = vsel %vm637_vm8, %v4281_v34, %v4283_v49 }
 0x4b2   :  { %7570 = vmatpush.msk.msrb.mxu3 %vm65_vm0, %v4285_v31  ;;  %7568 = vmatpush.msk.msrb.mxu2 %vm65_vm0, %v4284_v15 }
 0x4b3   :  { %7571 = vmatmul.msk.f32.vlgmr.msrb.gmra.mxu3 %vm93_vm1, %v7565_v12  ;;  %7573 = vmatmul.msk.f32.vlgmr.msra.gmra.mxu0 %vm93_vm1, %v7565_v12 }
 0x4b5   :  { %7564 = vmatmul.msk.f32.vlgmr.msrb.gmra.mxu1 %vm93_vm1, %v7556_v13  ;;  %7569 = vmatmul.msk.f32.vlgmr.msrb.gmra.mxu2 %vm93_vm1, %v7565_v12  ;;  %v4374_v33 = vpop.permute.xlu1 %4373 }
 0x4b6   :  { %7581 = vmatpush.msk.msra.mxu3 %vm65_vm0, %v4374_v33 }
 0x4b8   :  { %v4372_v39 = vpop.permute.xlu0 %4371 }
 0x4b9   :  { %v4375_v63 = vsel %vm9885_vm11, %v4370_v38, %v4372_v39  ;;  %v4376_v36 = vsel %vm9886_vm9, %v4372_v39, %v4374_v33  ;;  %vm9887_vm9 = vcmask 531456   ;;  %v4544_v33 = vpop.permute.xlu2 %4543 }
 0x4ba   :  { %7577 = vmatpush.msk.msra.mxu1 %vm65_vm0, %v4375_v63  ;;  %7579 = vmatpush.msk.msra.mxu2 %vm65_vm0, %v4376_v36  ;;  %vm9888_vm11 = vmmov %vm9887_vm9 }
 0x4bb   :  { %7582 = vmatmul.msk.f32.vlgmr.msra.gmra.mxu3 %vm93_vm1, %v7574_v21 }
 0x4bd   :  { %7578 = vmatmul.msk.f32.vlgmr.msra.gmra.mxu1 %vm93_vm1, %v7574_v21  ;;  %7580 = vmatmul.msk.f32.vlgmr.msra.gmra.mxu2 %vm93_vm1, %v7574_v21  ;;  %v4465_v37 = vpop.permute.xlu1 %4464 }
 0x4be   :  { %7590 = vmatpush.msk.msrb.mxu2 %vm65_vm0, %v4465_v37 }
 0x4c0   :  { %v4463_v42 = vpop.permute.xlu0 %4462 }
 0x4c1   :  { %v4466_v41 = vsel %vm9887_vm9, %v4461_v35, %v4463_v42  ;;  %v4467_v52 = vsel %vm9888_vm11, %v4463_v42, %v4465_v37 }
 0x4c2   :  { %7586 = vmatpush.msk.msrb.mxu0 %vm65_vm0, %v4466_v41  ;;  %7588 = vmatpush.msk.msrb.mxu1 %vm65_vm0, %v4467_v52 }
 0x4c3   :  { %7587 = vmatmul.msk.f32.vlgmr.msrb.gmra.mxu0 %vm93_vm1, %v7583_v45 }
 0x4c5   :  { %7589 = vmatmul.msk.f32.vlgmr.msrb.gmra.mxu1 %vm93_vm1, %v7583_v45  ;;  %7591 = vmatmul.msk.f32.vlgmr.msrb.gmra.mxu2 %vm93_vm1, %v7583_v45  ;;  %vm9900_vm1 = vcmask 539648  }
 0x50a   :  { %v9160_v50 = vpop.f32.mrf.mxu1  ;;  %v9162_v29 = vpop.f32.mrf.mxu3 }
 0x50d   :  { %v3988_v14 = vpop.f32.mrf.mxu0 }
 0x510   :  { %v9164_v47 = vpop.f32.mrf.mxu2 }
 0x512   :  { %v3797_v58 = vpop.f32.mrf.mxu1  ;;  %v3860_v57 = vpop.f32.mrf.mxu3 }
 0x513   :  { %v3861_v11 = vadd.f32 %v3860_v57, %v3777_v53  ;;  %v3881_v1 = vadd.f32 %v3880_v54, %v3797_v58 }
 0x518   :  { %v3817_v9 = vpop.f32.mrf.mxu2 }
 0x51a   :  { %v3900_v6 = vpop.f32.mrf.mxu1  ;;  %v3968_v61 = vpop.f32.mrf.mxu3 }
 0x51b   :  { %v3992_v10 = vadd.f32 %v3968_v61, %v3881_v1  ;;  %v3901_v18 = vadd.f32 %v3900_v6, %v3817_v9  ;;  %v6731_v1 = vld [vmem:[#allocation2 + $0x18] sm:$0xff] }
 0x51d   :  { %v3993_v24 = vadd.f32 %v3988_v14, %v3901_v18 }
 0x520   :  { %v3948_v2 = vpop.f32.mrf.mxu2  ;;  %v4130_v19 = vpop.f32.mrf.mxu0 }
 0x521   :  { %v3991_v59 = vadd.f32 %v3948_v2, %v3861_v11 }
 0x522   :  { %v4039_v4 = vpop.f32.mrf.mxu1  ;;  %v4079_v26 = vpop.f32.mrf.mxu3 }
 0x523   :  { %v4082_v16 = vadd.f32 %v4039_v4, %v3991_v59  ;;  %v4084_v7 = vadd.f32 %v4079_v26, %v3993_v24 }
 0x525   :  { %v4173_v8 = vadd.f32 %v4130_v19, %v4082_v16 }
 0x528   :  { %v4059_v46 = vpop.f32.mrf.mxu2  ;;  %v4241_v62 = vpop.f32.mrf.mxu0 }
 0x529   :  { %v4083_v20 = vadd.f32 %v4059_v46, %v3992_v10 }
 0x52a   :  { %v4150_v30 = vpop.f32.mrf.mxu1 }
 0x52b   :  { %v4174_v44 = vadd.f32 %v4150_v30, %v4083_v20 }
 0x52d   :  { %v4265_v13 = vadd.f32 %v4241_v62, %v4174_v44 }
 0x52e   :  { %v4221_v48 = vpop.f32.mrf.mxu3 }
 0x52f   :  { %v4264_v25 = vadd.f32 %v4221_v48, %v4173_v8  ;;  %v4572_v48 = vld [vmem:[%s9773_s3] sm:$0xff] }
 0x530   :  { %v4170_v60 = vpop.f32.mrf.mxu2  ;;  %v4352_v23 = vpop.f32.mrf.mxu0 }
 0x531   :  { %v4175_v40 = vadd.f32 %v4170_v60, %v4084_v7 }
 0x532   :  { %v4261_v3 = vpop.f32.mrf.mxu1 }
 0x533   :  { %v4266_v12 = vadd.f32 %v4261_v3, %v4175_v40 }
 0x535   :  { %v4357_v36 = vadd.f32 %v4352_v23, %v4266_v12 }
 0x536   :  { %v4332_v5 = vpop.f32.mrf.mxu3 }
 0x537   :  { %v4356_v22 = vadd.f32 %v4332_v5, %v4265_v13 }
 0x538   :  { %v4312_v27 = vpop.f32.mrf.mxu2 }
 0x539   :  { %v4355_v0 = vadd.f32 %v4312_v27, %v4264_v25  ;;  %v7592_v27 = vld [vmem:[%s9773_s3 + $0x8] sm:$0xff] }
 0x53a   :  { %v4403_v55 = vpop.f32.mrf.mxu1 }
 0x53b   :  { %v4446_v43 = vadd.f32 %v4403_v55, %v4355_v0 }
 0x53e   :  { %v4443_v63 = vpop.f32.mrf.mxu3 }
 0x53f   :  { %v4448_v42 = vadd.f32 %v4443_v63, %v4357_v36 }
 0x540   :  { %v4423_v49 = vpop.f32.mrf.mxu2  ;;  %v4494_v34 = vpop.f32.mrf.mxu0 }
 0x541   :  { %v4447_v15 = vadd.f32 %v4423_v49, %v4356_v22  ;;  %v4537_v31 = vadd.f32 %v4494_v34, %v4446_v43  ;;  %v7599_v49 = vld [vmem:[%s9773_s3 + $0x10] sm:$0xff]  ;;  %v5274_v34 = vld [vmem:[%s9774_s4] sm:$0xff] }
 0x542   :  { %v4514_v38 = vpop.f32.mrf.mxu1 }
 0x543   :  { %v4546_v39 = vadd.f32 %v4544_v33, %v4537_v31  ;;  %v4538_v21 = vadd.f32 %v4514_v38, %v4447_v15  ;;  %v7603_v38 = vld [vmem:[%s9773_s3 + $0x18] sm:$0xff] }
 0x545   :  { %v4549_v37 = vmax.f32 %v4546_v39, 0.0  ;;  %v4547_v35 = vadd.f32 %v4544_v33, %v4538_v21 }
 0x547   :  { %v4550_v45 = vmax.f32 %v4547_v35, 0.0  ;;  %v4552_v41 = vmul.f32 %v4549_v37, %v9884_v17  ;;  %v9899_v35 = vld [vmem:[#allocation10_spill] sm:$0xff] }
 0x548   :  { %v4534_v52 = vpop.f32.mrf.mxu2 }
 0x549   :  { %v4539_v53 = vadd.f32 %v4534_v52, %v4448_v42  ;;  %4558 = vrot.lane.b32.xlu0 %v4552_v41, %s8068_s9  ;;  %v4553_v54 = vmul.f32 %v4550_v45, %v9883_v56  ;;  %v7140_v41 = vld [vmem:[%s9776_s6] sm:$0xff] }
 0x54b   :  { %v4548_v58 = vadd.f32 %v4544_v33, %v4539_v53  ;;  %4560 = vrot.lane.b32.xlu1 %v4553_v54, %s8068_s9 }
 0x54d   :  { %v4551_v57 = vmax.f32 %v4548_v58, 0.0 }
 0x54f   :  { %v4554_v9 = vmul.f32 %v4551_v57, %v9882_v51 }
 0x551   :  { %4562 = vrot.lane.b32.xlu2 %v4554_v9, %s8068_s9 }
 0x5ab   :  { %v4563_v14 = vpop.permute.xlu2 %4562 }
 0x5bb   :  { %v4559_v6 = vpop.permute.xlu0 %4558 }
 0x5bc   :  { %4569 = vst.msk [vmem:[#allocation2] sm:$0xff] %vm935_vm12, %v4559_v6 }
 0x5bd   :  { %v4561_v61 = vpop.permute.xlu1 %4560 }
 0x5be   :  { %v9174_v2 = vsel %vm929_vm13, %v4559_v6, %v4561_v61  ;;  %v4565_v4 = vsel %vm929_vm13, %v4561_v61, %v4563_v14  ;;  %v7607_v6 = vld [vmem:[%s9773_s3 + $0x20] sm:$0xff] }
 0x5bf   :  { %4571 = vst.msk [vmem:[#allocation2 + $0x10] sm:$0xff] %vm938_vm14, %v4565_v4  ;;  %v7159_v52 = vmul.f32 %v9174_v2, %v9899_v35 }
 0x5c3   :  { %v9178_v19 = vld [vmem:[#allocation2] sm:$0xff] }
 0x5c4   :  { %v9182_v26 = vpack.i.bf16 %v9174_v2, %v9178_v19  ;;  %v8007_v3 = vpack.i.bf16 %v9178_v19, %v6731_v1  ;;  %v7158_v42 = vmul.f32 %v9178_v19, %v9899_v35 }
 0x5c6   :  { %7908 = vrot.lane.b32.xlu2 %v9182_v26, %s8059_s27  ;;  %7903 = vrot.lane.b32.xlu0 %v9182_v26, %s8058_s10  ;;  %v9188_v46 = vld [vmem:[#allocation2 + $0x10] sm:$0xff] }
 0x5c7   :  { %4584 = vrot.lane.b32.xlu1 %v9188_v46, %s8058_s10  ;;  %v7917_v30 = vpack.i.bf16 %v9188_v46, %v9174_v2  ;;  %s9890_s10 = smov 104   ;;  %v8002_v10 = vpack.i.bf16 %v6731_v1, %v9188_v46 }
 0x5ce   :  { %4729 = vrot.lane.b32.xlu2 %v9178_v19, %s8060_s30  ;;  %4658 = vrot.lane.b32.xlu0 %v9188_v46, %s8059_s27  ;;  %s9891_s27 = smov 84  }
 0x5cf   :  { %7918 = vrot.lane.b32.xlu1 %v7917_v30, %s8060_s30  ;;  %s9892_s30 = smov 88  }
 0x5d6   :  { %4811 = vrot.lane.b32.xlu2 %v9188_v46, %s8061_s14  ;;  %7913 = vrot.lane.b32.xlu0 %v9182_v26, %s8061_s14  ;;  %s9893_s14 = smov 68  }
 0x5d7   :  { %7923 = vrot.lane.b32.xlu1 %v9182_v26, %s8062_s17 }
 0x5de   :  { %4967 = vrot.lane.b32.xlu2 %v9188_v46, %s8063_s20  ;;  %4889 = vrot.lane.b32.xlu0 %v9188_v46, %s8062_s17 }
 0x5df   :  { %7928 = vrot.lane.b32.xlu1 %v9182_v26, %s8063_s20 }
 0x5e6   :  { %7933 = vrot.lane.b32.xlu2 %v9182_v26, %s8065_s26  ;;  %7938 = vrot.lane.b32.xlu0 %v7917_v30, %s8064_s23 }
 0x5e7   :  { %5041 = vrot.lane.b32.xlu1 %v9178_v19, %s8064_s23 }
 0x5ee   :  { %5201 = vrot.lane.b32.xlu2 %v9188_v46, %s8066_s28  ;;  %7943 = vrot.lane.b32.xlu0 %v9182_v26, %s8066_s28  ;;  %s9895_s28 = smov 64  }
 0x5ef   :  { %5123 = vrot.lane.b32.xlu1 %v9188_v46, %s8065_s26  ;;  %s9894_s26 = smov 48  }
 0x5f6   :  { %7953 = vrot.lane.b32.xlu2 %v9182_v26, %s8070_s16  ;;  %7948 = vrot.lane.b32.xlu0 %v9182_v26, %s8071_s18 }
 0x5f7   :  { %5289 = vrot.lane.b32.xlu1 %v9188_v46, %s8071_s18  ;;  %s9897_s18 = smov 46  }
 0x5fe   :  { %5505 = vrot.lane.b32.xlu2 %v9188_v46, %s8072_s19  ;;  %7958 = vrot.lane.b32.xlu0 %v9182_v26, %s8072_s19 }
 0x5ff   :  { %5427 = vrot.lane.b32.xlu1 %v9188_v46, %s8070_s16  ;;  %s9896_s16 = smov 47  }
 0x606   :  { %7968 = vrot.lane.b32.xlu2 %v7917_v30, %s8073_s21  ;;  %7963 = vrot.lane.b32.xlu0 %v9182_v26, %s9889_s1 }
 0x607   :  { %5583 = vrot.lane.b32.xlu1 %v9188_v46, %s9889_s1 }
 0x60e   :  { %5936 = vrot.lane.b32.xlu2 %v9178_v19, %s9890_s10  ;;  %5657 = vrot.lane.b32.xlu0 %v9178_v19, %s8073_s21 }
 0x60f   :  { %7973 = vrot.lane.b32.xlu1 %v7917_v30, %s9890_s10 }
 0x616   :  { %7983 = vrot.lane.b32.xlu2 %v9182_v26, %s9891_s27  ;;  %7978 = vrot.lane.b32.xlu0 %v9182_v26, %s9892_s30 }
 0x617   :  { %6018 = vrot.lane.b32.xlu1 %v9188_v46, %s9892_s30 }
 0x61e   :  { %6375 = vrot.lane.b32.xlu2 %v9188_v46, %s9893_s14  ;;  %7988 = vrot.lane.b32.xlu0 %v9182_v26, %s9893_s14 }
 0x61f   :  { %6297 = vrot.lane.b32.xlu1 %v9188_v46, %s9891_s27 }
 0x620   :  { %v7909_v11 = vpop.permute.xlu2 %7908 }
 0x621   :  { %v7911_v62 = vunpack.i.h.bf16 %v7909_v11  ;;  %v7910_v59 = vunpack.i.l.bf16 %v7909_v11 }
 0x623   :  { %v9260_v60 = vsel %vm175_vm3, %v7910_v59, %v7911_v62 }
 0x624   :  { %4683 = vmatpush.msra.mxu2 %v9260_v60 }
 0x625   :  { %7596 = vmatmul.msk.f32.vlgmr.msra.gmra.mxu2 %vm960_vm15, %v4572_v48 }
 0x626   :  { %7998 = vrot.lane.b32.xlu2 %v9182_v26, %s9894_s26  ;;  %7993 = vrot.lane.b32.xlu0 %v9182_v26, %s9895_s28 }
 0x627   :  { %6654 = vrot.lane.b32.xlu1 %v9188_v46, %s9895_s28 }
 0x628   :  { %v4730_v16 = vpop.permute.xlu2 %4729 }
 0x62e   :  { %8008 = vrot.lane.b32.xlu2 %v8007_v3, %s9896_s16  ;;  %8003 = vrot.lane.b32.xlu0 %v8002_v10, %s9894_s26 }
 0x62f   :  { %8023 = vrot.lane.b32.xlu1 %v7917_v30, %s9896_s16  ;;  %v7611_v30 = vld [vmem:[%s9773_s3 + $0x28] sm:$0xff] }
 0x630   :  { %v9285_v24 = vpop.permute.xlu2 %4811 }
 0x636   :  { %8018 = vrot.lane.b32.xlu2 %v9182_v26, %s8082_s15  ;;  %8013 = vrot.lane.b32.xlu0 %v9182_v26, %s9897_s18 }
 0x637   :  { %8028 = vrot.lane.b32.xlu1 %v8002_v10, %s9897_s18 }
 0x638   :  { %v7904_v18 = vpop.permute.xlu0 %7903  ;;  %v9316_v40 = vpop.permute.xlu2 %4967 }
 0x639   :  { %v7906_v20 = vunpack.i.h.bf16 %v7904_v18  ;;  %v7905_v8 = vunpack.i.l.bf16 %v7904_v18  ;;  %v9280_v23 = vpop.permute.xlu1 %4584 }
 0x63a   :  { %4649 = vmatpush.msra.mxu1 %v9280_v23 }
 0x63b   :  { %v9289_v44 = vsel %vm90_vm2, %v7905_v8, %v7906_v20  ;;  %v9293_v25 = vsel %vm90_vm2, %v7906_v20, %v9280_v23  ;;  %7595 = vmatmul.msk.f32.vlgmr.msra.gmra.mxu1 %vm960_vm15, %v7592_v27  ;;  %v7615_v20 = vld [vmem:[%s9773_s3 + $0x30] sm:$0xff]  ;;  %vm9901_vm2 = vmmov %vm9900_vm1 }
 0x63c   :  { %4609 = vmatpush.msrb.mxu3 %v9289_v44  ;;  %4629 = vmatpush.msra.mxu0 %v9293_v25 }
 0x63d   :  { %7593 = vmatmul.msk.f32.vlgmr.msrb.gmra.mxu3 %vm960_vm15, %v7592_v27  ;;  %7594 = vmatmul.msk.f32.vlgmr.msra.gmra.mxu0 %vm960_vm15, %v7592_v27 }
 0x63e   :  { %7064 = vrot.lane.b32.xlu2 %v9188_v46, %s9898_s12  ;;  %6983 = vrot.lane.b32.xlu0 %v9188_v46, %s8082_s15 }
 0x63f   :  { %8033 = vrot.lane.b32.xlu1 %v9182_v26, %s9898_s12 }
 0x640   :  { %v9306_v5 = vpop.permute.xlu0 %4658  ;;  %v7934_v45 = vpop.permute.xlu2 %7933 }
 0x641   :  { %4723 = vmatpush.msrb.mxu0 %v9306_v5  ;;  %v9311_v55 = vsel %vm175_vm3, %v7911_v62, %v9306_v5  ;;  %v7919_v7 = vpop.permute.xlu1 %7918  ;;  %v7936_v58 = vunpack.i.h.bf16 %v7934_v45  ;;  %v7935_v57 = vunpack.i.l.bf16 %v7934_v45  ;;  %v7160_v62 = vmul.f32 %v9188_v46, %v9899_v35  ;;  %vm9902_vm3 = vmmov %vm9887_vm9 }
 0x642   :  { %4703 = vmatpush.msra.mxu3 %v9311_v55  ;;  %v9314_v0 = vunpack.i.h.bf16 %v7919_v7  ;;  %v7920_v13 = vunpack.i.l.bf16 %v7919_v7 }
 0x643   :  { %v9396_v11 = vsel %vm9900_vm1, %v7935_v57, %v7936_v58  ;;  %vm9910_vm1 = vcmask 883712  }
 0x644   :  { %v9319_v22 = vsel %vm265_vm4, %v4730_v16, %v7920_v13  ;;  %v9323_v43 = vsel %vm265_vm4, %v7920_v13, %v9314_v0  ;;  %4798 = vmatpush.msrb.mxu3 %v9314_v0  ;;  %vm9903_vm4 = vmmov %vm9902_vm3 }
 0x645   :  { %7598 = vmatmul.msk.f32.vlgmr.msrb.gmra.mxu0 %vm960_vm15, %v4572_v48  ;;  %4758 = vmatpush.msrb.mxu1 %v9319_v22 }
 0x646   :  { %4778 = vmatpush.msrb.mxu2 %v9323_v43  ;;  %7597 = vmatmul.msk.f32.vlgmr.msra.gmra.mxu3 %vm960_vm15, %v4572_v48 }
 0x647   :  { %7066 = vrot.lane.b32.xlu1 %v6731_v1, %s9898_s12  ;;  %7600 = vmatmul.msk.f32.vlgmr.msrb.gmra.mxu1 %vm960_vm15, %v7599_v49 }
 0x648   :  { %4876 = vmatpush.msra.mxu2 %v9285_v24  ;;  %v7914_v12 = vpop.permute.xlu0 %7913  ;;  %5277 = vperm.xlu2 %7896, %v5274_v34   ;;  %v9415_v18 = vpop.permute.xlu2 %5201 }
 0x649   :  { %7601 = vmatmul.msk.f32.vlgmr.msrb.gmra.mxu2 %vm960_vm15, %v7599_v49  ;;  %v7916_v15 = vunpack.i.h.bf16 %v7914_v12  ;;  %v7915_v31 = vunpack.i.l.bf16 %v7914_v12  ;;  %v7924_v33 = vpop.permute.xlu1 %7923  ;;  %6985 = vrot.lane.b32.xlu0 %v6731_v1, %s8082_s15 }
 0x64a   :  { %v7926_v39 = vunpack.i.h.bf16 %v7924_v33  ;;  %v7925_v21 = vunpack.i.l.bf16 %v7924_v33 }
 0x64b   :  { %v9345_v63 = vsel %vm358_vm5, %v7915_v31, %v7916_v15  ;;  %v9349_v36 = vsel %vm358_vm5, %v7916_v15, %v9285_v24  ;;  %v7619_v15 = vld [vmem:[%s9773_s3 + $0x38] sm:$0xff]  ;;  %vm9904_vm5 = vcmask 1039360  }
 0x64c   :  { %4836 = vmatpush.msra.mxu0 %v9345_v63  ;;  %4856 = vmatpush.msra.mxu1 %v9349_v36  ;;  %v9354_v37 = vsel %vm451_vm6, %v7925_v21, %v7926_v39 }
 0x64d   :  { %7604 = vmatmul.msk.f32.vlgmr.msra.gmra.mxu0 %vm960_vm15, %v7603_v38  ;;  %4914 = vmatpush.msra.mxu3 %v9354_v37 }
 0x64e   :  { %7602 = vmatmul.msk.f32.vlgmr.msrb.gmra.mxu3 %vm960_vm15, %v7599_v49 }
 0x64f   :  { %7164 = vrot.lane.b32.xlu1 %v7158_v42, %s8062_s17  ;;  %7605 = vmatmul.msk.f32.vlgmr.msra.gmra.mxu1 %vm960_vm15, %v7603_v38 }
 0x650   :  { %v9368_v53 = vpop.permute.xlu0 %4889  ;;  %7166 = vrot.lane.b32.xlu2 %v7159_v52, %s8062_s17  ;;  %v7954_v31 = vpop.permute.xlu2 %7953  ;;  %v7623_v52 = vld [vmem:[%s9773_s3 + $0x40] sm:$0xff] }
 0x651   :  { %7606 = vmatmul.msk.f32.vlgmr.msra.gmra.mxu2 %vm960_vm15, %v7603_v38  ;;  %v9374_v54 = vsel %vm451_vm6, %v7926_v39, %v9368_v53  ;;  %v7929_v9 = vpop.permute.xlu1 %7928  ;;  %7143 = vperm.xlu0 %7759, %v7140_v41   ;;  %v7956_v21 = vunpack.i.h.bf16 %v7954_v31  ;;  %v7955_v35 = vunpack.i.l.bf16 %v7954_v31 }
 0x652   :  { %4954 = vmatpush.msrb.mxu1 %v9368_v53  ;;  %v7931_v14 = vunpack.i.h.bf16 %v7929_v9  ;;  %v7930_v61 = vunpack.i.l.bf16 %v7929_v9  ;;  %4934 = vmatpush.msrb.mxu0 %v9374_v54 }
 0x654   :  { %5032 = vmatpush.msra.mxu0 %v9316_v40  ;;  %v9383_v4 = vsel %vm544_vm7, %v7930_v61, %v7931_v14  ;;  %v9387_v26 = vsel %vm544_vm7, %v7931_v14, %v9316_v40  ;;  %vm9905_vm7 = vmmov %vm9904_vm5 }
 0x655   :  { %7609 = vmatmul.msk.f32.vlgmr.msrb.gmra.mxu0 %vm960_vm15, %v7607_v6  ;;  %4992 = vmatpush.msrb.mxu2 %v9383_v4 }
 0x656   :  { %5012 = vmatpush.msrb.mxu3 %v9387_v26  ;;  %5148 = vmatpush.msrb.mxu0 %v9396_v11 }
 0x657   :  { %7608 = vmatmul.msk.f32.vlgmr.msra.gmra.mxu3 %vm960_vm15, %v7607_v6  ;;  %7610 = vmatmul.msk.f32.vlgmr.msrb.gmra.mxu1 %vm960_vm15, %v7607_v6 }
 0x658   :  { %v7939_v59 = vpop.permute.xlu0 %7938  ;;  %v5506_v57 = vpop.permute.xlu2 %5505 }
 0x659   :  { %7612 = vmatmul.msk.f32.vlgmr.msrb.gmra.mxu2 %vm960_vm15, %v7611_v30  ;;  %v9404_v48 = vunpack.i.h.bf16 %v7939_v59  ;;  %v7940_v1 = vunpack.i.l.bf16 %v7939_v59  ;;  %v5042_v3 = vpop.permute.xlu1 %5041  ;;  %7168 = vrot.lane.b32.xlu0 %v7160_v62, %s8062_s17  ;;  %v5283_v62 = vld [vmem:[%s9775_s5] sm:$0xff] }
 0x65b   :  { %5110 = vmatpush.msra.mxu3 %v9404_v48  ;;  %v9409_v10 = vsel %vm637_vm8, %v5042_v3, %v7940_v1  ;;  %v9413_v16 = vsel %vm637_vm8, %v7940_v1, %v9404_v48  ;;  %vm9906_vm8 = vcmask 1022976  }
 0x65c   :  { %5070 = vmatpush.msra.mxu1 %v9409_v10  ;;  %5090 = vmatpush.msra.mxu2 %v9413_v16  ;;  %vm9907_vm9 = vmmov %vm9906_vm8 }
 0x65d   :  { %7614 = vmatmul.msk.f32.vlgmr.msra.gmra.mxu0 %vm960_vm15, %v7611_v30 }
 0x65f   :  { %7613 = vmatmul.msk.f32.vlgmr.msrb.gmra.mxu3 %vm960_vm15, %v7611_v30  ;;  %7616 = vmatmul.msk.f32.vlgmr.msra.gmra.mxu1 %vm960_vm15, %v7615_v20 }
 0x660   :  { %v7944_v8 = vpop.permute.xlu0 %7943 }
 0x661   :  { %7617 = vmatmul.msk.f32.vlgmr.msra.gmra.mxu2 %vm960_vm15, %v7615_v20  ;;  %v7946_v27 = vunpack.i.h.bf16 %v7944_v8  ;;  %v7945_v7 = vunpack.i.l.bf16 %v7944_v8  ;;  %v9426_v13 = vpop.permute.xlu1 %5123 }
 0x662   :  { %5188 = vmatpush.msrb.mxu2 %v9426_v13  ;;  %v9431_v49 = vsel %vm9901_vm2, %v7936_v58, %v9426_v13  ;;  %v5429_v58 = vsel %vm1809_vm10, %v7955_v35, %v7956_v21  ;;  %vm9911_vm2 = vmmov %vm9910_vm1  ;;  %v7638_v35 = vld [vmem:[%s9775_s5 + $0x18] sm:$0xff] }
 0x663   :  { %v9434_v34 = vsel %vm9902_vm3, %v7945_v7, %v7946_v27  ;;  %v9438_v12 = vsel %vm9903_vm4, %v7946_v27, %v9415_v18  ;;  %5168 = vmatpush.msrb.mxu1 %v9431_v49  ;;  %v7634_v7 = vld [vmem:[%s9775_s5 + $0x10] sm:$0xff]  ;;  %vm9912_vm3 = vcmask 850944  }
 0x664   :  { %5226 = vmatpush.msrb.mxu3 %v9434_v34  ;;  %5246 = vmatpush.msra.mxu0 %v9438_v12  ;;  %vm9913_vm4 = vmmov %vm9912_vm3 }
 0x665   :  { %5266 = vmatpush.msra.mxu1 %v9415_v18  ;;  %7620 = vmatmul.msk.f32.vlgmr.msrb.gmra.mxu0 %vm960_vm15, %v7619_v15 }
 0x667   :  { %7618 = vmatmul.msk.f32.vlgmr.msra.gmra.mxu3 %vm960_vm15, %v7615_v20  ;;  %7621 = vmatmul.msk.f32.vlgmr.msrb.gmra.mxu1 %vm960_vm15, %v7619_v15  ;;  %v7969_v20 = vpop.permute.xlu2 %7968 }
 0x668   :  { %v7949_v33 = vpop.permute.xlu0 %7948  ;;  %5377 = vmatpush.msrb.mxu1 %v9178_v19  ;;  %v7627_v19 = vld [vmem:[%s9775_s5 + $0x8] sm:$0xff]  ;;  %v7970_v31 = vunpack.i.l.bf16 %v7969_v20 }
 0x669   :  { %7622 = vmatmul.msk.f32.vlgmr.msrb.gmra.mxu2 %vm960_vm15, %v7619_v15  ;;  %v7951_v38 = vunpack.i.h.bf16 %v7949_v33  ;;  %v7950_v39 = vunpack.i.l.bf16 %v7949_v33  ;;  %v5290_v42 = vpop.permute.xlu1 %5289  ;;  %v7971_v15 = vunpack.i.h.bf16 %v7969_v20 }
 0x66a   :  { %5354 = vmatpush.msrb.mxu0 %v5290_v42 }
 0x66b   :  { %v5291_v45 = vsel %vm9904_vm5, %v7950_v39, %v7951_v38  ;;  %v5292_v41 = vsel %vm9905_vm7, %v7951_v38, %v5290_v42  ;;  %v5664_v39 = vsel %vm9910_vm1, %v7970_v31, %v7971_v15  ;;  %v7642_v42 = vld [vmem:[%s9775_s5 + $0x20] sm:$0xff]  ;;  %vm9914_vm5 = vcmask 719872  }
 0x66c   :  { %5314 = vmatpush.msra.mxu2 %v5291_v45  ;;  %5334 = vmatpush.msra.mxu3 %v5292_v41  ;;  %v7646_v45 = vld [vmem:[%s9775_s5 + $0x28] sm:$0xff]  ;;  %vm9915_vm7 = vmmov %vm9914_vm5  ;;  %vm9920_vm1 = vcmask 523264  }
 0x66d   :  { %7625 = vmatmul.msk.f32.vlgmr.msra.gmra.mxu0 %vm960_vm15, %v7623_v52 }
 0x66e   :  { %5397 = vmatpush.msrb.mxu2 %v9174_v2  ;;  %5452 = vmatpush.msra.mxu0 %v5429_v58  ;;  %v7654_v58 = vld [vmem:[%s9775_s5 + $0x38] sm:$0xff] }
 0x66f   :  { %7624 = vmatmul.msk.f32.vlgmr.msrb.gmra.mxu3 %vm960_vm15, %v7623_v52  ;;  %7626 = vmatmul.msk.f32.vlgmr.msra.gmra.mxu1 %vm960_vm15, %v7623_v52 }
 0x670   :  { %5417 = vmatpush.msrb.mxu3 %v9188_v46  ;;  %v7959_v9 = vpop.permute.xlu0 %7958 }
 0x671   :  { %7628 = vmatmul.msk.f32.vlgmr.msra.gmra.mxu2 %vm960_vm15, %v7627_v19  ;;  %v7961_v2 = vunpack.i.h.bf16 %v7959_v9  ;;  %v7960_v6 = vunpack.i.l.bf16 %v7959_v9  ;;  %v5428_v14 = vpop.permute.xlu1 %5427 }
 0x672   :  { %v5430_v61 = vsel %vm1809_vm10, %v7956_v21, %v5428_v14  ;;  %5492 = vmatpush.msra.mxu2 %v5428_v14  ;;  %vm9908_vm10 = vcmask 1014784  }
 0x673   :  { %5472 = vmatpush.msra.mxu1 %v5430_v61  ;;  %v5508_v30 = vsel %vm9906_vm8, %v7961_v2, %v5506_v57  ;;  %v5507_v59 = vsel %vm9907_vm9, %v7960_v6, %v7961_v2  ;;  %vm9909_vm11 = vmmov %vm9908_vm10  ;;  %v7662_v2 = vld [vmem:[%s9775_s5 + $0x48] sm:$0xff]  ;;  %v7666_v6 = vld [vmem:[%s9775_s5 + $0x50] sm:$0xff]  ;;  %vm9916_vm8 = vcmask 687104  }
 0x674   :  { %vm9917_vm9 = vmmov %vm9916_vm8 }
 0x675   :  { %7630 = vmatmul.msk.f32.vlgmr.msrb.gmra.mxu0 %vm960_vm15, %v7627_v19 }
 0x676   :  { %5550 = vmatpush.msrb.mxu0 %v5508_v30 }
 0x677   :  { %7629 = vmatmul.msk.f32.vlgmr.msra.gmra.mxu3 %vm960_vm15, %v7627_v19  ;;  %7631 = vmatmul.msk.f32.vlgmr.msrb.gmra.mxu1 %vm960_vm15, %v5283_v62 }
 0x678   :  { %5530 = vmatpush.msra.mxu3 %v5507_v59  ;;  %v7964_v46 = vpop.permute.xlu0 %7963  ;;  %5570 = vmatpush.msrb.mxu1 %v5506_v57 }
 0x679   :  { %7632 = vmatmul.msk.f32.vlgmr.msrb.gmra.mxu2 %vm960_vm15, %v5283_v62  ;;  %v7966_v1 = vunpack.i.h.bf16 %v7964_v46  ;;  %v7965_v3 = vunpack.i.l.bf16 %v7964_v46  ;;  %v5584_v8 = vpop.permute.xlu1 %5583 }
 0x67b   :  { %v5585_v27 = vsel %vm9908_vm10, %v7965_v3, %v7966_v1  ;;  %v5586_v33 = vsel %vm9909_vm11, %v7966_v1, %v5584_v8  ;;  %v7678_v1 = vld [vmem:[%s9775_s5 + $0x68] sm:$0xff]  ;;  %vm9918_vm10 = vcmask 556032  }
 0x67c   :  { %5608 = vmatpush.msrb.mxu2 %v5585_v27  ;;  %vm9919_vm11 = vmmov %vm9918_vm10 }
 0x67d   :  { %7635 = vmatmul.msk.f32.vlgmr.msra.gmra.mxu0 %vm960_vm15, %v7634_v7 }
 0x67e   :  { %5648 = vmatpush.msra.mxu0 %v5584_v8 }
 0x67f   :  { %7633 = vmatmul.msk.f32.vlgmr.msrb.gmra.mxu3 %vm960_vm15, %v5283_v62  ;;  %7636 = vmatmul.msk.f32.vlgmr.msra.gmra.mxu1 %vm960_vm15, %v7634_v7 }
 0x680   :  { %5628 = vmatpush.msrb.mxu3 %v5586_v33  ;;  %v5658_v38 = vpop.permute.xlu0 %5657 }
 0x681   :  { %7637 = vmatmul.msk.f32.vlgmr.msra.gmra.mxu2 %vm960_vm15, %v7634_v7  ;;  %v5663_v21 = vsel %vm9911_vm2, %v5658_v38, %v7970_v31  ;;  %vm9921_vm2 = vmmov %vm9920_vm1 }
 0x682   :  { %5706 = vmatpush.msra.mxu2 %v5664_v39  ;;  %5686 = vmatpush.msra.mxu1 %v5663_v21 }
 0x685   :  { %7640 = vmatmul.msk.f32.vlgmr.msrb.gmra.mxu0 %vm960_vm15, %v7638_v35 }
 0x686   :  { %5753 = vmatpush.msrb.mxu0 %v9260_v60  ;;  %v7974_v60 = vpop.permute.xlu1 %7973 }
 0x687   :  { %7639 = vmatmul.msk.f32.vlgmr.msra.gmra.mxu3 %vm960_vm15, %v7638_v35  ;;  %7641 = vmatmul.msk.f32.vlgmr.msrb.gmra.mxu1 %vm960_vm15, %v7638_v35  ;;  %v7976_v41 = vunpack.i.h.bf16 %v7974_v60 }
 0x688   :  { %5726 = vmatpush.msra.mxu3 %v7971_v15  ;;  %5773 = vmatpush.msrb.mxu1 %v9311_v55  ;;  %v7975_v55 = vunpack.i.l.bf16 %v7974_v60  ;;  %v7979_v52 = vpop.permute.xlu0 %7978  ;;  %v7682_v15 = vld [vmem:[%s9775_s5 + $0x70] sm:$0xff] }
 0x689   :  { %7643 = vmatmul.msk.f32.vlgmr.msrb.gmra.mxu2 %vm960_vm15, %v7642_v42  ;;  %v7980_v19 = vunpack.i.l.bf16 %v7979_v52 }
 0x68a   :  { %5793 = vmatpush.msrb.mxu2 %v9306_v5  ;;  %v7650_v5 = vld [vmem:[%s9775_s5 + $0x30] sm:$0xff] }
 0x68d   :  { %7645 = vmatmul.msk.f32.vlgmr.msra.gmra.mxu0 %vm960_vm15, %v7642_v42 }
 0x68e   :  { %5840 = vmatpush.msra.mxu0 %v9293_v25  ;;  %v5937_v25 = vpop.permute.xlu2 %5936  ;;  %v6019_v57 = vpop.permute.xlu1 %6018 }
 0x68f   :  { %7644 = vmatmul.msk.f32.vlgmr.msrb.gmra.mxu3 %vm960_vm15, %v7642_v42  ;;  %7647 = vmatmul.msk.f32.vlgmr.msra.gmra.mxu1 %vm960_vm15, %v7646_v45 }
 0x690   :  { %5820 = vmatpush.msrb.mxu3 %v9289_v44  ;;  %5860 = vmatpush.msra.mxu1 %v9280_v23  ;;  %v5942_v23 = vsel %vm9912_vm3, %v5937_v25, %v7975_v55  ;;  %v5943_v44 = vsel %vm9913_vm4, %v7975_v55, %v7976_v41  ;;  %v7989_v61 = vpop.permute.xlu0 %7988  ;;  %vm9922_vm3 = vcmask 392192  }
 0x691   :  { %7648 = vmatmul.msk.f32.vlgmr.msra.gmra.mxu2 %vm960_vm15, %v7646_v45  ;;  %v7990_v62 = vunpack.i.l.bf16 %v7989_v61  ;;  %vm9923_vm4 = vmmov %vm9922_vm3 }
 0x692   :  { %5887 = vmatpush.msra.mxu2 %v9319_v22  ;;  %v7981_v22 = vunpack.i.h.bf16 %v7979_v52 }
 0x694   :  { %v6021_v9 = vsel %vm9915_vm7, %v7981_v22, %v6019_v57  ;;  %vm9925_vm7 = vcmask 384000  }
 0x695   :  { %7651 = vmatmul.msk.f32.vlgmr.msrb.gmra.mxu0 %vm960_vm15, %v7650_v5 }
 0x696   :  { %5927 = vmatpush.msrb.mxu0 %v9314_v0  ;;  %v7658_v0 = vld [vmem:[%s9775_s5 + $0x40] sm:$0xff]  ;;  %v7984_v14 = vpop.permute.xlu2 %7983 }
 0x697   :  { %7649 = vmatmul.msk.f32.vlgmr.msra.gmra.mxu3 %vm960_vm15, %v7646_v45  ;;  %7652 = vmatmul.msk.f32.vlgmr.msrb.gmra.mxu1 %vm960_vm15, %v7650_v5 }
 0x698   :  { %5907 = vmatpush.msra.mxu3 %v9323_v43  ;;  %5965 = vmatpush.msrb.mxu1 %v5942_v23  ;;  %v6020_v43 = vsel %vm9914_vm5, %v7980_v19, %v7981_v22  ;;  %v7994_v31 = vpop.permute.xlu0 %7993  ;;  %vm9924_vm5 = vmmov %vm9922_vm3 }
 0x699   :  { %7653 = vmatmul.msk.f32.vlgmr.msrb.gmra.mxu2 %vm960_vm15, %v7650_v5  ;;  %v7996_v25 = vunpack.i.h.bf16 %v7994_v31 }
 0x69a   :  { %5985 = vmatpush.msrb.mxu2 %v5943_v44  ;;  %v7995_v44 = vunpack.i.l.bf16 %v7994_v31 }
 0x69d   :  { %7656 = vmatmul.msk.f32.vlgmr.msra.gmra.mxu0 %vm960_vm15, %v7654_v58 }
 0x69e   :  { %6043 = vmatpush.msra.mxu0 %v6020_v43  ;;  %v6376_v46 = vpop.permute.xlu2 %6375 }
 0x69f   :  { %7655 = vmatmul.msk.f32.vlgmr.msrb.gmra.mxu3 %vm960_vm15, %v7654_v58  ;;  %7657 = vmatmul.msk.f32.vlgmr.msra.gmra.mxu1 %vm960_vm15, %v7654_v58 }
 0x6a0   :  { %6005 = vmatpush.msrb.mxu3 %v7976_v41  ;;  %6063 = vmatpush.msra.mxu1 %v6021_v9  ;;  %v7694_v9 = vld [vmem:[%s9775_s5 + $0x88] sm:$0xff] }
 0x6a1   :  { %7659 = vmatmul.msk.f32.vlgmr.msra.gmra.mxu2 %vm960_vm15, %v7658_v0 }
 0x6a2   :  { %6083 = vmatpush.msra.mxu2 %v6019_v57 }
 0x6a5   :  { %7661 = vmatmul.msk.f32.vlgmr.msrb.gmra.mxu0 %vm960_vm15, %v7658_v0 }
 0x6a6   :  { %6130 = vmatpush.msrb.mxu0 %v9349_v36  ;;  %v7670_v36 = vld [vmem:[%s9775_s5 + $0x58] sm:$0xff]  ;;  %v7999_v55 = vpop.permute.xlu2 %7998 }
 0x6a7   :  { %7660 = vmatmul.msk.f32.vlgmr.msra.gmra.mxu3 %vm960_vm15, %v7658_v0  ;;  %7663 = vmatmul.msk.f32.vlgmr.msrb.gmra.mxu1 %vm960_vm15, %v7662_v2  ;;  %v8000_v57 = vunpack.i.l.bf16 %v7999_v55 }
 0x6a8   :  { %6110 = vmatpush.msra.mxu3 %v9345_v63  ;;  %6150 = vmatpush.msrb.mxu1 %v9285_v24  ;;  %v7986_v24 = vunpack.i.h.bf16 %v7984_v14  ;;  %v7985_v63 = vunpack.i.l.bf16 %v7984_v14  ;;  %v4685_v20 = vpop.f32.mrf.mxu2 }
 0x6a9   :  { %7664 = vmatmul.msk.f32.vlgmr.msrb.gmra.mxu2 %vm960_vm15, %v7662_v2 }
 0x6aa   :  { %6177 = vmatpush.msrb.mxu2 %v9354_v37  ;;  %v6298_v37 = vpop.permute.xlu1 %6297 }
 0x6ad   :  { %7667 = vmatmul.msk.f32.vlgmr.msra.gmra.mxu0 %vm960_vm15, %v7666_v6 }
 0x6ae   :  { %6217 = vmatpush.msra.mxu0 %v9368_v53  ;;  %v7674_v53 = vld [vmem:[%s9775_s5 + $0x60] sm:$0xff] }
 0x6af   :  { %7665 = vmatmul.msk.f32.vlgmr.msrb.gmra.mxu3 %vm960_vm15, %v7662_v2  ;;  %7668 = vmatmul.msk.f32.vlgmr.msra.gmra.mxu1 %vm960_vm15, %v7666_v6  ;;  %v6656_v2 = vsel %vm9921_vm2, %v7995_v44, %v7996_v25  ;;  %vm9931_vm2 = vcmask 367616  }
 0x6b0   :  { %6197 = vmatpush.msrb.mxu3 %v9374_v54  ;;  %6244 = vmatpush.msra.mxu1 %v9383_v4  ;;  %v6299_v54 = vsel %vm9916_vm8, %v7985_v63, %v7986_v24  ;;  %v6300_v4 = vsel %vm9917_vm9, %v7986_v24, %v6298_v37  ;;  %vm9926_vm8 = vmmov %vm9925_vm7  ;;  %vm9927_vm9 = vcmask 375808  }
 0x6b1   :  { %7669 = vmatmul.msk.f32.vlgmr.msra.gmra.mxu2 %vm960_vm15, %v7666_v6 }
 0x6b2   :  { %6264 = vmatpush.msra.mxu2 %v9387_v26  ;;  %v7991_v26 = vunpack.i.h.bf16 %v7989_v61  ;;  %v6655_v21 = vpop.permute.xlu1 %6654 }
 0x6b4   :  { %v6378_v3 = vsel %vm9918_vm10, %v7991_v26, %v6376_v46  ;;  %vm9928_vm10 = vmmov %vm9925_vm7 }
 0x6b5   :  { %7672 = vmatmul.msk.f32.vlgmr.msrb.gmra.mxu0 %vm960_vm15, %v7670_v36 }
 0x6b6   :  { %6322 = vmatpush.msrb.mxu0 %v6299_v54 }
 0x6b7   :  { %7671 = vmatmul.msk.f32.vlgmr.msra.gmra.mxu3 %vm960_vm15, %v7670_v36  ;;  %7673 = vmatmul.msk.f32.vlgmr.msrb.gmra.mxu1 %vm960_vm15, %v7670_v36 }
 0x6b8   :  { %6284 = vmatpush.msra.mxu3 %v9316_v40  ;;  %6342 = vmatpush.msrb.mxu1 %v6300_v4  ;;  %v4651_v59 = vpop.f32.mrf.mxu1  ;;  %v6377_v40 = vsel %vm9919_vm11, %v7990_v62, %v7991_v26  ;;  %v7698_v4 = vld [vmem:[%s9775_s5 + $0x90] sm:$0xff]  ;;  %vm9929_vm11 = vmmov %vm9927_vm9 }
 0x6b9   :  { %7675 = vmatmul.msk.f32.vlgmr.msrb.gmra.mxu2 %vm960_vm15, %v7674_v53 }
 0x6ba   :  { %6362 = vmatpush.msrb.mxu2 %v6298_v37  ;;  %v4631_v30 = vpop.f32.mrf.mxu0  ;;  %v9605_v0 = vpop.permute.xlu1 %8023 }
 0x6bb   :  { %v8025_v26 = vunpack.i.l.bf16 %v9605_v0  ;;  %v8026_v62 = vunpack.i.h.bf16 %v9605_v0 }
 0x6bd   :  { %7677 = vmatmul.msk.f32.vlgmr.msra.gmra.mxu0 %vm960_vm15, %v7674_v53 }
 0x6be   :  { %6420 = vmatpush.msra.mxu0 %v6378_v3 }
 0x6bf   :  { %7676 = vmatmul.msk.f32.vlgmr.msrb.gmra.mxu3 %vm960_vm15, %v7674_v53  ;;  %7679 = vmatmul.msk.f32.vlgmr.msra.gmra.mxu1 %vm960_vm15, %v7678_v1  ;;  %v8009_v53 = vpop.permute.xlu2 %8008 }
 0x6c0   :  { %6400 = vmatpush.msrb.mxu3 %v6377_v40  ;;  %v4611_v8 = vpop.f32.mrf.mxu3  ;;  %6440 = vmatpush.msra.mxu1 %v6376_v46 }
 0x6c1   :  { %7680 = vmatmul.msk.f32.vlgmr.msra.gmra.mxu2 %vm960_vm15, %v7678_v1  ;;  %v4686_v27 = vadd.f32 %v4685_v20, %v4611_v8 }
 0x6c2   :  { %6467 = vmatpush.msra.mxu2 %v9409_v10  ;;  %v4725_v7 = vpop.f32.mrf.mxu0  ;;  %v8029_v40 = vpop.permute.xlu1 %8028 }
 0x6c3   :  { %v4726_v41 = vadd.f32 %v4725_v7, %v4651_v59  ;;  %v6826_v7 = vsel %vm9926_vm8, %v8025_v26, %v8026_v62 }
 0x6c4   :  { %v4760_v33 = vpop.f32.mrf.mxu1 }
 0x6c5   :  { %7683 = vmatmul.msk.f32.vlgmr.msrb.gmra.mxu0 %vm960_vm15, %v7682_v15  ;;  %v4803_v38 = vadd.f32 %v4760_v33, %v4686_v27 }
 0x6c6   :  { %6507 = vmatpush.msrb.mxu0 %v9404_v48  ;;  %v7686_v48 = vld [vmem:[%s9775_s5 + $0x78] sm:$0xff] }
 0x6c7   :  { %7681 = vmatmul.msk.f32.vlgmr.msra.gmra.mxu3 %vm960_vm15, %v7678_v1  ;;  %7684 = vmatmul.msk.f32.vlgmr.msrb.gmra.mxu1 %vm960_vm15, %v7682_v15  ;;  %v8011_v1 = vunpack.i.h.bf16 %v8009_v53 }
 0x6c8   :  { %6487 = vmatpush.msra.mxu3 %v9413_v16  ;;  %6534 = vmatpush.msrb.mxu1 %v9396_v11  ;;  %v7690_v11 = vld [vmem:[%s9775_s5 + $0x80] sm:$0xff]  ;;  %v8004_v16 = vpop.permute.xlu0 %8003 }
 0x6c9   :  { %7685 = vmatmul.msk.f32.vlgmr.msrb.gmra.mxu2 %vm960_vm15, %v7682_v15  ;;  %v4705_v10 = vpop.f32.mrf.mxu3  ;;  %v8006_v24 = vunpack.i.h.bf16 %v8004_v16  ;;  %v8005_v63 = vunpack.i.l.bf16 %v8004_v16  ;;  %v6825_v27 = vsel %vm9925_vm7, %v8011_v1, %v8025_v26  ;;  %v7706_v16 = vld [vmem:[%s9775_s5 + $0xa0] sm:$0xff]  ;;  %v7714_v26 = vld [vmem:[%s9775_s5 + $0xb0] sm:$0xff] }
 0x6ca   :  { %6554 = vmatpush.msrb.mxu2 %v9431_v49  ;;  %v4838_v39 = vpop.f32.mrf.mxu0  ;;  %v4706_v35 = vadd.f32 %v4705_v10, %v4631_v30 }
 0x6cb   :  { %v4881_v42 = vadd.f32 %v4838_v39, %v4803_v38  ;;  %v6746_v3 = vsel %vm9923_vm4, %v8005_v63, %v8006_v24  ;;  %vm9933_vm4 = vmmov %vm9931_vm2 }
 0x6cc   :  { %v4780_v45 = vpop.f32.mrf.mxu2  ;;  %v4858_v5 = vpop.f32.mrf.mxu1 }
 0x6cd   :  { %v4804_v60 = vadd.f32 %v4780_v45, %v4706_v35  ;;  %7688 = vmatmul.msk.f32.vlgmr.msra.gmra.mxu0 %vm960_vm15, %v7686_v48  ;;  %v8030_v35 = vunpack.i.l.bf16 %v8029_v40  ;;  %v8010_v45 = vunpack.i.l.bf16 %v8009_v53 }
 0x6ce   :  { %6601 = vmatpush.msra.mxu0 %v9434_v34  ;;  %v8001_v34 = vunpack.i.h.bf16 %v7999_v55 }
 0x6cf   :  { %v4882_v49 = vadd.f32 %v4858_v5, %v4804_v60  ;;  %7687 = vmatmul.msk.f32.vlgmr.msrb.gmra.mxu3 %vm960_vm15, %v7686_v48  ;;  %7689 = vmatmul.msk.f32.vlgmr.msra.gmra.mxu1 %vm960_vm15, %v7686_v48  ;;  %v8031_v60 = vunpack.i.h.bf16 %v8029_v40 }
 0x6d0   :  { %6574 = vmatpush.msrb.mxu3 %v9426_v13  ;;  %6621 = vmatpush.msra.mxu1 %v9438_v12  ;;  %v8014_v6 = vpop.permute.xlu0 %8013  ;;  %v6744_v14 = vsel %vm9922_vm3, %v8000_v57, %v8001_v34  ;;  %v6745_v8 = vsel %vm9924_vm5, %v8001_v34, %v8005_v63  ;;  %vm9932_vm3 = vmmov %vm9931_vm2  ;;  %vm9934_vm5 = vcmask 359424  }
 0x6d1   :  { %7691 = vmatmul.msk.f32.vlgmr.msra.gmra.mxu2 %vm960_vm15, %v7690_v11  ;;  %v4800_v52 = vpop.f32.mrf.mxu3  ;;  %v8016_v15 = vunpack.i.h.bf16 %v8014_v6  ;;  %v8015_v31 = vunpack.i.l.bf16 %v8014_v6  ;;  %v7710_v6 = vld [vmem:[%s9775_s5 + $0xa8] sm:$0xff]  ;;  %vm9935_vm7 = vmmov %vm9934_vm5 }
 0x6d2   :  { %6641 = vmatpush.msra.mxu2 %v9415_v18  ;;  %v4936_v23 = vpop.f32.mrf.mxu0  ;;  %v4805_v22 = vadd.f32 %v4800_v52, %v4726_v41  ;;  %v6657_v18 = vsel %vm9920_vm1, %v7996_v25, %v6655_v21  ;;  %v6827_v41 = vsel %vm9928_vm10, %v8026_v62, %v8010_v45  ;;  %v8019_v25 = vpop.permute.xlu2 %8018  ;;  %vm9930_vm1 = vmmov %vm9927_vm9  ;;  %vm3725_vm10 = vcmask 1047556  }
 0x6d3   :  { %v4960_v19 = vadd.f32 %v4936_v23, %v4882_v49  ;;  %v6906_v49 = vsel %vm9927_vm9, %v8015_v31, %v8016_v15  ;;  %v6907_v52 = vsel %vm9929_vm11, %v8016_v15, %v8030_v35  ;;  %v8034_v23 = vpop.permute.xlu1 %8033  ;;  %v6908_v44 = vsel %vm9930_vm1, %v8030_v35, %v8031_v60  ;;  %vm9936_vm8 = vmmov %vm9934_vm5 }
 0x6d4   :  { %v4878_v58 = vpop.f32.mrf.mxu2  ;;  %v4956_v43 = vpop.f32.mrf.mxu1  ;;  %vm3724_vm9 = vcmask 1043792   ;;  %vm3728_vm1 = vcmask 830464  }
 0x6d5   :  { %v4883_v13 = vadd.f32 %v4878_v58, %v4805_v22  ;;  %7693 = vmatmul.msk.f32.vlgmr.msrb.gmra.mxu0 %vm960_vm15, %v7690_v11  ;;  %v8020_v58 = vunpack.i.l.bf16 %v8019_v25  ;;  %vm9730_vm11 = vmor %vm3725_vm10, %vm3724_vm9 }
 0x6d6   :  { %6699 = vmatpush.msrb.mxu0 %v6657_v18 }
 0x6d7   :  { %v4961_v12 = vadd.f32 %v4956_v43, %v4883_v13  ;;  %7692 = vmatmul.msk.f32.vlgmr.msra.gmra.mxu3 %vm960_vm15, %v7690_v11  ;;  %7695 = vmatmul.msk.f32.vlgmr.msrb.gmra.mxu1 %vm960_vm15, %v7694_v9  ;;  %v8036_v43 = vunpack.i.h.bf16 %v8034_v23 }
 0x6d8   :  { %6679 = vmatpush.msra.mxu3 %v6656_v2  ;;  %6719 = vmatpush.msrb.mxu1 %v6655_v21  ;;  %v6984_v38 = vpop.permute.xlu0 %6983  ;;  %v7702_v21 = vld [vmem:[%s9775_s5 + $0x98] sm:$0xff] }
 0x6d9   :  { %7696 = vmatmul.msk.f32.vlgmr.msrb.gmra.mxu2 %vm960_vm15, %v7694_v9 }
 0x6da   :  { %6768 = vmatpush.msrb.mxu2 %v6744_v14  ;;  %v4916_v36 = vpop.f32.mrf.mxu3  ;;  %v5034_v37 = vpop.f32.mrf.mxu0 }
 0x6db   :  { %v4959_v54 = vadd.f32 %v4916_v36, %v4881_v42  ;;  %v5039_v61 = vadd.f32 %v5034_v37, %v4961_v12  ;;  %v7065_v62 = vpop.permute.xlu2 %7064 }
 0x6dc   :  { %v4994_v30 = vpop.f32.mrf.mxu2  ;;  %v5072_v46 = vpop.f32.mrf.mxu1 }
 0x6dd   :  { %v5037_v59 = vadd.f32 %v4994_v30, %v4959_v54  ;;  %7699 = vmatmul.msk.f32.vlgmr.msra.gmra.mxu0 %vm960_vm15, %v7698_v4  ;;  %v7067_v54 = vpop.permute.xlu1 %7066 }
 0x6de   :  { %6808 = vmatpush.msra.mxu0 %v6746_v3  ;;  %v7069_v3 = vsel %vm9936_vm8, %v8036_v43, %v7065_v62 }
 0x6df   :  { %v5115_v20 = vadd.f32 %v5072_v46, %v5037_v59  ;;  %7697 = vmatmul.msk.f32.vlgmr.msrb.gmra.mxu3 %vm960_vm15, %v7694_v9  ;;  %7700 = vmatmul.msk.f32.vlgmr.msra.gmra.mxu1 %vm960_vm15, %v7698_v4  ;;  %v8035_v9 = vunpack.i.l.bf16 %v8034_v23  ;;  %v7070_v46 = vsel %vm9935_vm7, %v7065_v62, %v7067_v54 }
 0x6e0   :  { %6788 = vmatpush.msrb.mxu3 %v6745_v8  ;;  %6849 = vmatpush.msra.mxu1 %v6825_v27  ;;  %v6986_v18 = vpop.permute.xlu0 %6985  ;;  %v7718_v8 = vld [vmem:[%s9775_s5 + $0xb8] sm:$0xff] }
 0x6e1   :  { %7701 = vmatmul.msk.f32.vlgmr.msra.gmra.mxu2 %vm960_vm15, %v7698_v4  ;;  %v6989_v36 = vsel %vm9933_vm4, %v6984_v38, %v6986_v18  ;;  %v7068_v37 = vsel %vm9934_vm5, %v8035_v9, %v8036_v43 }
 0x6e2   :  { %6869 = vmatpush.msra.mxu2 %v6826_v7  ;;  %v5014_v33 = vpop.f32.mrf.mxu3  ;;  %v5150_v39 = vpop.f32.mrf.mxu0 }
 0x6e3   :  { %v5038_v10 = vadd.f32 %v5014_v33, %v4960_v19  ;;  %v5193_v48 = vadd.f32 %v5150_v39, %v5115_v20  ;;  %v8021_v19 = vunpack.i.h.bf16 %v8019_v25  ;;  %v7722_v33 = vld [vmem:[%s9775_s5 + $0xc0] sm:$0xff] }
 0x6e4   :  { %v5092_v42 = vpop.f32.mrf.mxu2  ;;  %v5170_v11 = vpop.f32.mrf.mxu1 }
 0x6e5   :  { %v5116_v5 = vadd.f32 %v5092_v42, %v5038_v10  ;;  %7704 = vmatmul.msk.f32.vlgmr.msrb.gmra.mxu0 %vm960_vm15, %v7702_v21  ;;  %v6988_v14 = vsel %vm9931_vm2, %v8021_v19, %v6984_v38  ;;  %v6987_v63 = vsel %vm9932_vm3, %v8020_v58, %v8021_v19 }
 0x6e6   :  { %6930 = vmatpush.msrb.mxu0 %v6906_v49 }
 0x6e7   :  { %v5194_v55 = vadd.f32 %v5170_v11, %v5116_v5  ;;  %7703 = vmatmul.msk.f32.vlgmr.msra.gmra.mxu3 %vm960_vm15, %v7702_v21  ;;  %7705 = vmatmul.msk.f32.vlgmr.msrb.gmra.mxu1 %vm960_vm15, %v7702_v21 }
 0x6e8   :  { %6889 = vmatpush.msra.mxu3 %v6827_v41  ;;  %6950 = vmatpush.msrb.mxu1 %v6907_v52 }
 0x6e9   :  { %7707 = vmatmul.msk.f32.vlgmr.msrb.gmra.mxu2 %vm960_vm15, %v7706_v16 }
 0x6ea   :  { %6970 = vmatpush.msrb.mxu2 %v6908_v44  ;;  %v5112_v22 = vpop.f32.mrf.mxu3  ;;  %v5248_v57 = vpop.f32.mrf.mxu0 }
 0x6eb   :  { %v5117_v34 = vadd.f32 %v5112_v22, %v5039_v61  ;;  %v9644_v13 = vadd.f32 %v5248_v57, %v5194_v55 }
 0x6ec   :  { %v5190_v0 = vpop.f32.mrf.mxu2  ;;  %v5268_v2 = vpop.f32.mrf.mxu1 }
 0x6ed   :  { %v5195_v12 = vadd.f32 %v5190_v0, %v5117_v34  ;;  %7709 = vmatmul.msk.f32.vlgmr.msra.gmra.mxu0 %vm960_vm15, %v7706_v16 }
 0x6ee   :  { %7031 = vmatpush.msra.mxu0 %v6988_v14 }
 0x6ef   :  { %v9651_v24 = vadd.f32 %v5268_v2, %v5195_v12  ;;  %7708 = vmatmul.msk.f32.vlgmr.msrb.gmra.mxu3 %vm960_vm15, %v7706_v16  ;;  %7711 = vmatmul.msk.f32.vlgmr.msra.gmra.mxu1 %vm960_vm15, %v7710_v6 }
 0x6f0   :  { %7011 = vmatpush.msrb.mxu3 %v6987_v63  ;;  %7051 = vmatpush.msra.mxu1 %v6989_v36 }
 0x6f1   :  { %7712 = vmatmul.msk.f32.vlgmr.msra.gmra.mxu2 %vm960_vm15, %v7710_v6 }
 0x6f2   :  { %7092 = vmatpush.msra.mxu2 %v7068_v37  ;;  %v5228_v53 = vpop.f32.mrf.mxu3  ;;  %v5356_v4 = vpop.f32.mrf.mxu0 }
 0x6f3   :  { %v9659_v61 = vadd.f32 %v5228_v53, %v5193_v48 }
 0x6f4   :  { %v5316_v30 = vpop.f32.mrf.mxu2  ;;  %v5379_v59 = vpop.f32.mrf.mxu1 }
 0x6f5   :  { %v5380_v1 = vadd.f32 %v5379_v59, %v5316_v30  ;;  %7715 = vmatmul.msk.f32.vlgmr.msrb.gmra.mxu0 %vm960_vm15, %v7714_v26 }
 0x6f6   :  { %7132 = vmatpush.msrb.mxu0 %v7070_v46 }
 0x6f7   :  { %7713 = vmatmul.msk.f32.vlgmr.msra.gmra.mxu3 %vm960_vm15, %v7710_v6  ;;  %7716 = vmatmul.msk.f32.vlgmr.msrb.gmra.mxu1 %vm960_vm15, %v7714_v26 }
 0x6f8   :  { %7112 = vmatpush.msra.mxu3 %v7069_v3 }
 0x6f9   :  { %7717 = vmatmul.msk.f32.vlgmr.msrb.gmra.mxu2 %vm960_vm15, %v7714_v26 }
 0x6fa   :  { %v5336_v40 = vpop.f32.mrf.mxu3  ;;  %v5454_v20 = vpop.f32.mrf.mxu0 }
 0x6fb   :  { %v5497_v7 = vadd.f32 %v5454_v20, %v5380_v1 }
 0x6fc   :  { %v5399_v27 = vpop.f32.mrf.mxu2  ;;  %v5474_v31 = vpop.f32.mrf.mxu1 }
 0x6fd   :  { %v5400_v15 = vadd.f32 %v5399_v27, %v5336_v40  ;;  %7720 = vmatmul.msk.f32.vlgmr.msra.gmra.mxu0 %vm960_vm15, %v7718_v8 }
 0x6ff   :  { %v5498_v38 = vadd.f32 %v5474_v31, %v5400_v15  ;;  %7719 = vmatmul.msk.f32.vlgmr.msrb.gmra.mxu3 %vm960_vm15, %v7718_v8  ;;  %7721 = vmatmul.msk.f32.vlgmr.msra.gmra.mxu1 %vm960_vm15, %v7718_v8 }
 0x701   :  { %7723 = vmatmul.msk.f32.vlgmr.msra.gmra.mxu2 %vm960_vm15, %v7722_v33 }
 0x702   :  { %v5419_v10 = vpop.f32.mrf.mxu3  ;;  %v5552_v21 = vpop.f32.mrf.mxu0 }
 0x703   :  { %v5420_v39 = vadd.f32 %v5419_v10, %v5356_v4  ;;  %v5576_v42 = vadd.f32 %v5552_v21, %v5498_v38 }
 0x704   :  { %v5494_v35 = vpop.f32.mrf.mxu2  ;;  %v5572_v45 = vpop.f32.mrf.mxu1 }
 0x705   :  { %v5499_v48 = vadd.f32 %v5494_v35, %v5420_v39  ;;  %7725 = vmatmul.msk.f32.vlgmr.msrb.gmra.mxu0 %vm960_vm15, %v7722_v33 }
 0x707   :  { %v5577_v60 = vadd.f32 %v5572_v45, %v5499_v48  ;;  %7724 = vmatmul.msk.f32.vlgmr.msra.gmra.mxu3 %vm960_vm15, %v7722_v33 }
 0x70a   :  { %v5532_v5 = vpop.f32.mrf.mxu3  ;;  %v5650_v16 = vpop.f32.mrf.mxu0 }
 0x70b   :  { %v5575_v11 = vadd.f32 %v5532_v5, %v5497_v7  ;;  %v5655_v55 = vadd.f32 %v5650_v16, %v5577_v60 }
 0x70c   :  { %v5610_v49 = vpop.f32.mrf.mxu2  ;;  %v5688_v25 = vpop.f32.mrf.mxu1 }
 0x70d   :  { %v5653_v41 = vadd.f32 %v5610_v49, %v5575_v11 }
 0x70f   :  { %v5731_v52 = vadd.f32 %v5688_v25, %v5653_v41 }
 0x712   :  { %v5630_v23 = vpop.f32.mrf.mxu3  ;;  %v5755_v22 = vpop.f32.mrf.mxu0 }
 0x713   :  { %v5654_v44 = vadd.f32 %v5630_v23, %v5576_v42  ;;  %v5798_v58 = vadd.f32 %v5755_v22, %v5731_v52 }
 0x714   :  { %v5708_v19 = vpop.f32.mrf.mxu2  ;;  %v5775_v57 = vpop.f32.mrf.mxu1 }
 0x715   :  { %v5732_v34 = vadd.f32 %v5708_v19, %v5654_v44 }
 0x717   :  { %v5799_v0 = vadd.f32 %v5775_v57, %v5732_v34 }
 0x71a   :  { %v5728_v43 = vpop.f32.mrf.mxu3  ;;  %v5842_v18 = vpop.f32.mrf.mxu0 }
 0x71b   :  { %v5733_v9 = vadd.f32 %v5728_v43, %v5655_v55  ;;  %v5866_v2 = vadd.f32 %v5842_v18, %v5799_v0 }
 0x71c   :  { %v5795_v12 = vpop.f32.mrf.mxu2  ;;  %v5862_v14 = vpop.f32.mrf.mxu1 }
 0x71d   :  { %v5800_v6 = vadd.f32 %v5795_v12, %v5733_v9 }
 0x71f   :  { %v5867_v63 = vadd.f32 %v5862_v14, %v5800_v6 }
 0x722   :  { %v5822_v36 = vpop.f32.mrf.mxu3  ;;  %v5929_v53 = vpop.f32.mrf.mxu0 }
 0x723   :  { %v5865_v37 = vadd.f32 %v5822_v36, %v5798_v58  ;;  %v5934_v4 = vadd.f32 %v5929_v53, %v5867_v63 }
 0x724   :  { %v5889_v54 = vpop.f32.mrf.mxu2  ;;  %v5967_v30 = vpop.f32.mrf.mxu1 }
 0x725   :  { %v5932_v26 = vadd.f32 %v5889_v54, %v5865_v37 }
 0x727   :  { %v6010_v25 = vadd.f32 %v5967_v30, %v5932_v26 }
 0x72a   :  { %v5909_v62 = vpop.f32.mrf.mxu3  ;;  %v6045_v46 = vpop.f32.mrf.mxu0 }
 0x72b   :  { %v5933_v59 = vadd.f32 %v5909_v62, %v5866_v2  ;;  %v6088_v22 = vadd.f32 %v6045_v46, %v6010_v25 }
 0x72c   :  { %v5987_v1 = vpop.f32.mrf.mxu2  ;;  %v6065_v40 = vpop.f32.mrf.mxu1 }
 0x72d   :  { %v6011_v3 = vadd.f32 %v5987_v1, %v5933_v59 }
 0x72f   :  { %v6089_v43 = vadd.f32 %v6065_v40, %v6011_v3 }
 0x732   :  { %v6007_v20 = vpop.f32.mrf.mxu3  ;;  %v6132_v8 = vpop.f32.mrf.mxu0 }
 0x733   :  { %v6012_v55 = vadd.f32 %v6007_v20, %v5934_v4  ;;  %v6156_v6 = vadd.f32 %v6132_v8, %v6089_v43 }
 0x734   :  { %v6085_v27 = vpop.f32.mrf.mxu2  ;;  %v6152_v7 = vpop.f32.mrf.mxu1 }
 0x735   :  { %v6090_v52 = vadd.f32 %v6085_v27, %v6012_v55 }
 0x737   :  { %v6157_v58 = vadd.f32 %v6152_v7, %v6090_v52 }
 0x73a   :  { %v6112_v15 = vpop.f32.mrf.mxu3  ;;  %v6219_v31 = vpop.f32.mrf.mxu0 }
 0x73b   :  { %v6155_v34 = vadd.f32 %v6112_v15, %v6088_v22  ;;  %v6224_v57 = vadd.f32 %v6219_v31, %v6157_v58  ;;  %v5278_v58 = vpop.permute.xlu2 %5277 }
 0x73c   :  { %v6179_v33 = vpop.f32.mrf.mxu2  ;;  %v6246_v38 = vpop.f32.mrf.mxu1 }
 0x73d   :  { %v6222_v9 = vadd.f32 %v6179_v33, %v6155_v34  ;;  %v7144_v34 = vpop.permute.xlu0 %7143 }
 0x73f   :  { %v6289_v63 = vadd.f32 %v6246_v38, %v6222_v9 }
 0x742   :  { %v6199_v10 = vpop.f32.mrf.mxu3  ;;  %v6324_v39 = vpop.f32.mrf.mxu0 }
 0x743   :  { %v6223_v36 = vadd.f32 %v6199_v10, %v6156_v6  ;;  %v6367_v53 = vadd.f32 %v6324_v39, %v6289_v63  ;;  %v5280_v6 = vadd.f32 %v5278_v58, %v9659_v61  ;;  %v5281_v61 = vadd.f32 %v5278_v58, %v9644_v13 }
 0x744   :  { %v6266_v21 = vpop.f32.mrf.mxu2  ;;  %v6344_v35 = vpop.f32.mrf.mxu1 }
 0x745   :  { %v6290_v4 = vadd.f32 %v6266_v21, %v6223_v36 }
 0x747   :  { %v6368_v20 = vadd.f32 %v6344_v35, %v6290_v4  ;;  %v7149_v4 = vmul.f32 %v5280_v6, %v8949_v32  ;;  %v7198_v6 = vld [vmem:[%s9777_s7] sm:$0xf] }
 0x74a   :  { %v6286_v42 = vpop.f32.mrf.mxu3  ;;  %v6422_v48 = vpop.f32.mrf.mxu0 }
 0x74b   :  { %v6291_v18 = vadd.f32 %v6286_v42, %v6224_v57  ;;  %v6446_v27 = vadd.f32 %v6422_v48, %v6368_v20 }
 0x74c   :  { %v6364_v45 = vpop.f32.mrf.mxu2  ;;  %v6442_v60 = vpop.f32.mrf.mxu1 }
 0x74d   :  { %v6369_v37 = vadd.f32 %v6364_v45, %v6291_v18  ;;  %v5282_v18 = vadd.f32 %v5278_v58, %v9651_v24 }
 0x74f   :  { %v6447_v26 = vadd.f32 %v6442_v60, %v6369_v37  ;;  %v7151_v37 = vmul.f32 %v5282_v18, %v8949_v32 }
 0x752   :  { %v6402_v5 = vpop.f32.mrf.mxu3  ;;  %v6509_v11 = vpop.f32.mrf.mxu0 }
 0x753   :  { %v6445_v30 = vadd.f32 %v6402_v5, %v6367_v53  ;;  %v6514_v46 = vadd.f32 %v6509_v11, %v6447_v26 }
 0x754   :  { %v6469_v16 = vpop.f32.mrf.mxu2  ;;  %v6536_v49 = vpop.f32.mrf.mxu1 }
 0x755   :  { %v6512_v3 = vadd.f32 %v6469_v16, %v6445_v30 }
 0x757   :  { %v6579_v15 = vadd.f32 %v6536_v49, %v6512_v3 }
 0x75a   :  { %v6489_v41 = vpop.f32.mrf.mxu3  ;;  %v6603_v23 = vpop.f32.mrf.mxu0 }
 0x75b   :  { %v6513_v8 = vadd.f32 %v6489_v41, %v6446_v27  ;;  %v6646_v10 = vadd.f32 %v6603_v23, %v6579_v15 }
 0x75c   :  { %v6556_v44 = vpop.f32.mrf.mxu2  ;;  %v6623_v19 = vpop.f32.mrf.mxu1 }
 0x75d   :  { %v6580_v42 = vadd.f32 %v6556_v44, %v6513_v8  ;;  %v7150_v8 = vmul.f32 %v5281_v61, %v8949_v32 }
 0x75f   :  { %v6647_v55 = vadd.f32 %v6623_v19, %v6580_v42  ;;  %v3621_v42 = vld [vmem:[%s9778_s8] sm:$0xf] }
 0x762   :  { %v6576_v0 = vpop.f32.mrf.mxu3  ;;  %v6701_v12 = vpop.f32.mrf.mxu0 }
 0x763   :  { %v6581_v40 = vadd.f32 %v6576_v0, %v6514_v46  ;;  %v6725_v52 = vadd.f32 %v6701_v12, %v6647_v55  ;;  %v7169_v46 = vpop.permute.xlu0 %7168 }
 0x764   :  { %v6643_v2 = vpop.f32.mrf.mxu2  ;;  %v6721_v14 = vpop.f32.mrf.mxu1 }
 0x765   :  { %v6648_v31 = vadd.f32 %v6643_v2, %v6581_v40 }
 0x767   :  { %v6726_v21 = vadd.f32 %v6721_v14, %v6648_v31 }
 0x76a   :  { %v6681_v54 = vpop.f32.mrf.mxu3  ;;  %v6810_v62 = vpop.f32.mrf.mxu0 }
 0x76b   :  { %v6724_v45 = vadd.f32 %v6681_v54, %v6646_v10  ;;  %v6815_v60 = vadd.f32 %v6810_v62, %v6726_v21  ;;  %v7165_v54 = vpop.permute.xlu1 %7164 }
 0x76c   :  { %v6770_v59 = vpop.f32.mrf.mxu2  ;;  %v6851_v1 = vpop.f32.mrf.mxu1 }
 0x76d   :  { %v6813_v11 = vadd.f32 %v6770_v59, %v6724_v45  ;;  %v7167_v59 = vpop.permute.xlu2 %7166 }
 0x76e   :  { %v7170_v3 = vsel %vm451_vm6, %v7165_v54, %v7167_v59  ;;  %v7171_v13 = vsel %vm451_vm6, %v7167_v59, %v7169_v46 }
 0x76f   :  { %v6894_v22 = vadd.f32 %v6851_v1, %v6813_v11 }
 0x772   :  { %v6790_v7 = vpop.f32.mrf.mxu3  ;;  %v6932_v33 = vpop.f32.mrf.mxu0 }
 0x773   :  { %v6814_v49 = vadd.f32 %v6790_v7, %v6725_v52  ;;  %v6975_v57 = vadd.f32 %v6932_v33, %v6894_v22 }
 0x774   :  { %v6871_v38 = vpop.f32.mrf.mxu2  ;;  %v6952_v39 = vpop.f32.mrf.mxu1 }
 0x775   :  { %v6895_v44 = vadd.f32 %v6871_v38, %v6814_v49 }
 0x777   :  { %v6976_v63 = vadd.f32 %v6952_v39, %v6895_v44 }
 0x77a   :  { %v6891_v5 = vpop.f32.mrf.mxu3  ;;  %v7033_v35 = vpop.f32.mrf.mxu0 }
 0x77b   :  { %v6896_v25 = vadd.f32 %v6891_v5, %v6815_v60  ;;  %v7057_v26 = vadd.f32 %v7033_v35, %v6976_v63 }
 0x77c   :  { %v6972_v16 = vpop.f32.mrf.mxu2  ;;  %v7053_v41 = vpop.f32.mrf.mxu1 }
 0x77d   :  { %v6977_v48 = vadd.f32 %v6972_v16, %v6896_v25 }
 0x77f   :  { %v7058_v23 = vadd.f32 %v7053_v41, %v6977_v48 }
 0x782   :  { %v7013_v0 = vpop.f32.mrf.mxu3  ;;  %v7134_v9 = vpop.f32.mrf.mxu0 }
 0x783   :  { %v7056_v43 = vadd.f32 %v7013_v0, %v6975_v57  ;;  %v7139_v2 = vadd.f32 %v7134_v9, %v7058_v23  ;;  %v8042_v0 = vld [vmem:[%s9781_s11] sm:$0xff] }
 0x784   :  { %v7094_v19 = vpop.f32.mrf.mxu2 }
 0x785   :  { %v7137_v14 = vadd.f32 %v7094_v19, %v7056_v43  ;;  %v7148_v12 = vadd.f32 %v7144_v34, %v7139_v2 }
 0x787   :  { %v7146_v36 = vadd.f32 %v7144_v34, %v7137_v14  ;;  %v7154_v53 = vmul.f32 %v7148_v12, %v8951_v28 }
 0x789   :  { %v7152_v30 = vmul.f32 %v7146_v36, %v8951_v28  ;;  %v7157_v62 = vadd.f32 %v7154_v53, %v7151_v37 }
 0x78a   :  { %v7114_v24 = vpop.f32.mrf.mxu3 }
 0x78b   :  { %v7155_v1 = vadd.f32 %v7152_v30, %v7149_v4  ;;  %v7138_v20 = vadd.f32 %v7114_v24, %v7057_v26  ;;  %v7177_v40 = vadd.f32 %v7169_v46, %v7157_v62 }
 0x78d   :  { %v7175_v27 = vadd.f32 %v7170_v3, %v7155_v1  ;;  %v7147_v7 = vadd.f32 %v7144_v34, %v7138_v20  ;;  %v7180_v15 = vmul.f32 %v7177_v40, %v9882_v51 }
 0x78f   :  { %v7153_v31 = vmul.f32 %v7147_v7, %v8951_v28  ;;  %v7178_v33 = vmul.f32 %v7175_v27, %v9884_v17  ;;  %7188 = vrot.lane.b32.xlu0 %v7180_v15, %s8068_s9 }
 0x791   :  { %v7156_v38 = vadd.f32 %v7153_v31, %v7150_v8  ;;  %7184 = vrot.lane.b32.xlu1 %v7178_v33, %s8068_s9 }
 0x793   :  { %v7176_v10 = vadd.f32 %v7171_v13, %v7156_v38 }
 0x795   :  { %v7179_v39 = vmul.f32 %v7176_v10, %v9883_v56 }
 0x797   :  { %7186 = vrot.lane.b32.xlu2 %v7179_v39, %s8068_s9  ;;  %3624 = vperm.xlu0 %7759, %v3621_v42  }
 0x7f1   :  { %v7187_v32 = vpop.permute.xlu2 %7186 }
 0x801   :  { %v7189_v28 = vpop.permute.xlu0 %7188 }
 0x802   :  { %v7191_v21 = vsel %vm929_vm13, %v7187_v32, %v7189_v28 }
 0x803   :  { %v7185_v45 = vpop.permute.xlu1 %7184  ;;  %7197 = vst.msk [vmem:[#allocation3 + $0x10] sm:$0xff] %vm938_vm14, %v7191_v21 }
 0x804   :  { %v7190_v60 = vsel %vm929_vm13, %v7185_v45, %v7187_v32  ;;  %7195 = vst.msk [vmem:[#allocation3] sm:$0xff] %vm935_vm12, %v7185_v45  ;;  %vm66_vm12 = vcmask 130052  }
 0x805   :  { %vm67_vm14 = vmor %vm66_vm12, %vm65_vm0 }
 0x806   :  { %68 = vst.msk [vmem:[%s9781_s11 + $0x8] sm:$0xff] %vm67_vm14, %v8042_v0 }
 0x807   :  { %70 = vst.msk [vmem:[%s9781_s11 + $0x18] sm:$0xff] %vm67_vm14, %v8042_v0 }
 0x809   :  { %v3625_v5 = vpop.permute.xlu0 %3624 }
 0x80a   :  { %v3662_v55 = vadd.f32 %v9160_v50, %v3625_v5  ;;  %v3682_v11 = vadd.f32 %v9164_v47, %v3625_v5  ;;  %v7201_v25 = vld [vmem:[#allocation3 + $0x10] sm:$0xff]  ;;  %v7202_v50 = vld [vmem:[%s9778_s8] sm:$0xf]  ;;  %v3702_v47 = vadd.f32 %v9162_v29, %v3625_v5 }
 0x80b   :  { %v7199_v35 = vld [vmem:[#allocation3] sm:$0xff]  ;;  %v8037_v16 = vpack.i.bf16 %v7201_v25, %v7190_v60 }
 0x80c   :  { %v3704_v52 = vmax.f32 %v3662_v55, 0.0  ;;  %v3705_v48 = vmax.f32 %v3682_v11, 0.0  ;;  %7211 = vrot.lane.b32.xlu2 %v7199_v35, %s8062_s17  ;;  %v3706_v34 = vmax.f32 %v3702_v47, 0.0 }
 0x80d   :  { %8038 = vrot.lane.b32.xlu1 %v8037_v16, %s8062_s17 }
 0x80e   :  { %v3708_v22 = vmul.f32 %v3705_v48, %v9883_v56  ;;  %v3707_v49 = vmul.f32 %v3704_v52, %v9884_v17  ;;  %v3709_v57 = vmul.f32 %v3706_v34, %v9882_v51 }
 0x810   :  { %v3713_v41 = vrot.slane %v3708_v22, 4 }
 0x812   :  { %v3714_v58 = vsel %vm65_vm0, %v3707_v49, %v3713_v41 }
 0x814   :  { %3715 = vrot.lane.b32.xlu2 %v3714_v58, %s8068_s9 }
 0x815   :  { %7205 = vperm.xlu1 %7895, %v7202_v50  }
 0x81d   :  { %3717 = vrot.lane.b32.xlu1 %v3709_v57, %s8068_s9 }
 0x866   :  { %v7212_v23 = vpop.permute.xlu2 %7211 }
 0x86e   :  { %v3716_v29 = vpop.permute.xlu2 %3715 }
 0x86f   :  { %v3719_v43 = vrot.slane %v3716_v29, 4 }
 0x871   :  { %v3720_v9 = vsel %vm929_vm13, %v3719_v43, %v3716_v29 }
 0x872   :  { %3727 = vst.msk [vmem:[%s9781_s11] sm:$0xff] %vm9730_vm11, %v3720_v9 }
 0x87f   :  { %v8039_v18 = vpop.permute.xlu1 %8038 }
 0x880   :  { %v8041_v19 = vunpack.i.h.bf16 %v8039_v18  ;;  %v8040_v2 = vunpack.i.l.bf16 %v8039_v18 }
 0x882   :  { %7280 = vmatpush.msrb.mxu3 %v8041_v19  ;;  %v7217_v14 = vsel %vm451_vm6, %v7212_v23, %v8040_v2  ;;  %v7218_v12 = vsel %vm451_vm6, %v8040_v2, %v8041_v19 }
 0x883   :  { %7240 = vmatpush.msrb.mxu1 %v7217_v14  ;;  %7260 = vmatpush.msrb.mxu2 %v7218_v12 }
 0x884   :  { %7728 = vmatmul.msk.f32.vlgmr.msrb.gmra.mxu3 %vm960_vm15, %v7198_v6  ;;  %7726 = vmatmul.msk.f32.vlgmr.msrb.gmra.mxu1 %vm960_vm15, %v7198_v6 }
 0x885   :  { %7727 = vmatmul.msk.f32.vlgmr.msrb.gmra.mxu2 %vm960_vm15, %v7198_v6 }
 0x887   :  { %v7206_v63 = vpop.permute.xlu1 %7205 }
 0x88f   :  { %v3718_v36 = vpop.permute.xlu1 %3717 }
 0x890   :  { %v3721_v37 = vsel %vm929_vm13, %v3719_v43, %v3718_v36 }
 0x891   :  { %3729 = vst.msk [vmem:[%s9781_s11 + $0x8] sm:$0xf] %vm3728_vm1, %v3721_v37 }
 0x901   :  { %v7242_v53 = vpop.f32.mrf.mxu1 }
 0x902   :  { %v7243_v54 = vadd.f32 %v7242_v53, %v7206_v63 }
 0x904   :  { %v7285_v59 = vmax.f32 %v7243_v54, 0.0 }
 0x906   :  { %v7288_v20 = vmul.f32 %v7285_v59, %v9884_v17 }
 0x907   :  { %v7282_v4 = vpop.f32.mrf.mxu3 }
 0x908   :  { %v7283_v26 = vadd.f32 %v7282_v4, %v7206_v63  ;;  %v7262_v30 = vpop.f32.mrf.mxu2 }
 0x909   :  { %v7263_v62 = vadd.f32 %v7262_v30, %v7206_v63 }
 0x90a   :  { %v7287_v24 = vmax.f32 %v7283_v26, 0.0 }
 0x90b   :  { %v7286_v46 = vmax.f32 %v7263_v62, 0.0 }
 0x90c   :  { %v7290_v61 = vmul.f32 %v7287_v24, %v9882_v51 }
 0x90d   :  { %v7289_v1 = vmul.f32 %v7286_v46, %v9883_v56 }
 0x90e   :  { %7298 = vrot.lane.b32.xlu2 %v7290_v61, %s8068_s9 }
 0x90f   :  { %v7294_v3 = vrot.slane %v7289_v1, 4 }
 0x911   :  { %v7295_v40 = vsel %vm65_vm0, %v7288_v20, %v7294_v3 }
 0x912   :  { %7296 = vrot.lane.b32.xlu0 %v7295_v40, %s8068_s9 }
 0x968   :  { %v7299_v15 = vpop.permute.xlu2 %7298 }
 0x984   :  { %v7297_v27 = vpop.permute.xlu0 %7296 }
 0x985   :  { %v7300_v7 = vrot.slane %v7297_v27, 4 }
 0x987   :  { %v7301_v8 = vsel %vm929_vm13, %v7300_v7, %v7297_v27  ;;  %v7302_v31 = vsel %vm929_vm13, %v7300_v7, %v7299_v15 }
 0x988   :  { %7729 = vst.msk [vmem:[%s9781_s11 + $0x10] sm:$0xff] %vm9730_vm11, %v7301_v8 }
 0x989   :  { %7730 = vst.msk [vmem:[%s9781_s11 + $0x18] sm:$0xf] %vm3728_vm1, %v7302_v31 }
 0x98a   :  { %7312 = vsyncpa [#allocation5], 1 }

</bundles_post_ra>
